<compile_context>
chip_gen: v7x
topology: tpu7x:2x2x1
jax: 0.10.0
libtpu: 0.0.40
codegen_flags: <defaults>
</compile_context>

<pallas_src>
import math

import jax
import jax.numpy as jnp
from jax.experimental import pallas as pl
from jax.experimental.pallas import tpu as pltpu


def _round_up(x, m):
    return (x + m - 1) // m * m


def _vmem_block_bytes(shape, dtype):
    """Rough (sublane, lane)-padded VMEM footprint of one block."""
    itemsize = 2 if dtype == jnp.bfloat16 else 4
    sub = 16 if itemsize == 2 else 8
    shape = tuple(shape)
    if len(shape) == 1:
        shape = (1,) + shape
    lead = math.prod(shape[:-2]) if len(shape) > 2 else 1
    return lead * _round_up(shape[-2], sub) * _round_up(shape[-1], 128) * itemsize


def attn_decoder_kernel(
    # inputs
    emb_ref, state_ref, enc_ref,
    w_attn_h_ref, w_attn_e_ref, b_attn_ref,
    w_awi_e_ref, w_awi_a_ref, b_awi_ref,
    w_ih0_ref, w_hh0_ref, b0_ref,
    w_ih1_ref, w_hh1_ref, b1_ref,
    w_out_ref, b_out_ref,
    # outputs
    logits_ref, state_out_ref, attn_ref, lse_ref,
    # scratch
    h1_scr, m_scr, l_scr,
):
    H = w_hh0_ref.shape[0]
    v = pl.program_id(0)
    nv = pl.num_programs(0)

    # ---- attention + 2-layer LSTM cell: computed once, on the first vocab tile ----
    @pl.when(v == 0)
    def _():
        emb = emb_ref[...]                      # (B, E)
        state = state_ref[...]                  # (B, 4H) = [h0 | h1 | c0 | c1]
        h0 = state[:, 0 * H:1 * H]
        h1 = state[:, 1 * H:2 * H]
        c0 = state[:, 2 * H:3 * H]
        c1 = state[:, 3 * H:4 * H]

        # attn(cat(h1, emb)) as two matmuls on pre-split weight halves (no lane concat).
        attn_logits = (
            jnp.dot(h1, w_attn_h_ref[...], preferred_element_type=jnp.float32)
            + jnp.dot(emb, w_attn_e_ref[...], preferred_element_type=jnp.float32)
            + b_attn_ref[...])                                          # (B, S)
        attn_logits = attn_logits - jnp.max(attn_logits, axis=1, keepdims=True)
        attn_exp = jnp.exp(attn_logits)
        denom = jnp.sum(attn_exp, axis=1, keepdims=True)
        attn_w = attn_exp * pl.reciprocal(denom, approx=True)           # EUP vrcp
        attn_ref[...] = attn_w

        # bmm(attn_w.unsqueeze(1), encoder_output) with M=1 per batch -> weighted sum on
        # the VPU/XLU (idle in the prologue) instead of wasting MXU pushes.
        attn_applied = jnp.sum(attn_w[:, :, None] * enc_ref[...], axis=1)   # (B, 2H)

        # relu(attn_with_input(cat(emb, attn_applied))) via pre-split weight halves.
        lstm_in = jnp.maximum(
            jnp.dot(emb, w_awi_e_ref[...], preferred_element_type=jnp.float32)
            + jnp.dot(attn_applied, w_awi_a_ref[...], preferred_element_type=jnp.float32)
            + b_awi_ref[...], 0.0)                                      # (B, E)

        def lstm_cell(x, h, c, w_ih, w_hh, b):
            # PyTorch gate order i, f, g, o; b = b_ih + b_hh pre-folded in the wrapper.
            gates = (jnp.dot(x, w_ih, preferred_element_type=jnp.float32)
                     + jnp.dot(h, w_hh, preferred_element_type=jnp.float32) + b)
            i = jax.nn.sigmoid(gates[:, 0 * H:1 * H])
            f = jax.nn.sigmoid(gates[:, 1 * H:2 * H])
            g = jnp.tanh(gates[:, 2 * H:3 * H])
            o = jax.nn.sigmoid(gates[:, 3 * H:4 * H])
            c_new = f * c + i * g
            h_new = o * jnp.tanh(c_new)
            return h_new, c_new

        h0n, c0n = lstm_cell(lstm_in, h0, c0,
                             w_ih0_ref[...], w_hh0_ref[...], b0_ref[...])
        h1n, c1n = lstm_cell(h0n, h1, c1,
                             w_ih1_ref[...], w_hh1_ref[...], b1_ref[...])

        # Merged lane-dense (B, 4H) state slab: one output tensor, one writeback DMA.
        # (For real model sizes pick H as a multiple of 128 so these slices / stores are
        #  lane-aligned.)
        state_out_ref[:, 0 * H:1 * H] = h0n
        state_out_ref[:, 1 * H:2 * H] = h1n
        state_out_ref[:, 2 * H:3 * H] = c0n
        state_out_ref[:, 3 * H:4 * H] = c1n

        # h1' kept in bf16 so the head matmul is a bf16 x bf16 MXU op.
        h1_scr[...] = h1n.astype(h1_scr.dtype)

        # Init running max / sum-exp for the vocab-tiled streaming logsumexp.
        m_scr[...] = jnp.full(m_scr.shape, -jnp.inf, jnp.float32)
        l_scr[...] = jnp.zeros(l_scr.shape, jnp.float32)

    # ---- vocab-tiled output projection (every tile): bf16 weights, f32 accumulate ----
    logits = (jnp.dot(h1_scr[...], w_out_ref[...], preferred_element_type=jnp.float32)
              + b_out_ref[...])                                         # (B, tile_v)
    logits_ref[...] = logits                    # per-tile pipelined writeback

    tile_max = jnp.max(logits, axis=1, keepdims=True)
    m_old = m_scr[...]
    l_old = l_scr[...]
    m_new = jnp.maximum(m_old, tile_max)
    l_new = (l_old * jnp.exp(m_old - m_new)
             + jnp.sum(jnp.exp(logits - m_new), axis=1, keepdims=True))
    m_scr[...] = m_new
    l_scr[...] = l_new

    @pl.when(v == nv - 1)
    def _():
        lse_ref[...] = m_scr[...] + jnp.log(l_scr[...])


def make_params(key, vocab, embed_dim, hidden, seq_length):
    """Deterministic synthetic parameters in PyTorch (out_features, in_features) layout."""
    enc_dim = 2 * hidden
    ks = iter(jax.random.split(key, 16))

    def linear(out_dim, in_dim):
        bound = 1.0 / jnp.sqrt(jnp.float32(in_dim))
        w = jax.random.uniform(next(ks), (out_dim, in_dim), jnp.float32, -bound, bound)
        b = jax.random.uniform(next(ks), (out_dim,), jnp.float32, -bound, bound)
        return w, b

    embedding = 0.1 * jax.random.normal(next(ks), (vocab, embed_dim), jnp.float32)
    w_attn, b_attn = linear(seq_length, hidden + embed_dim)
    w_awi, b_awi = linear(embed_dim, embed_dim + enc_dim)
    # LSTM layer 0
    w_ih0, b_ih0 = linear(4 * hidden, embed_dim)
    w_hh0 = jnp.concatenate([jnp.eye(hidden, dtype=jnp.float32)] * 4, axis=0)
    b_hh0 = jax.random.uniform(next(ks), (4 * hidden,), jnp.float32,
                               -1.0 / jnp.sqrt(hidden), 1.0 / jnp.sqrt(hidden))
    # LSTM layer 1
    w_ih1, b_ih1 = linear(4 * hidden, hidden)
    w_hh1 = jnp.concatenate([jnp.eye(hidden, dtype=jnp.float32)] * 4, axis=0)
    b_hh1 = jax.random.uniform(next(ks), (4 * hidden,), jnp.float32,
                               -1.0 / jnp.sqrt(hidden), 1.0 / jnp.sqrt(hidden))
    w_out, b_out = linear(vocab, hidden)

    return dict(
        embedding=embedding,
        w_attn=w_attn, b_attn=b_attn,
        w_awi=w_awi, b_awi=b_awi,
        w_ih0=w_ih0, w_hh0=w_hh0, b_ih0=b_ih0, b_hh0=b_hh0,
        w_ih1=w_ih1, w_hh1=w_hh1, b_ih1=b_ih1, b_hh1=b_hh1,
        w_out=w_out, b_out=b_out,
    )


def prepare_kernel_params(params, tile_v=2048):
    """One-time (outside the decode loop) transposes / splits / bias folds / dtype casts
    / vocab padding so the per-token forward launches the kernel with zero HBM-side
    relayout work.  tile_v: lane width of the head tiles (multiple of 128).  Tune per
    generation: ~1024 on v5e/v7x for f32, 2048 with bf16 w_out, up to 4096 on v6e."""
    H = params["w_hh0"].shape[1]
    E = params["w_ih0"].shape[1]
    V = params["w_out"].shape[0]
    row = lambda b: jnp.asarray(b, jnp.float32).reshape(1, -1)

    # Vocab tiling: tile_v a multiple of 128, V padded up to a whole number of tiles.
    tile_v = max(128, (min(tile_v, _round_up(V, 128)) // 128) * 128)
    v_pad = _round_up(V, tile_v)

    # bf16 head weights: halves the dominant HBM stream and gives single-pass MXU matmuls.
    w_out_t = jnp.pad(params["w_out"].T.astype(jnp.bfloat16), ((0, 0), (0, v_pad - V)))
    # Padded vocab columns get a huge negative bias -> excluded from max / logsumexp.
    b_out = jnp.pad(row(params["b_out"]), ((0, 0), (0, v_pad - V)),
                    constant_values=-1e30)

    w_attn_t = params["w_attn"].T          # (H+E, S)
    w_awi_t = params["w_awi"].T            # (E+2H, E)
    return dict(
        embedding=params["embedding"],
        w_attn_h=w_attn_t[:H], w_attn_e=w_attn_t[H:], b_attn=row(params["b_attn"]),
        w_awi_e=w_awi_t[:E], w_awi_a=w_awi_t[E:], b_awi=row(params["b_awi"]),
        w_ih0=params["w_ih0"].T, w_hh0=params["w_hh0"].T,
        b0=row(params["b_ih0"] + params["b_hh0"]),
        w_ih1=params["w_ih1"].T, w_hh1=params["w_hh1"].T,
        b1=row(params["b_ih1"] + params["b_hh1"]),
        w_out=w_out_t, b_out=b_out,
        tile_v=tile_v, vocab=V,
    )


def attn_decoder_forward(kparams, input_ids, hidden, encoder_output, *, use_buffered=True):
    """input_ids: (1, B) int32; hidden = (h, c), each (2, B, H); encoder_output (B, S, 2H).
       Returns (log_probs (B, V), (h', c'), attn_weights (B, 1, S))."""
    h, c = hidden
    B = input_ids.shape[1]
    H = h.shape[2]
    S = encoder_output.shape[1]
    E = kparams["embedding"].shape[1]
    V = kparams["vocab"]
    tile_v = kparams["tile_v"]
    v_pad = kparams["w_out"].shape[1]
    num_v_tiles = v_pad // tile_v

    # Embedding lookup (gather) stays in plain JAX.
    emb = kparams["embedding"][input_ids[0]].astype(jnp.float32)        # (B, E)
    # Packed LSTM state: one lane-dense (B, 4H) slab, aliased in place with the output.
    state = jnp.concatenate([h[0], h[1], c[0], c[1]], axis=1).astype(jnp.float32)
    enc = encoder_output.astype(jnp.float32)

    args = (
        emb, state, enc,
        kparams["w_attn_h"], kparams["w_attn_e"], kparams["b_attn"],
        kparams["w_awi_e"], kparams["w_awi_a"], kparams["b_awi"],
        kparams["w_ih0"], kparams["w_hh0"], kparams["b0"],
        kparams["w_ih1"], kparams["w_hh1"], kparams["b1"],
        kparams["w_out"], kparams["b_out"],
    )

    # Constant-index-map blocks: fetched once, single-buffered (Buffered(1)) to avoid
    # the default 2x VMEM footprint of the auto-pipeline.
    const_shapes = [
        (B, E), (B, 4 * H), (B, S, 2 * H),
        (H, S), (E, S), (1, S),
        (E, E), (2 * H, E), (1, E),
        (E, 4 * H), (H, 4 * H), (1, 4 * H),
        (H, 4 * H), (H, 4 * H), (1, 4 * H),
    ]

    def const_spec(shape):
        idx = lambda v, _n=len(shape): (0,) * _n
        if use_buffered:
            return pl.BlockSpec(shape, idx, pipeline_mode=pl.Buffered(1))
        return pl.BlockSpec(shape, idx)

    in_specs = [const_spec(s) for s in const_shapes] + [
        pl.BlockSpec((H, tile_v), lambda v: (0, v)),   # w_out: tiled, double-buffered
        pl.BlockSpec((1, tile_v), lambda v: (0, v)),   # b_out: tiled, double-buffered
    ]

    out_shape = (
        jax.ShapeDtypeStruct((B, v_pad), jnp.float32),  # unnormalized logits (tiled)
        jax.ShapeDtypeStruct((B, 4 * H), jnp.float32),  # packed new state [h0'|h1'|c0'|c1']
        jax.ShapeDtypeStruct((B, S), jnp.float32),      # attention weights
        jax.ShapeDtypeStruct((B, 1), jnp.float32),      # streamed logsumexp
    )
    out_specs = (
        pl.BlockSpec((B, tile_v), lambda v: (0, v)),    # per-tile pipelined writeback
        pl.BlockSpec((B, 4 * H), lambda v: (0, 0)),
        pl.BlockSpec((B, S), lambda v: (0, 0)),
        pl.BlockSpec((B, 1), lambda v: (0, 0)),
    )

    scratch_shapes = [
        pltpu.VMEM((B, H), jnp.bfloat16),  # h1' in bf16 for the bf16 head matmul
        pltpu.VMEM((B, 1), jnp.float32),   # running max
        pltpu.VMEM((B, 1), jnp.float32),   # running sum-exp
    ]

    # Explicit scoped-VMEM budget from the actual block footprint (+ headroom).
    const_bufs = 1 if use_buffered else 2
    vmem_needed = const_bufs * sum(_vmem_block_bytes(s, jnp.float32) for s in const_shapes)
    vmem_needed += 2 * (_vmem_block_bytes((H, tile_v), jnp.bfloat16)
                        + _vmem_block_bytes((1, tile_v), jnp.float32))
    vmem_needed += 2 * (_vmem_block_bytes((B, tile_v), jnp.float32)
                        + _vmem_block_bytes((B, 4 * H), jnp.float32)
                        + _vmem_block_bytes((B, S), jnp.float32)
                        + _vmem_block_bytes((B, 1), jnp.float32))
    vmem_needed += (_vmem_block_bytes((B, H), jnp.bfloat16)
                    + 2 * _vmem_block_bytes((B, 1), jnp.float32))
    vmem_limit = min(max(int(vmem_needed * 1.5) + (4 << 20), 32 << 20), 112 << 20)

    flops = 2 * B * (S * (H + E)            # attention logits
                     + S * 2 * H            # attention-weighted encoder sum
                     + E * (E + 2 * H)      # attn_with_input
                     + 4 * H * (E + H)      # LSTM layer 0
                     + 4 * H * (H + H)      # LSTM layer 1
                     + H * v_pad)           # vocab projection
    transcendentals = B * (2 * S + 10 * H + 2 * v_pad)
    bytes_accessed = (4 * sum(math.prod(s) for s in const_shapes)
                      + 2 * H * v_pad + 4 * v_pad                      # bf16 w_out, f32 b_out
                      + 4 * (B * v_pad + B * 4 * H + B * S + B))

    outs = pl.pallas_call(
        attn_decoder_kernel,
        out_shape=out_shape,
        grid_spec=pltpu.PrefetchScalarGridSpec(
            num_scalar_prefetch=0,
            grid=(num_v_tiles,),
            in_specs=in_specs,
            out_specs=out_specs,
            scratch_shapes=scratch_shapes,
        ),
        input_output_aliases={1: 1},                    # packed state updated in place
        compiler_params=pltpu.CompilerParams(
            dimension_semantics=("arbitrary",),         # running logsumexp over V tiles
            vmem_limit_bytes=int(vmem_limit)),
        cost_estimate=pl.CostEstimate(
            flops=int(flops),
            transcendentals=int(transcendentals),
            bytes_accessed=int(bytes_accessed)),
    )(*args)

    logits_pad, state_new, attn_w, lse = outs
    # Cheap JAX epilogue: slice off vocab padding and apply the log-softmax normalizer.
    logp = logits_pad[:, :V] - lse
    h_new = jnp.stack([state_new[:, 0:H], state_new[:, H:2 * H]], axis=0)
    c_new = jnp.stack([state_new[:, 2 * H:3 * H], state_new[:, 3 * H:4 * H]], axis=0)
    return logp, (h_new, c_new), attn_w[:, None, :]


def _reference_forward(params, input_ids, hidden, encoder_output):
    """Pure-JAX f32 reference mirroring the PyTorch forward (eval mode)."""
    h, c = hidden
    H = h.shape[2]
    emb = params["embedding"][input_ids[0]]
    cat1 = jnp.concatenate([h[1], emb], axis=1)
    attn_w = jax.nn.softmax(cat1 @ params["w_attn"].T + params["b_attn"], axis=1)
    attn_applied = jnp.einsum("bs,bsh->bh", attn_w, encoder_output)
    cat2 = jnp.concatenate([emb, attn_applied], axis=1)
    lstm_in = jax.nn.relu(cat2 @ params["w_awi"].T + params["b_awi"])

    def cell(x, hh, cc, w_ih, w_hh, b_ih, b_hh):
        g = x @ w_ih.T + b_ih + hh @ w_hh.T + b_hh
        i, f, gg, o = (jax.nn.sigmoid(g[:, :H]), jax.nn.sigmoid(g[:, H:2 * H]),
                       jnp.tanh(g[:, 2 * H:3 * H]), jax.nn.sigmoid(g[:, 3 * H:]))
        cn = f * cc + i * gg
        return o * jnp.tanh(cn), cn

    h0n, c0n = cell(lstm_in, h[0], c[0], params["w_ih0"], params["w_hh0"],
                    params["b_ih0"], params["b_hh0"])
    h1n, c1n = cell(h0n, h[1], c[1], params["w_ih1"], params["w_hh1"],
                    params["b_ih1"], params["b_hh1"])
    logits = h1n @ params["w_out"].T + params["b_out"]
    logp = jax.nn.log_softmax(logits, axis=1)
    return logp, (jnp.stack([h0n, h1n]), jnp.stack([c0n, c1n])), attn_w[:, None, :]


if __name__ == "__main__":
    key = jax.random.PRNGKey(0)
    # V=250 is deliberately NOT a multiple of 128 -> exercises the vocab-padding path.
    B, E, H, S, V = 2, 32, 32, 8, 250        # batch, embed, hidden, seq_length, vocab
    pkey, ikey, hkey, ckey, ekey = jax.random.split(key, 5)

    params = make_params(pkey, V, E, H, S)
    # tile_v=128 -> 2 vocab tiles (second tile has 6 padded columns).
    kparams = prepare_kernel_params(params, tile_v=128)

    input_ids = jax.random.randint(ikey, (1, B), 0, V)               # (1, B) token ids
    h = 0.1 * jax.random.normal(hkey, (2, B, H), jnp.float32)
    c = 0.1 * jax.random.normal(ckey, (2, B, H), jnp.float32)
    encoder_output = 0.1 * jax.random.normal(ekey, (B, S, 2 * H), jnp.float32)

    try:
        outs = attn_decoder_forward(kparams, input_ids, (h, c), encoder_output,
                                    use_buffered=True)
        jax.block_until_ready(outs)
    except Exception:
        # This jax build does not accept pipeline_mode=pl.Buffered on BlockSpec;
        # retry with default (double-buffered) specs — everything else is identical.
        outs = attn_decoder_forward(kparams, input_ids, (h, c), encoder_output,
                                    use_buffered=False)
        jax.block_until_ready(outs)
    logp, (hn, cn), attn_w = outs

    # Correctness check against a pure-JAX f32 reference (tolerances account for the
    # bf16 head weights and the approximate EUP reciprocal in the attention softmax).
    rlogp, (rhn, rcn), rattn = _reference_forward(params, input_ids, (h, c), encoder_output)
    assert jnp.allclose(attn_w, rattn, atol=5e-3), "attention weights mismatch"
    assert jnp.allclose(hn, rhn, atol=5e-3), "hidden state mismatch"
    assert jnp.allclose(cn, rcn, atol=5e-3), "cell state mismatch"
    assert jnp.allclose(logp, rlogp, atol=2e-2), "log-prob mismatch"
    # Exact log-softmax normalization check (independent of bf16 / approx reciprocal).
    assert jnp.allclose(jnp.log(jnp.sum(jnp.exp(logp), axis=1)), 0.0, atol=1e-4), \
        "log-softmax not normalized"

    print("KERNEL_OK")
</pallas_src>

<mosaic_0001>
module attributes {stable_mosaic.version = 11 : i64} {
  func.func @attn_decoder_kernel(%arg0: i32, %arg1: memref<2x32xf32, #tpu.memory_space<vmem>>, %arg2: memref<2x128xf32, #tpu.memory_space<vmem>>, %arg3: memref<2x8x64xf32, #tpu.memory_space<vmem>>, %arg4: memref<32x8xf32, #tpu.memory_space<vmem>>, %arg5: memref<32x8xf32, #tpu.memory_space<vmem>>, %arg6: memref<1x8xf32, #tpu.memory_space<vmem>>, %arg7: memref<32x32xf32, #tpu.memory_space<vmem>>, %arg8: memref<64x32xf32, #tpu.memory_space<vmem>>, %arg9: memref<1x32xf32, #tpu.memory_space<vmem>>, %arg10: memref<32x128xf32, #tpu.memory_space<vmem>>, %arg11: memref<32x128xf32, #tpu.memory_space<vmem>>, %arg12: memref<1x128xf32, #tpu.memory_space<vmem>>, %arg13: memref<32x128xf32, #tpu.memory_space<vmem>>, %arg14: memref<32x128xf32, #tpu.memory_space<vmem>>, %arg15: memref<1x128xf32, #tpu.memory_space<vmem>>, %arg16: memref<32x128xbf16, #tpu.memory_space<vmem>>, %arg17: memref<1x128xf32, #tpu.memory_space<vmem>>, %arg18: memref<2x128xf32, #tpu.memory_space<vmem>>, %arg19: memref<2x128xf32, #tpu.memory_space<vmem>>, %arg20: memref<2x8xf32, #tpu.memory_space<vmem>>, %arg21: memref<2x1xf32, #tpu.memory_space<vmem>>, %arg22: memref<2x32xbf16, #tpu.memory_space<vmem>>, %arg23: memref<2x1xf32, #tpu.memory_space<vmem>>, %arg24: memref<2x1xf32, #tpu.memory_space<vmem>>) attributes {dimension_semantics = [#tpu.dimension_semantics<arbitrary>], iteration_bounds = array<i64: 2>, scalar_prefetch = 0 : i64, scratch_operands = 3 : i64, tpu.core_type = #tpu.core_type<tc>, window_params = [{pipeline_mode = #tpu.pipeline_mode<synchronous>, transform_indices = @transform_0, window_bounds = array<i64: 2, 32>}, {pipeline_mode = #tpu.pipeline_mode<synchronous>, transform_indices = @transform_1, window_bounds = array<i64: 2, 128>}, {pipeline_mode = #tpu.pipeline_mode<synchronous>, transform_indices = @transform_2, window_bounds = array<i64: 2, 8, 64>}, {pipeline_mode = #tpu.pipeline_mode<synchronous>, transform_indices = @transform_3, window_bounds = array<i64: 32, 8>}, {pipeline_mode = #tpu.pipeline_mode<synchronous>, transform_indices = @transform_4, window_bounds = array<i64: 32, 8>}, {pipeline_mode = #tpu.pipeline_mode<synchronous>, transform_indices = @transform_5, window_bounds = array<i64: 1, 8>}, {pipeline_mode = #tpu.pipeline_mode<synchronous>, transform_indices = @transform_6, window_bounds = array<i64: 32, 32>}, {pipeline_mode = #tpu.pipeline_mode<synchronous>, transform_indices = @transform_7, window_bounds = array<i64: 64, 32>}, {pipeline_mode = #tpu.pipeline_mode<synchronous>, transform_indices = @transform_8, window_bounds = array<i64: 1, 32>}, {pipeline_mode = #tpu.pipeline_mode<synchronous>, transform_indices = @transform_9, window_bounds = array<i64: 32, 128>}, {pipeline_mode = #tpu.pipeline_mode<synchronous>, transform_indices = @transform_10, window_bounds = array<i64: 32, 128>}, {pipeline_mode = #tpu.pipeline_mode<synchronous>, transform_indices = @transform_11, window_bounds = array<i64: 1, 128>}, {pipeline_mode = #tpu.pipeline_mode<synchronous>, transform_indices = @transform_12, window_bounds = array<i64: 32, 128>}, {pipeline_mode = #tpu.pipeline_mode<synchronous>, transform_indices = @transform_13, window_bounds = array<i64: 32, 128>}, {pipeline_mode = #tpu.pipeline_mode<synchronous>, transform_indices = @transform_14, window_bounds = array<i64: 1, 128>}, {transform_indices = @transform_15, window_bounds = array<i64: 32, 128>}, {transform_indices = @transform_16, window_bounds = array<i64: 1, 128>}, {transform_indices = @transform_17, window_bounds = array<i64: 2, 128>}, {pipeline_mode = #tpu.pipeline_mode<synchronous>, transform_indices = @transform_18, window_bounds = array<i64: 2, 128>}, {pipeline_mode = #tpu.pipeline_mode<synchronous>, transform_indices = @transform_19, window_bounds = array<i64: 2, 8>}, {pipeline_mode = #tpu.pipeline_mode<synchronous>, transform_indices = @transform_20, window_bounds = array<i64: 2, 1>}]} {
    %c0_i32 = arith.constant 0 : i32
    %0 = arith.cmpi eq, %arg0, %c0_i32 : i32
    %1 = arith.extui %0 : i1 to i32
    %c0_i32_0 = arith.constant 0 : i32
    %2 = arith.cmpi ne, %1, %c0_i32_0 : i32
    scf.if %2 {
      %c0_19 = arith.constant 0 : index
      %c0_20 = arith.constant 0 : index
      %29 = vector.load %arg1[%c0_19, %c0_20] : memref<2x32xf32, #tpu.memory_space<vmem>>, vector<2x32xf32>
      %c0_21 = arith.constant 0 : index
      %c0_22 = arith.constant 0 : index
      %30 = vector.load %arg2[%c0_21, %c0_22] : memref<2x128xf32, #tpu.memory_space<vmem>>, vector<2x128xf32>
      %31 = vector.extract_strided_slice %30 {offsets = [0, 0], sizes = [2, 32], strides = [1, 1]} : vector<2x128xf32> to vector<2x32xf32>
      %32 = vector.extract_strided_slice %30 {offsets = [0, 32], sizes = [2, 32], strides = [1, 1]} : vector<2x128xf32> to vector<2x32xf32>
      %33 = vector.extract_strided_slice %30 {offsets = [0, 64], sizes = [2, 32], strides = [1, 1]} : vector<2x128xf32> to vector<2x32xf32>
      %34 = vector.extract_strided_slice %30 {offsets = [0, 96], sizes = [2, 32], strides = [1, 1]} : vector<2x128xf32> to vector<2x32xf32>
      %c0_23 = arith.constant 0 : index
      %c0_24 = arith.constant 0 : index
      %35 = vector.load %arg4[%c0_23, %c0_24] : memref<32x8xf32, #tpu.memory_space<vmem>>, vector<32x8xf32>
      %cst_25 = arith.constant dense<0.000000e+00> : vector<2x8xf32>
      %36 = tpu.matmul %32, %35, %cst_25 {dimension_numbers = #tpu.dot_dimension_numbers<[1], [0], [0], [1], [0, 0, 1, 1], [], []>} : vector<2x32xf32>, vector<32x8xf32>, vector<2x8xf32> -> vector<2x8xf32>
      %c0_26 = arith.constant 0 : index
      %c0_27 = arith.constant 0 : index
      %37 = vector.load %arg5[%c0_26, %c0_27] : memref<32x8xf32, #tpu.memory_space<vmem>>, vector<32x8xf32>
      %cst_28 = arith.constant dense<0.000000e+00> : vector<2x8xf32>
      %38 = tpu.matmul %29, %37, %cst_28 {dimension_numbers = #tpu.dot_dimension_numbers<[1], [0], [0], [1], [0, 0, 1, 1], [], []>} : vector<2x32xf32>, vector<32x8xf32>, vector<2x8xf32> -> vector<2x8xf32>
      %39 = arith.addf %36, %38 : vector<2x8xf32>
      %c0_29 = arith.constant 0 : index
      %c0_30 = arith.constant 0 : index
      %40 = vector.load %arg6[%c0_29, %c0_30] : memref<1x8xf32, #tpu.memory_space<vmem>>, vector<1x8xf32>
      %41 = vector.broadcast %40 : vector<1x8xf32> to vector<2x8xf32>
      %42 = arith.addf %39, %41 : vector<2x8xf32>
      %cst_31 = arith.constant dense<0xFF800000> : vector<2xf32>
      %43 = vector.multi_reduction <maximumf>, %42, %cst_31 [1] : vector<2x8xf32> to vector<2xf32>
      %44 = vector.shape_cast %43 : vector<2xf32> to vector<2x1xf32>
      %45 = vector.broadcast %44 : vector<2x1xf32> to vector<2x8xf32>
      %46 = arith.subf %42, %45 : vector<2x8xf32>
      %47 = math.exp %46 : vector<2x8xf32>
      %cst_32 = arith.constant dense<0.000000e+00> : vector<2xf32>
      %48 = vector.multi_reduction <add>, %47, %cst_32 [1] : vector<2x8xf32> to vector<2xf32>
      %49 = vector.shape_cast %48 : vector<2xf32> to vector<2x1xf32>
      %50 = tpu.reciprocal %49 {approx = true} : vector<2x1xf32> -> vector<2x1xf32>
      %51 = vector.broadcast %50 : vector<2x1xf32> to vector<2x8xf32>
      %52 = arith.mulf %47, %51 : vector<2x8xf32>
      %c0_33 = arith.constant 0 : index
      %c0_34 = arith.constant 0 : index
      %53 = vector.load %arg20[%c0_33, %c0_34] : memref<2x8xf32, #tpu.memory_space<vmem>>, vector<2x8xf32>
      tpu.vector_store %arg20[%c0_33, %c0_34], %52 {strides = array<i32>} : memref<2x8xf32, #tpu.memory_space<vmem>>, vector<2x8xf32>,
      %54 = vector.shape_cast %52 : vector<2x8xf32> to vector<2x8x1xf32>
      %c0_35 = arith.constant 0 : index
      %c0_36 = arith.constant 0 : index
      %c0_37 = arith.constant 0 : index
      %55 = vector.load %arg3[%c0_35, %c0_36, %c0_37] : memref<2x8x64xf32, #tpu.memory_space<vmem>>, vector<2x8x64xf32>
      %56 = vector.broadcast %54 : vector<2x8x1xf32> to vector<2x8x64xf32>
      %57 = arith.mulf %56, %55 : vector<2x8x64xf32>
      %cst_38 = arith.constant dense<0.000000e+00> : vector<2x64xf32>
      %58 = vector.multi_reduction <add>, %57, %cst_38 [1] : vector<2x8x64xf32> to vector<2x64xf32>
      %c0_39 = arith.constant 0 : index
      %c0_40 = arith.constant 0 : index
      %59 = vector.load %arg7[%c0_39, %c0_40] : memref<32x32xf32, #tpu.memory_space<vmem>>, vector<32x32xf32>
      %cst_41 = arith.constant dense<0.000000e+00> : vector<2x32xf32>
      %60 = tpu.matmul %29, %59, %cst_41 {dimension_numbers = #tpu.dot_dimension_numbers<[1], [0], [0], [1], [0, 0, 1, 1], [], []>} : vector<2x32xf32>, vector<32x32xf32>, vector<2x32xf32> -> vector<2x32xf32>
      %c0_42 = arith.constant 0 : index
      %c0_43 = arith.constant 0 : index
      %61 = vector.load %arg8[%c0_42, %c0_43] : memref<64x32xf32, #tpu.memory_space<vmem>>, vector<64x32xf32>
      %cst_44 = arith.constant dense<0.000000e+00> : vector<2x32xf32>
      %62 = tpu.matmul %58, %61, %cst_44 {dimension_numbers = #tpu.dot_dimension_numbers<[1], [0], [0], [1], [0, 0, 1, 1], [], []>} : vector<2x64xf32>, vector<64x32xf32>, vector<2x32xf32> -> vector<2x32xf32>
      %63 = arith.addf %60, %62 : vector<2x32xf32>
      %c0_45 = arith.constant 0 : index
      %c0_46 = arith.constant 0 : index
      %64 = vector.load %arg9[%c0_45, %c0_46] : memref<1x32xf32, #tpu.memory_space<vmem>>, vector<1x32xf32>
      %65 = vector.broadcast %64 : vector<1x32xf32> to vector<2x32xf32>
      %66 = arith.addf %63, %65 : vector<2x32xf32>
      %cst_47 = arith.constant 0.000000e+00 : f32
      %67 = vector.broadcast %cst_47 : f32 to vector<2x32xf32>
      %68 = arith.maximumf %66, %67 : vector<2x32xf32>
      %c0_48 = arith.constant 0 : index
      %c0_49 = arith.constant 0 : index
      %69 = vector.load %arg10[%c0_48, %c0_49] : memref<32x128xf32, #tpu.memory_space<vmem>>, vector<32x128xf32>
      %c0_50 = arith.constant 0 : index
      %c0_51 = arith.constant 0 : index
      %70 = vector.load %arg11[%c0_50, %c0_51] : memref<32x128xf32, #tpu.memory_space<vmem>>, vector<32x128xf32>
      %c0_52 = arith.constant 0 : index
      %c0_53 = arith.constant 0 : index
      %71 = vector.load %arg12[%c0_52, %c0_53] : memref<1x128xf32, #tpu.memory_space<vmem>>, vector<1x128xf32>
      %cst_54 = arith.constant dense<0.000000e+00> : vector<2x128xf32>
      %72 = tpu.matmul %68, %69, %cst_54 {dimension_numbers = #tpu.dot_dimension_numbers<[1], [0], [0], [1], [0, 0, 1, 1], [], []>} : vector<2x32xf32>, vector<32x128xf32>, vector<2x128xf32> -> vector<2x128xf32>
      %cst_55 = arith.constant dense<0.000000e+00> : vector<2x128xf32>
      %73 = tpu.matmul %31, %70, %cst_55 {dimension_numbers = #tpu.dot_dimension_numbers<[1], [0], [0], [1], [0, 0, 1, 1], [], []>} : vector<2x32xf32>, vector<32x128xf32>, vector<2x128xf32> -> vector<2x128xf32>
      %74 = arith.addf %72, %73 : vector<2x128xf32>
      %75 = vector.broadcast %71 : vector<1x128xf32> to vector<2x128xf32>
      %76 = arith.addf %74, %75 : vector<2x128xf32>
      %77 = vector.extract_strided_slice %76 {offsets = [0, 0], sizes = [2, 32], strides = [1, 1]} : vector<2x128xf32> to vector<2x32xf32>
      %78 = arith.negf %77 : vector<2x32xf32>
      %79 = math.exp %78 : vector<2x32xf32>
      %cst_56 = arith.constant 1.000000e+00 : f32
      %80 = vector.broadcast %cst_56 : f32 to vector<2x32xf32>
      %81 = arith.addf %80, %79 : vector<2x32xf32>
      %82 = arith.divf %80, %81 : vector<2x32xf32>
      %83 = vector.extract_strided_slice %76 {offsets = [0, 32], sizes = [2, 32], strides = [1, 1]} : vector<2x128xf32> to vector<2x32xf32>
      %84 = arith.negf %83 : vector<2x32xf32>
      %85 = math.exp %84 : vector<2x32xf32>
      %cst_57 = arith.constant 1.000000e+00 : f32
      %86 = vector.broadcast %cst_57 : f32 to vector<2x32xf32>
      %87 = arith.addf %86, %85 : vector<2x32xf32>
      %88 = arith.divf %86, %87 : vector<2x32xf32>
      %89 = vector.extract_strided_slice %76 {offsets = [0, 64], sizes = [2, 32], strides = [1, 1]} : vector<2x128xf32> to vector<2x32xf32>
      %90 = math.tanh %89 : vector<2x32xf32>
      %91 = vector.extract_strided_slice %76 {offsets = [0, 96], sizes = [2, 32], strides = [1, 1]} : vector<2x128xf32> to vector<2x32xf32>
      %92 = arith.negf %91 : vector<2x32xf32>
      %93 = math.exp %92 : vector<2x32xf32>
      %cst_58 = arith.constant 1.000000e+00 : f32
      %94 = vector.broadcast %cst_58 : f32 to vector<2x32xf32>
      %95 = arith.addf %94, %93 : vector<2x32xf32>
      %96 = arith.divf %94, %95 : vector<2x32xf32>
      %97 = arith.mulf %88, %33 : vector<2x32xf32>
      %98 = arith.mulf %82, %90 : vector<2x32xf32>
      %99 = arith.addf %97, %98 : vector<2x32xf32>
      %100 = math.tanh %99 : vector<2x32xf32>
      %101 = arith.mulf %96, %100 : vector<2x32xf32>
      %c0_59 = arith.constant 0 : index
      %c0_60 = arith.constant 0 : index
      %102 = vector.load %arg13[%c0_59, %c0_60] : memref<32x128xf32, #tpu.memory_space<vmem>>, vector<32x128xf32>
      %c0_61 = arith.constant 0 : index
      %c0_62 = arith.constant 0 : index
      %103 = vector.load %arg14[%c0_61, %c0_62] : memref<32x128xf32, #tpu.memory_space<vmem>>, vector<32x128xf32>
      %c0_63 = arith.constant 0 : index
      %c0_64 = arith.constant 0 : index
      %104 = vector.load %arg15[%c0_63, %c0_64] : memref<1x128xf32, #tpu.memory_space<vmem>>, vector<1x128xf32>
      %cst_65 = arith.constant dense<0.000000e+00> : vector<2x128xf32>
      %105 = tpu.matmul %101, %102, %cst_65 {dimension_numbers = #tpu.dot_dimension_numbers<[1], [0], [0], [1], [0, 0, 1, 1], [], []>} : vector<2x32xf32>, vector<32x128xf32>, vector<2x128xf32> -> vector<2x128xf32>
      %cst_66 = arith.constant dense<0.000000e+00> : vector<2x128xf32>
      %106 = tpu.matmul %32, %103, %cst_66 {dimension_numbers = #tpu.dot_dimension_numbers<[1], [0], [0], [1], [0, 0, 1, 1], [], []>} : vector<2x32xf32>, vector<32x128xf32>, vector<2x128xf32> -> vector<2x128xf32>
      %107 = arith.addf %105, %106 : vector<2x128xf32>
      %108 = vector.broadcast %104 : vector<1x128xf32> to vector<2x128xf32>
      %109 = arith.addf %107, %108 : vector<2x128xf32>
      %110 = vector.extract_strided_slice %109 {offsets = [0, 0], sizes = [2, 32], strides = [1, 1]} : vector<2x128xf32> to vector<2x32xf32>
      %111 = arith.negf %110 : vector<2x32xf32>
      %112 = math.exp %111 : vector<2x32xf32>
      %cst_67 = arith.constant 1.000000e+00 : f32
      %113 = vector.broadcast %cst_67 : f32 to vector<2x32xf32>
      %114 = arith.addf %113, %112 : vector<2x32xf32>
      %115 = arith.divf %113, %114 : vector<2x32xf32>
      %116 = vector.extract_strided_slice %109 {offsets = [0, 32], sizes = [2, 32], strides = [1, 1]} : vector<2x128xf32> to vector<2x32xf32>
      %117 = arith.negf %116 : vector<2x32xf32>
      %118 = math.exp %117 : vector<2x32xf32>
      %cst_68 = arith.constant 1.000000e+00 : f32
      %119 = vector.broadcast %cst_68 : f32 to vector<2x32xf32>
      %120 = arith.addf %119, %118 : vector<2x32xf32>
      %121 = arith.divf %119, %120 : vector<2x32xf32>
      %122 = vector.extract_strided_slice %109 {offsets = [0, 64], sizes = [2, 32], strides = [1, 1]} : vector<2x128xf32> to vector<2x32xf32>
      %123 = math.tanh %122 : vector<2x32xf32>
      %124 = vector.extract_strided_slice %109 {offsets = [0, 96], sizes = [2, 32], strides = [1, 1]} : vector<2x128xf32> to vector<2x32xf32>
      %125 = arith.negf %124 : vector<2x32xf32>
      %126 = math.exp %125 : vector<2x32xf32>
      %cst_69 = arith.constant 1.000000e+00 : f32
      %127 = vector.broadcast %cst_69 : f32 to vector<2x32xf32>
      %128 = arith.addf %127, %126 : vector<2x32xf32>
      %129 = arith.divf %127, %128 : vector<2x32xf32>
      %130 = arith.mulf %121, %34 : vector<2x32xf32>
      %131 = arith.mulf %115, %123 : vector<2x32xf32>
      %132 = arith.addf %130, %131 : vector<2x32xf32>
      %133 = math.tanh %132 : vector<2x32xf32>
      %134 = arith.mulf %129, %133 : vector<2x32xf32>
      %c0_70 = arith.constant 0 : index
      %c0_71 = arith.constant 0 : index
      %135 = vector.load %arg19[%c0_70, %c0_71] : memref<2x128xf32, #tpu.memory_space<vmem>>, vector<2x32xf32>
      tpu.vector_store %arg19[%c0_70, %c0_71], %101 {strides = array<i32>} : memref<2x128xf32, #tpu.memory_space<vmem>>, vector<2x32xf32>,
      %c0_72 = arith.constant 0 : index
      %c32 = arith.constant 32 : index
      %136 = vector.load %arg19[%c0_72, %c32] : memref<2x128xf32, #tpu.memory_space<vmem>>, vector<2x32xf32>
      tpu.vector_store %arg19[%c0_72, %c32], %134 {strides = array<i32>} : memref<2x128xf32, #tpu.memory_space<vmem>>, vector<2x32xf32>,
      %c0_73 = arith.constant 0 : index
      %c64 = arith.constant 64 : index
      %137 = vector.load %arg19[%c0_73, %c64] : memref<2x128xf32, #tpu.memory_space<vmem>>, vector<2x32xf32>
      tpu.vector_store %arg19[%c0_73, %c64], %99 {strides = array<i32>} : memref<2x128xf32, #tpu.memory_space<vmem>>, vector<2x32xf32>,
      %c0_74 = arith.constant 0 : index
      %c96 = arith.constant 96 : index
      %138 = vector.load %arg19[%c0_74, %c96] : memref<2x128xf32, #tpu.memory_space<vmem>>, vector<2x32xf32>
      tpu.vector_store %arg19[%c0_74, %c96], %132 {strides = array<i32>} : memref<2x128xf32, #tpu.memory_space<vmem>>, vector<2x32xf32>,
      %139 = arith.truncf %134 : vector<2x32xf32> to vector<2x32xbf16>
      %c0_75 = arith.constant 0 : index
      %c0_76 = arith.constant 0 : index
      %140 = vector.load %arg22[%c0_75, %c0_76] : memref<2x32xbf16, #tpu.memory_space<vmem>>, vector<2x32xbf16>
      tpu.vector_store %arg22[%c0_75, %c0_76], %139 {strides = array<i32>} : memref<2x32xbf16, #tpu.memory_space<vmem>>, vector<2x32xbf16>,
      %cst_77 = arith.constant 0xFF800000 : f32
      %141 = vector.broadcast %cst_77 : f32 to vector<2x1xf32>
      %c0_78 = arith.constant 0 : index
      %c0_79 = arith.constant 0 : index
      %142 = vector.load %arg23[%c0_78, %c0_79] : memref<2x1xf32, #tpu.memory_space<vmem>>, vector<2x1xf32>
      tpu.vector_store %arg23[%c0_78, %c0_79], %141 {strides = array<i32>} : memref<2x1xf32, #tpu.memory_space<vmem>>, vector<2x1xf32>,
      %cst_80 = arith.constant 0.000000e+00 : f32
      %143 = vector.broadcast %cst_80 : f32 to vector<2x1xf32>
      %c0_81 = arith.constant 0 : index
      %c0_82 = arith.constant 0 : index
      %144 = vector.load %arg24[%c0_81, %c0_82] : memref<2x1xf32, #tpu.memory_space<vmem>>, vector<2x1xf32>
      tpu.vector_store %arg24[%c0_81, %c0_82], %143 {strides = array<i32>} : memref<2x1xf32, #tpu.memory_space<vmem>>, vector<2x1xf32>,
    } else {
    }
    %c0 = arith.constant 0 : index
    %c0_1 = arith.constant 0 : index
    %3 = vector.load %arg22[%c0, %c0_1] : memref<2x32xbf16, #tpu.memory_space<vmem>>, vector<2x32xbf16>
    %c0_2 = arith.constant 0 : index
    %c0_3 = arith.constant 0 : index
    %4 = vector.load %arg16[%c0_2, %c0_3] : memref<32x128xbf16, #tpu.memory_space<vmem>>, vector<32x128xbf16>
    %cst = arith.constant dense<0.000000e+00> : vector<2x128xf32>
    %5 = tpu.matmul %3, %4, %cst {dimension_numbers = #tpu.dot_dimension_numbers<[1], [0], [0], [1], [0, 0, 1, 1], [], []>} : vector<2x32xbf16>, vector<32x128xbf16>, vector<2x128xf32> -> vector<2x128xf32>
    %c0_4 = arith.constant 0 : index
    %c0_5 = arith.constant 0 : index
    %6 = vector.load %arg17[%c0_4, %c0_5] : memref<1x128xf32, #tpu.memory_space<vmem>>, vector<1x128xf32>
    %7 = vector.broadcast %6 : vector<1x128xf32> to vector<2x128xf32>
    %8 = arith.addf %5, %7 : vector<2x128xf32>
    %c0_6 = arith.constant 0 : index
    %c0_7 = arith.constant 0 : index
    %9 = vector.load %arg18[%c0_6, %c0_7] : memref<2x128xf32, #tpu.memory_space<vmem>>, vector<2x128xf32>
    tpu.vector_store %arg18[%c0_6, %c0_7], %8 {strides = array<i32>} : memref<2x128xf32, #tpu.memory_space<vmem>>, vector<2x128xf32>,
    %cst_8 = arith.constant dense<0xFF800000> : vector<2xf32>
    %10 = vector.multi_reduction <maximumf>, %8, %cst_8 [1] : vector<2x128xf32> to vector<2xf32>
    %11 = vector.shape_cast %10 : vector<2xf32> to vector<2x1xf32>
    %c0_9 = arith.constant 0 : index
    %c0_10 = arith.constant 0 : index
    %12 = vector.load %arg23[%c0_9, %c0_10] : memref<2x1xf32, #tpu.memory_space<vmem>>, vector<2x1xf32>
    %c0_11 = arith.constant 0 : index
    %c0_12 = arith.constant 0 : index
    %13 = vector.load %arg24[%c0_11, %c0_12] : memref<2x1xf32, #tpu.memory_space<vmem>>, vector<2x1xf32>
    %14 = arith.maximumf %12, %11 : vector<2x1xf32>
    %15 = arith.subf %12, %14 : vector<2x1xf32>
    %16 = math.exp %15 : vector<2x1xf32>
    %17 = arith.mulf %13, %16 : vector<2x1xf32>
    %18 = vector.broadcast %14 : vector<2x1xf32> to vector<2x128xf32>
    %19 = arith.subf %8, %18 : vector<2x128xf32>
    %20 = math.exp %19 : vector<2x128xf32>
    %cst_13 = arith.constant dense<0.000000e+00> : vector<2xf32>
    %21 = vector.multi_reduction <add>, %20, %cst_13 [1] : vector<2x128xf32> to vector<2xf32>
    %22 = vector.shape_cast %21 : vector<2xf32> to vector<2x1xf32>
    %23 = arith.addf %17, %22 : vector<2x1xf32>
    %c0_14 = arith.constant 0 : index
    %c0_15 = arith.constant 0 : index
    %24 = vector.load %arg23[%c0_14, %c0_15] : memref<2x1xf32, #tpu.memory_space<vmem>>, vector<2x1xf32>
    tpu.vector_store %arg23[%c0_14, %c0_15], %14 {strides = array<i32>} : memref<2x1xf32, #tpu.memory_space<vmem>>, vector<2x1xf32>,
    %c0_16 = arith.constant 0 : index
    %c0_17 = arith.constant 0 : index
    %25 = vector.load %arg24[%c0_16, %c0_17] : memref<2x1xf32, #tpu.memory_space<vmem>>, vector<2x1xf32>
    tpu.vector_store %arg24[%c0_16, %c0_17], %23 {strides = array<i32>} : memref<2x1xf32, #tpu.memory_space<vmem>>, vector<2x1xf32>,
    %c1_i32 = arith.constant 1 : i32
    %26 = arith.cmpi eq, %arg0, %c1_i32 : i32
    %27 = arith.extui %26 : i1 to i32
    %c0_i32_18 = arith.constant 0 : i32
    %28 = arith.cmpi ne, %27, %c0_i32_18 : i32
    scf.if %28 {
      %c0_19 = arith.constant 0 : index
      %c0_20 = arith.constant 0 : index
      %29 = vector.load %arg23[%c0_19, %c0_20] : memref<2x1xf32, #tpu.memory_space<vmem>>, vector<2x1xf32>
      %c0_21 = arith.constant 0 : index
      %c0_22 = arith.constant 0 : index
      %30 = vector.load %arg24[%c0_21, %c0_22] : memref<2x1xf32, #tpu.memory_space<vmem>>, vector<2x1xf32>
      %31 = math.log %30 : vector<2x1xf32>
      %32 = arith.addf %29, %31 : vector<2x1xf32>
      %c0_23 = arith.constant 0 : index
      %c0_24 = arith.constant 0 : index
      %33 = vector.load %arg21[%c0_23, %c0_24] : memref<2x1xf32, #tpu.memory_space<vmem>>, vector<2x1xf32>
      tpu.vector_store %arg21[%c0_23, %c0_24], %32 {strides = array<i32>} : memref<2x1xf32, #tpu.memory_space<vmem>>, vector<2x1xf32>,
    } else {
    }
    return
  }
  func.func @transform_0(%arg0: i32) -> (i32, i32) {
    %c0_i32 = arith.constant 0 : i32
    %c0_i32_0 = arith.constant 0 : i32
    %c0_i32_1 = arith.constant 0 : i32
    return %c0_i32, %c0_i32_0 : i32, i32
  }
  func.func @transform_1(%arg0: i32) -> (i32, i32) {
    %c0_i32 = arith.constant 0 : i32
    %c0_i32_0 = arith.constant 0 : i32
    %c0_i32_1 = arith.constant 0 : i32
    return %c0_i32, %c0_i32_0 : i32, i32
  }
  func.func @transform_2(%arg0: i32) -> (i32, i32, i32) {
    %c0_i32 = arith.constant 0 : i32
    %c0_i32_0 = arith.constant 0 : i32
    %c0_i32_1 = arith.constant 0 : i32
    %c0_i32_2 = arith.constant 0 : i32
    return %c0_i32, %c0_i32_0, %c0_i32_1 : i32, i32, i32
  }
  func.func @transform_3(%arg0: i32) -> (i32, i32) {
    %c0_i32 = arith.constant 0 : i32
    %c0_i32_0 = arith.constant 0 : i32
    %c0_i32_1 = arith.constant 0 : i32
    return %c0_i32, %c0_i32_0 : i32, i32
  }
  func.func @transform_4(%arg0: i32) -> (i32, i32) {
    %c0_i32 = arith.constant 0 : i32
    %c0_i32_0 = arith.constant 0 : i32
    %c0_i32_1 = arith.constant 0 : i32
    return %c0_i32, %c0_i32_0 : i32, i32
  }
  func.func @transform_5(%arg0: i32) -> (i32, i32) {
    %c0_i32 = arith.constant 0 : i32
    %c0_i32_0 = arith.constant 0 : i32
    %c0_i32_1 = arith.constant 0 : i32
    return %c0_i32, %c0_i32_0 : i32, i32
  }
  func.func @transform_6(%arg0: i32) -> (i32, i32) {
    %c0_i32 = arith.constant 0 : i32
    %c0_i32_0 = arith.constant 0 : i32
    %c0_i32_1 = arith.constant 0 : i32
    return %c0_i32, %c0_i32_0 : i32, i32
  }
  func.func @transform_7(%arg0: i32) -> (i32, i32) {
    %c0_i32 = arith.constant 0 : i32
    %c0_i32_0 = arith.constant 0 : i32
    %c0_i32_1 = arith.constant 0 : i32
    return %c0_i32, %c0_i32_0 : i32, i32
  }
  func.func @transform_8(%arg0: i32) -> (i32, i32) {
    %c0_i32 = arith.constant 0 : i32
    %c0_i32_0 = arith.constant 0 : i32
    %c0_i32_1 = arith.constant 0 : i32
    return %c0_i32, %c0_i32_0 : i32, i32
  }
  func.func @transform_9(%arg0: i32) -> (i32, i32) {
    %c0_i32 = arith.constant 0 : i32
    %c0_i32_0 = arith.constant 0 : i32
    %c0_i32_1 = arith.constant 0 : i32
    return %c0_i32, %c0_i32_0 : i32, i32
  }
  func.func @transform_10(%arg0: i32) -> (i32, i32) {
    %c0_i32 = arith.constant 0 : i32
    %c0_i32_0 = arith.constant 0 : i32
    %c0_i32_1 = arith.constant 0 : i32
    return %c0_i32, %c0_i32_0 : i32, i32
  }
  func.func @transform_11(%arg0: i32) -> (i32, i32) {
    %c0_i32 = arith.constant 0 : i32
    %c0_i32_0 = arith.constant 0 : i32
    %c0_i32_1 = arith.constant 0 : i32
    return %c0_i32, %c0_i32_0 : i32, i32
  }
  func.func @transform_12(%arg0: i32) -> (i32, i32) {
    %c0_i32 = arith.constant 0 : i32
    %c0_i32_0 = arith.constant 0 : i32
    %c0_i32_1 = arith.constant 0 : i32
    return %c0_i32, %c0_i32_0 : i32, i32
  }
  func.func @transform_13(%arg0: i32) -> (i32, i32) {
    %c0_i32 = arith.constant 0 : i32
    %c0_i32_0 = arith.constant 0 : i32
    %c0_i32_1 = arith.constant 0 : i32
    return %c0_i32, %c0_i32_0 : i32, i32
  }
  func.func @transform_14(%arg0: i32) -> (i32, i32) {
    %c0_i32 = arith.constant 0 : i32
    %c0_i32_0 = arith.constant 0 : i32
    %c0_i32_1 = arith.constant 0 : i32
    return %c0_i32, %c0_i32_0 : i32, i32
  }
  func.func @transform_15(%arg0: i32) -> (i32, i32) {
    %c0_i32 = arith.constant 0 : i32
    %c0_i32_0 = arith.constant 0 : i32
    return %c0_i32, %arg0 : i32, i32
  }
  func.func @transform_16(%arg0: i32) -> (i32, i32) {
    %c0_i32 = arith.constant 0 : i32
    %c0_i32_0 = arith.constant 0 : i32
    return %c0_i32, %arg0 : i32, i32
  }
  func.func @transform_17(%arg0: i32) -> (i32, i32) {
    %c0_i32 = arith.constant 0 : i32
    %c0_i32_0 = arith.constant 0 : i32
    return %c0_i32, %arg0 : i32, i32
  }
  func.func @transform_18(%arg0: i32) -> (i32, i32) {
    %c0_i32 = arith.constant 0 : i32
    %c0_i32_0 = arith.constant 0 : i32
    %c0_i32_1 = arith.constant 0 : i32
    return %c0_i32, %c0_i32_0 : i32, i32
  }
  func.func @transform_19(%arg0: i32) -> (i32, i32) {
    %c0_i32 = arith.constant 0 : i32
    %c0_i32_0 = arith.constant 0 : i32
    %c0_i32_1 = arith.constant 0 : i32
    return %c0_i32, %c0_i32_0 : i32, i32
  }
  func.func @transform_20(%arg0: i32) -> (i32, i32) {
    %c0_i32 = arith.constant 0 : i32
    %c0_i32_0 = arith.constant 0 : i32
    %c0_i32_1 = arith.constant 0 : i32
    return %c0_i32, %c0_i32_0 : i32, i32
  }
}

module attributes {stable_mosaic.version = 11 : i64} {
  func.func @attn_decoder_kernel(%arg0: i32, %arg1: memref<2x32xf32, #tpu.memory_space<vmem>>, %arg2: memref<2x128xf32, #tpu.memory_space<vmem>>, %arg3: memref<2x8x64xf32, #tpu.memory_space<vmem>>, %arg4: memref<32x8xf32, #tpu.memory_space<vmem>>, %arg5: memref<32x8xf32, #tpu.memory_space<vmem>>, %arg6: memref<1x8xf32, #tpu.memory_space<vmem>>, %arg7: memref<32x32xf32, #tpu.memory_space<vmem>>, %arg8: memref<64x32xf32, #tpu.memory_space<vmem>>, %arg9: memref<1x32xf32, #tpu.memory_space<vmem>>, %arg10: memref<32x128xf32, #tpu.memory_space<vmem>>, %arg11: memref<32x128xf32, #tpu.memory_space<vmem>>, %arg12: memref<1x128xf32, #tpu.memory_space<vmem>>, %arg13: memref<32x128xf32, #tpu.memory_space<vmem>>, %arg14: memref<32x128xf32, #tpu.memory_space<vmem>>, %arg15: memref<1x128xf32, #tpu.memory_space<vmem>>, %arg16: memref<32x128xbf16, #tpu.memory_space<vmem>>, %arg17: memref<1x128xf32, #tpu.memory_space<vmem>>, %arg18: memref<2x128xf32, #tpu.memory_space<vmem>>, %arg19: memref<2x128xf32, #tpu.memory_space<vmem>>, %arg20: memref<2x8xf32, #tpu.memory_space<vmem>>, %arg21: memref<2x1xf32, #tpu.memory_space<vmem>>, %arg22: memref<2x32xbf16, #tpu.memory_space<vmem>>, %arg23: memref<2x1xf32, #tpu.memory_space<vmem>>, %arg24: memref<2x1xf32, #tpu.memory_space<vmem>>) attributes {dimension_semantics = [#tpu.dimension_semantics<arbitrary>], iteration_bounds = array<i64: 2>, scalar_prefetch = 0 : i64, scratch_operands = 3 : i64, tpu.core_type = #tpu.core_type<tc>, window_params = [{pipeline_mode = #tpu.pipeline_mode<synchronous>, transform_indices = @transform_0, window_bounds = array<i64: 2, 32>}, {pipeline_mode = #tpu.pipeline_mode<synchronous>, transform_indices = @transform_1, window_bounds = array<i64: 2, 128>}, {pipeline_mode = #tpu.pipeline_mode<synchronous>, transform_indices = @transform_2, window_bounds = array<i64: 2, 8, 64>}, {pipeline_mode = #tpu.pipeline_mode<synchronous>, transform_indices = @transform_3, window_bounds = array<i64: 32, 8>}, {pipeline_mode = #tpu.pipeline_mode<synchronous>, transform_indices = @transform_4, window_bounds = array<i64: 32, 8>}, {pipeline_mode = #tpu.pipeline_mode<synchronous>, transform_indices = @transform_5, window_bounds = array<i64: 1, 8>}, {pipeline_mode = #tpu.pipeline_mode<synchronous>, transform_indices = @transform_6, window_bounds = array<i64: 32, 32>}, {pipeline_mode = #tpu.pipeline_mode<synchronous>, transform_indices = @transform_7, window_bounds = array<i64: 64, 32>}, {pipeline_mode = #tpu.pipeline_mode<synchronous>, transform_indices = @transform_8, window_bounds = array<i64: 1, 32>}, {pipeline_mode = #tpu.pipeline_mode<synchronous>, transform_indices = @transform_9, window_bounds = array<i64: 32, 128>}, {pipeline_mode = #tpu.pipeline_mode<synchronous>, transform_indices = @transform_10, window_bounds = array<i64: 32, 128>}, {pipeline_mode = #tpu.pipeline_mode<synchronous>, transform_indices = @transform_11, window_bounds = array<i64: 1, 128>}, {pipeline_mode = #tpu.pipeline_mode<synchronous>, transform_indices = @transform_12, window_bounds = array<i64: 32, 128>}, {pipeline_mode = #tpu.pipeline_mode<synchronous>, transform_indices = @transform_13, window_bounds = array<i64: 32, 128>}, {pipeline_mode = #tpu.pipeline_mode<synchronous>, transform_indices = @transform_14, window_bounds = array<i64: 1, 128>}, {transform_indices = @transform_15, window_bounds = array<i64: 32, 128>}, {transform_indices = @transform_16, window_bounds = array<i64: 1, 128>}, {transform_indices = @transform_17, window_bounds = array<i64: 2, 128>}, {pipeline_mode = #tpu.pipeline_mode<synchronous>, transform_indices = @transform_18, window_bounds = array<i64: 2, 128>}, {pipeline_mode = #tpu.pipeline_mode<synchronous>, transform_indices = @transform_19, window_bounds = array<i64: 2, 8>}, {pipeline_mode = #tpu.pipeline_mode<synchronous>, transform_indices = @transform_20, window_bounds = array<i64: 2, 1>}]} {
    %c0_i32 = arith.constant 0 : i32
    %0 = arith.cmpi eq, %arg0, %c0_i32 : i32
    %1 = arith.extui %0 : i1 to i32
    %c0_i32_0 = arith.constant 0 : i32
    %2 = arith.cmpi ne, %1, %c0_i32_0 : i32
    scf.if %2 {
      %c0_19 = arith.constant 0 : index
      %c0_20 = arith.constant 0 : index
      %29 = vector.load %arg1[%c0_19, %c0_20] : memref<2x32xf32, #tpu.memory_space<vmem>>, vector<2x32xf32>
      %c0_21 = arith.constant 0 : index
      %c0_22 = arith.constant 0 : index
      %30 = vector.load %arg2[%c0_21, %c0_22] : memref<2x128xf32, #tpu.memory_space<vmem>>, vector<2x128xf32>
      %31 = vector.extract_strided_slice %30 {offsets = [0, 0], sizes = [2, 32], strides = [1, 1]} : vector<2x128xf32> to vector<2x32xf32>
      %32 = vector.extract_strided_slice %30 {offsets = [0, 32], sizes = [2, 32], strides = [1, 1]} : vector<2x128xf32> to vector<2x32xf32>
      %33 = vector.extract_strided_slice %30 {offsets = [0, 64], sizes = [2, 32], strides = [1, 1]} : vector<2x128xf32> to vector<2x32xf32>
      %34 = vector.extract_strided_slice %30 {offsets = [0, 96], sizes = [2, 32], strides = [1, 1]} : vector<2x128xf32> to vector<2x32xf32>
      %c0_23 = arith.constant 0 : index
      %c0_24 = arith.constant 0 : index
      %35 = vector.load %arg4[%c0_23, %c0_24] : memref<32x8xf32, #tpu.memory_space<vmem>>, vector<32x8xf32>
      %cst_25 = arith.constant dense<0.000000e+00> : vector<2x8xf32>
      %36 = tpu.matmul %32, %35, %cst_25 {dimension_numbers = #tpu.dot_dimension_numbers<[1], [0], [0], [1], [0, 0, 1, 1], [], []>} : vector<2x32xf32>, vector<32x8xf32>, vector<2x8xf32> -> vector<2x8xf32>
      %c0_26 = arith.constant 0 : index
      %c0_27 = arith.constant 0 : index
      %37 = vector.load %arg5[%c0_26, %c0_27] : memref<32x8xf32, #tpu.memory_space<vmem>>, vector<32x8xf32>
      %cst_28 = arith.constant dense<0.000000e+00> : vector<2x8xf32>
      %38 = tpu.matmul %29, %37, %cst_28 {dimension_numbers = #tpu.dot_dimension_numbers<[1], [0], [0], [1], [0, 0, 1, 1], [], []>} : vector<2x32xf32>, vector<32x8xf32>, vector<2x8xf32> -> vector<2x8xf32>
      %39 = arith.addf %36, %38 : vector<2x8xf32>
      %c0_29 = arith.constant 0 : index
      %c0_30 = arith.constant 0 : index
      %40 = vector.load %arg6[%c0_29, %c0_30] : memref<1x8xf32, #tpu.memory_space<vmem>>, vector<1x8xf32>
      %41 = vector.broadcast %40 : vector<1x8xf32> to vector<2x8xf32>
      %42 = arith.addf %39, %41 : vector<2x8xf32>
      %cst_31 = arith.constant dense<0xFF800000> : vector<2xf32>
      %43 = vector.multi_reduction <maximumf>, %42, %cst_31 [1] : vector<2x8xf32> to vector<2xf32>
      %44 = vector.shape_cast %43 : vector<2xf32> to vector<2x1xf32>
      %45 = vector.broadcast %44 : vector<2x1xf32> to vector<2x8xf32>
      %46 = arith.subf %42, %45 : vector<2x8xf32>
      %47 = math.exp %46 : vector<2x8xf32>
      %cst_32 = arith.constant dense<0.000000e+00> : vector<2xf32>
      %48 = vector.multi_reduction <add>, %47, %cst_32 [1] : vector<2x8xf32> to vector<2xf32>
      %49 = vector.shape_cast %48 : vector<2xf32> to vector<2x1xf32>
      %50 = tpu.reciprocal %49 {approx = true} : vector<2x1xf32> -> vector<2x1xf32>
      %51 = vector.broadcast %50 : vector<2x1xf32> to vector<2x8xf32>
      %52 = arith.mulf %47, %51 : vector<2x8xf32>
      %c0_33 = arith.constant 0 : index
      %c0_34 = arith.constant 0 : index
      %53 = vector.load %arg20[%c0_33, %c0_34] : memref<2x8xf32, #tpu.memory_space<vmem>>, vector<2x8xf32>
      tpu.vector_store %arg20[%c0_33, %c0_34], %52 {strides = array<i32>} : memref<2x8xf32, #tpu.memory_space<vmem>>, vector<2x8xf32>,
      %54 = vector.shape_cast %52 : vector<2x8xf32> to vector<2x8x1xf32>
      %c0_35 = arith.constant 0 : index
      %c0_36 = arith.constant 0 : index
      %c0_37 = arith.constant 0 : index
      %55 = vector.load %arg3[%c0_35, %c0_36, %c0_37] : memref<2x8x64xf32, #tpu.memory_space<vmem>>, vector<2x8x64xf32>
      %56 = vector.broadcast %54 : vector<2x8x1xf32> to vector<2x8x64xf32>
      %57 = arith.mulf %56, %55 : vector<2x8x64xf32>
      %cst_38 = arith.constant dense<0.000000e+00> : vector<2x64xf32>
      %58 = vector.multi_reduction <add>, %57, %cst_38 [1] : vector<2x8x64xf32> to vector<2x64xf32>
      %c0_39 = arith.constant 0 : index
      %c0_40 = arith.constant 0 : index
      %59 = vector.load %arg7[%c0_39, %c0_40] : memref<32x32xf32, #tpu.memory_space<vmem>>, vector<32x32xf32>
      %cst_41 = arith.constant dense<0.000000e+00> : vector<2x32xf32>
      %60 = tpu.matmul %29, %59, %cst_41 {dimension_numbers = #tpu.dot_dimension_numbers<[1], [0], [0], [1], [0, 0, 1, 1], [], []>} : vector<2x32xf32>, vector<32x32xf32>, vector<2x32xf32> -> vector<2x32xf32>
      %c0_42 = arith.constant 0 : index
      %c0_43 = arith.constant 0 : index
      %61 = vector.load %arg8[%c0_42, %c0_43] : memref<64x32xf32, #tpu.memory_space<vmem>>, vector<64x32xf32>
      %cst_44 = arith.constant dense<0.000000e+00> : vector<2x32xf32>
      %62 = tpu.matmul %58, %61, %cst_44 {dimension_numbers = #tpu.dot_dimension_numbers<[1], [0], [0], [1], [0, 0, 1, 1], [], []>} : vector<2x64xf32>, vector<64x32xf32>, vector<2x32xf32> -> vector<2x32xf32>
      %63 = arith.addf %60, %62 : vector<2x32xf32>
      %c0_45 = arith.constant 0 : index
      %c0_46 = arith.constant 0 : index
      %64 = vector.load %arg9[%c0_45, %c0_46] : memref<1x32xf32, #tpu.memory_space<vmem>>, vector<1x32xf32>
      %65 = vector.broadcast %64 : vector<1x32xf32> to vector<2x32xf32>
      %66 = arith.addf %63, %65 : vector<2x32xf32>
      %cst_47 = arith.constant 0.000000e+00 : f32
      %67 = vector.broadcast %cst_47 : f32 to vector<2x32xf32>
      %68 = arith.maximumf %66, %67 : vector<2x32xf32>
      %c0_48 = arith.constant 0 : index
      %c0_49 = arith.constant 0 : index
      %69 = vector.load %arg10[%c0_48, %c0_49] : memref<32x128xf32, #tpu.memory_space<vmem>>, vector<32x128xf32>
      %c0_50 = arith.constant 0 : index
      %c0_51 = arith.constant 0 : index
      %70 = vector.load %arg11[%c0_50, %c0_51] : memref<32x128xf32, #tpu.memory_space<vmem>>, vector<32x128xf32>
      %c0_52 = arith.constant 0 : index
      %c0_53 = arith.constant 0 : index
      %71 = vector.load %arg12[%c0_52, %c0_53] : memref<1x128xf32, #tpu.memory_space<vmem>>, vector<1x128xf32>
      %cst_54 = arith.constant dense<0.000000e+00> : vector<2x128xf32>
      %72 = tpu.matmul %68, %69, %cst_54 {dimension_numbers = #tpu.dot_dimension_numbers<[1], [0], [0], [1], [0, 0, 1, 1], [], []>} : vector<2x32xf32>, vector<32x128xf32>, vector<2x128xf32> -> vector<2x128xf32>
      %cst_55 = arith.constant dense<0.000000e+00> : vector<2x128xf32>
      %73 = tpu.matmul %31, %70, %cst_55 {dimension_numbers = #tpu.dot_dimension_numbers<[1], [0], [0], [1], [0, 0, 1, 1], [], []>} : vector<2x32xf32>, vector<32x128xf32>, vector<2x128xf32> -> vector<2x128xf32>
      %74 = arith.addf %72, %73 : vector<2x128xf32>
      %75 = vector.broadcast %71 : vector<1x128xf32> to vector<2x128xf32>
      %76 = arith.addf %74, %75 : vector<2x128xf32>
      %77 = vector.extract_strided_slice %76 {offsets = [0, 0], sizes = [2, 32], strides = [1, 1]} : vector<2x128xf32> to vector<2x32xf32>
      %78 = arith.negf %77 : vector<2x32xf32>
      %79 = math.exp %78 : vector<2x32xf32>
      %cst_56 = arith.constant 1.000000e+00 : f32
      %80 = vector.broadcast %cst_56 : f32 to vector<2x32xf32>
      %81 = arith.addf %80, %79 : vector<2x32xf32>
      %82 = arith.divf %80, %81 : vector<2x32xf32>
      %83 = vector.extract_strided_slice %76 {offsets = [0, 32], sizes = [2, 32], strides = [1, 1]} : vector<2x128xf32> to vector<2x32xf32>
      %84 = arith.negf %83 : vector<2x32xf32>
      %85 = math.exp %84 : vector<2x32xf32>
      %cst_57 = arith.constant 1.000000e+00 : f32
      %86 = vector.broadcast %cst_57 : f32 to vector<2x32xf32>
      %87 = arith.addf %86, %85 : vector<2x32xf32>
      %88 = arith.divf %86, %87 : vector<2x32xf32>
      %89 = vector.extract_strided_slice %76 {offsets = [0, 64], sizes = [2, 32], strides = [1, 1]} : vector<2x128xf32> to vector<2x32xf32>
      %90 = math.tanh %89 : vector<2x32xf32>
      %91 = vector.extract_strided_slice %76 {offsets = [0, 96], sizes = [2, 32], strides = [1, 1]} : vector<2x128xf32> to vector<2x32xf32>
      %92 = arith.negf %91 : vector<2x32xf32>
      %93 = math.exp %92 : vector<2x32xf32>
      %cst_58 = arith.constant 1.000000e+00 : f32
      %94 = vector.broadcast %cst_58 : f32 to vector<2x32xf32>
      %95 = arith.addf %94, %93 : vector<2x32xf32>
      %96 = arith.divf %94, %95 : vector<2x32xf32>
      %97 = arith.mulf %88, %33 : vector<2x32xf32>
      %98 = arith.mulf %82, %90 : vector<2x32xf32>
      %99 = arith.addf %97, %98 : vector<2x32xf32>
      %100 = math.tanh %99 : vector<2x32xf32>
      %101 = arith.mulf %96, %100 : vector<2x32xf32>
      %c0_59 = arith.constant 0 : index
      %c0_60 = arith.constant 0 : index
      %102 = vector.load %arg13[%c0_59, %c0_60] : memref<32x128xf32, #tpu.memory_space<vmem>>, vector<32x128xf32>
      %c0_61 = arith.constant 0 : index
      %c0_62 = arith.constant 0 : index
      %103 = vector.load %arg14[%c0_61, %c0_62] : memref<32x128xf32, #tpu.memory_space<vmem>>, vector<32x128xf32>
      %c0_63 = arith.constant 0 : index
      %c0_64 = arith.constant 0 : index
      %104 = vector.load %arg15[%c0_63, %c0_64] : memref<1x128xf32, #tpu.memory_space<vmem>>, vector<1x128xf32>
      %cst_65 = arith.constant dense<0.000000e+00> : vector<2x128xf32>
      %105 = tpu.matmul %101, %102, %cst_65 {dimension_numbers = #tpu.dot_dimension_numbers<[1], [0], [0], [1], [0, 0, 1, 1], [], []>} : vector<2x32xf32>, vector<32x128xf32>, vector<2x128xf32> -> vector<2x128xf32>
      %cst_66 = arith.constant dense<0.000000e+00> : vector<2x128xf32>
      %106 = tpu.matmul %32, %103, %cst_66 {dimension_numbers = #tpu.dot_dimension_numbers<[1], [0], [0], [1], [0, 0, 1, 1], [], []>} : vector<2x32xf32>, vector<32x128xf32>, vector<2x128xf32> -> vector<2x128xf32>
      %107 = arith.addf %105, %106 : vector<2x128xf32>
      %108 = vector.broadcast %104 : vector<1x128xf32> to vector<2x128xf32>
      %109 = arith.addf %107, %108 : vector<2x128xf32>
      %110 = vector.extract_strided_slice %109 {offsets = [0, 0], sizes = [2, 32], strides = [1, 1]} : vector<2x128xf32> to vector<2x32xf32>
      %111 = arith.negf %110 : vector<2x32xf32>
      %112 = math.exp %111 : vector<2x32xf32>
      %cst_67 = arith.constant 1.000000e+00 : f32
      %113 = vector.broadcast %cst_67 : f32 to vector<2x32xf32>
      %114 = arith.addf %113, %112 : vector<2x32xf32>
      %115 = arith.divf %113, %114 : vector<2x32xf32>
      %116 = vector.extract_strided_slice %109 {offsets = [0, 32], sizes = [2, 32], strides = [1, 1]} : vector<2x128xf32> to vector<2x32xf32>
      %117 = arith.negf %116 : vector<2x32xf32>
      %118 = math.exp %117 : vector<2x32xf32>
      %cst_68 = arith.constant 1.000000e+00 : f32
      %119 = vector.broadcast %cst_68 : f32 to vector<2x32xf32>
      %120 = arith.addf %119, %118 : vector<2x32xf32>
      %121 = arith.divf %119, %120 : vector<2x32xf32>
      %122 = vector.extract_strided_slice %109 {offsets = [0, 64], sizes = [2, 32], strides = [1, 1]} : vector<2x128xf32> to vector<2x32xf32>
      %123 = math.tanh %122 : vector<2x32xf32>
      %124 = vector.extract_strided_slice %109 {offsets = [0, 96], sizes = [2, 32], strides = [1, 1]} : vector<2x128xf32> to vector<2x32xf32>
      %125 = arith.negf %124 : vector<2x32xf32>
      %126 = math.exp %125 : vector<2x32xf32>
      %cst_69 = arith.constant 1.000000e+00 : f32
      %127 = vector.broadcast %cst_69 : f32 to vector<2x32xf32>
      %128 = arith.addf %127, %126 : vector<2x32xf32>
      %129 = arith.divf %127, %128 : vector<2x32xf32>
      %130 = arith.mulf %121, %34 : vector<2x32xf32>
      %131 = arith.mulf %115, %123 : vector<2x32xf32>
      %132 = arith.addf %130, %131 : vector<2x32xf32>
      %133 = math.tanh %132 : vector<2x32xf32>
      %134 = arith.mulf %129, %133 : vector<2x32xf32>
      %c0_70 = arith.constant 0 : index
      %c0_71 = arith.constant 0 : index
      %135 = vector.load %arg19[%c0_70, %c0_71] : memref<2x128xf32, #tpu.memory_space<vmem>>, vector<2x32xf32>
      tpu.vector_store %arg19[%c0_70, %c0_71], %101 {strides = array<i32>} : memref<2x128xf32, #tpu.memory_space<vmem>>, vector<2x32xf32>,
      %c0_72 = arith.constant 0 : index
      %c32 = arith.constant 32 : index
      %136 = vector.load %arg19[%c0_72, %c32] : memref<2x128xf32, #tpu.memory_space<vmem>>, vector<2x32xf32>
      tpu.vector_store %arg19[%c0_72, %c32], %134 {strides = array<i32>} : memref<2x128xf32, #tpu.memory_space<vmem>>, vector<2x32xf32>,
      %c0_73 = arith.constant 0 : index
      %c64 = arith.constant 64 : index
      %137 = vector.load %arg19[%c0_73, %c64] : memref<2x128xf32, #tpu.memory_space<vmem>>, vector<2x32xf32>
      tpu.vector_store %arg19[%c0_73, %c64], %99 {strides = array<i32>} : memref<2x128xf32, #tpu.memory_space<vmem>>, vector<2x32xf32>,
      %c0_74 = arith.constant 0 : index
      %c96 = arith.constant 96 : index
      %138 = vector.load %arg19[%c0_74, %c96] : memref<2x128xf32, #tpu.memory_space<vmem>>, vector<2x32xf32>
      tpu.vector_store %arg19[%c0_74, %c96], %132 {strides = array<i32>} : memref<2x128xf32, #tpu.memory_space<vmem>>, vector<2x32xf32>,
      %139 = arith.truncf %134 : vector<2x32xf32> to vector<2x32xbf16>
      %c0_75 = arith.constant 0 : index
      %c0_76 = arith.constant 0 : index
      %140 = vector.load %arg22[%c0_75, %c0_76] : memref<2x32xbf16, #tpu.memory_space<vmem>>, vector<2x32xbf16>
      tpu.vector_store %arg22[%c0_75, %c0_76], %139 {strides = array<i32>} : memref<2x32xbf16, #tpu.memory_space<vmem>>, vector<2x32xbf16>,
      %cst_77 = arith.constant 0xFF800000 : f32
      %141 = vector.broadcast %cst_77 : f32 to vector<2x1xf32>
      %c0_78 = arith.constant 0 : index
      %c0_79 = arith.constant 0 : index
      %142 = vector.load %arg23[%c0_78, %c0_79] : memref<2x1xf32, #tpu.memory_space<vmem>>, vector<2x1xf32>
      tpu.vector_store %arg23[%c0_78, %c0_79], %141 {strides = array<i32>} : memref<2x1xf32, #tpu.memory_space<vmem>>, vector<2x1xf32>,
      %cst_80 = arith.constant 0.000000e+00 : f32
      %143 = vector.broadcast %cst_80 : f32 to vector<2x1xf32>
      %c0_81 = arith.constant 0 : index
      %c0_82 = arith.constant 0 : index
      %144 = vector.load %arg24[%c0_81, %c0_82] : memref<2x1xf32, #tpu.memory_space<vmem>>, vector<2x1xf32>
      tpu.vector_store %arg24[%c0_81, %c0_82], %143 {strides = array<i32>} : memref<2x1xf32, #tpu.memory_space<vmem>>, vector<2x1xf32>,
    } else {
    }
    %c0 = arith.constant 0 : index
    %c0_1 = arith.constant 0 : index
    %3 = vector.load %arg22[%c0, %c0_1] : memref<2x32xbf16, #tpu.memory_space<vmem>>, vector<2x32xbf16>
    %c0_2 = arith.constant 0 : index
    %c0_3 = arith.constant 0 : index
    %4 = vector.load %arg16[%c0_2, %c0_3] : memref<32x128xbf16, #tpu.memory_space<vmem>>, vector<32x128xbf16>
    %cst = arith.constant dense<0.000000e+00> : vector<2x128xf32>
    %5 = tpu.matmul %3, %4, %cst {dimension_numbers = #tpu.dot_dimension_numbers<[1], [0], [0], [1], [0, 0, 1, 1], [], []>} : vector<2x32xbf16>, vector<32x128xbf16>, vector<2x128xf32> -> vector<2x128xf32>
    %c0_4 = arith.constant 0 : index
    %c0_5 = arith.constant 0 : index
    %6 = vector.load %arg17[%c0_4, %c0_5] : memref<1x128xf32, #tpu.memory_space<vmem>>, vector<1x128xf32>
    %7 = vector.broadcast %6 : vector<1x128xf32> to vector<2x128xf32>
    %8 = arith.addf %5, %7 : vector<2x128xf32>
    %c0_6 = arith.constant 0 : index
    %c0_7 = arith.constant 0 : index
    %9 = vector.load %arg18[%c0_6, %c0_7] : memref<2x128xf32, #tpu.memory_space<vmem>>, vector<2x128xf32>
    tpu.vector_store %arg18[%c0_6, %c0_7], %8 {strides = array<i32>} : memref<2x128xf32, #tpu.memory_space<vmem>>, vector<2x128xf32>,
    %cst_8 = arith.constant dense<0xFF800000> : vector<2xf32>
    %10 = vector.multi_reduction <maximumf>, %8, %cst_8 [1] : vector<2x128xf32> to vector<2xf32>
    %11 = vector.shape_cast %10 : vector<2xf32> to vector<2x1xf32>
    %c0_9 = arith.constant 0 : index
    %c0_10 = arith.constant 0 : index
    %12 = vector.load %arg23[%c0_9, %c0_10] : memref<2x1xf32, #tpu.memory_space<vmem>>, vector<2x1xf32>
    %c0_11 = arith.constant 0 : index
    %c0_12 = arith.constant 0 : index
    %13 = vector.load %arg24[%c0_11, %c0_12] : memref<2x1xf32, #tpu.memory_space<vmem>>, vector<2x1xf32>
    %14 = arith.maximumf %12, %11 : vector<2x1xf32>
    %15 = arith.subf %12, %14 : vector<2x1xf32>
    %16 = math.exp %15 : vector<2x1xf32>
    %17 = arith.mulf %13, %16 : vector<2x1xf32>
    %18 = vector.broadcast %14 : vector<2x1xf32> to vector<2x128xf32>
    %19 = arith.subf %8, %18 : vector<2x128xf32>
    %20 = math.exp %19 : vector<2x128xf32>
    %cst_13 = arith.constant dense<0.000000e+00> : vector<2xf32>
    %21 = vector.multi_reduction <add>, %20, %cst_13 [1] : vector<2x128xf32> to vector<2xf32>
    %22 = vector.shape_cast %21 : vector<2xf32> to vector<2x1xf32>
    %23 = arith.addf %17, %22 : vector<2x1xf32>
    %c0_14 = arith.constant 0 : index
    %c0_15 = arith.constant 0 : index
    %24 = vector.load %arg23[%c0_14, %c0_15] : memref<2x1xf32, #tpu.memory_space<vmem>>, vector<2x1xf32>
    tpu.vector_store %arg23[%c0_14, %c0_15], %14 {strides = array<i32>} : memref<2x1xf32, #tpu.memory_space<vmem>>, vector<2x1xf32>,
    %c0_16 = arith.constant 0 : index
    %c0_17 = arith.constant 0 : index
    %25 = vector.load %arg24[%c0_16, %c0_17] : memref<2x1xf32, #tpu.memory_space<vmem>>, vector<2x1xf32>
    tpu.vector_store %arg24[%c0_16, %c0_17], %23 {strides = array<i32>} : memref<2x1xf32, #tpu.memory_space<vmem>>, vector<2x1xf32>,
    %c1_i32 = arith.constant 1 : i32
    %26 = arith.cmpi eq, %arg0, %c1_i32 : i32
    %27 = arith.extui %26 : i1 to i32
    %c0_i32_18 = arith.constant 0 : i32
    %28 = arith.cmpi ne, %27, %c0_i32_18 : i32
    scf.if %28 {
      %c0_19 = arith.constant 0 : index
      %c0_20 = arith.constant 0 : index
      %29 = vector.load %arg23[%c0_19, %c0_20] : memref<2x1xf32, #tpu.memory_space<vmem>>, vector<2x1xf32>
      %c0_21 = arith.constant 0 : index
      %c0_22 = arith.constant 0 : index
      %30 = vector.load %arg24[%c0_21, %c0_22] : memref<2x1xf32, #tpu.memory_space<vmem>>, vector<2x1xf32>
      %31 = math.log %30 : vector<2x1xf32>
      %32 = arith.addf %29, %31 : vector<2x1xf32>
      %c0_23 = arith.constant 0 : index
      %c0_24 = arith.constant 0 : index
      %33 = vector.load %arg21[%c0_23, %c0_24] : memref<2x1xf32, #tpu.memory_space<vmem>>, vector<2x1xf32>
      tpu.vector_store %arg21[%c0_23, %c0_24], %32 {strides = array<i32>} : memref<2x1xf32, #tpu.memory_space<vmem>>, vector<2x1xf32>,
    } else {
    }
    return
  }
  func.func @transform_0(%arg0: i32) -> (i32, i32) {
    %c0_i32 = arith.constant 0 : i32
    %c0_i32_0 = arith.constant 0 : i32
    %c0_i32_1 = arith.constant 0 : i32
    return %c0_i32, %c0_i32_0 : i32, i32
  }
  func.func @transform_1(%arg0: i32) -> (i32, i32) {
    %c0_i32 = arith.constant 0 : i32
    %c0_i32_0 = arith.constant 0 : i32
    %c0_i32_1 = arith.constant 0 : i32
    return %c0_i32, %c0_i32_0 : i32, i32
  }
  func.func @transform_2(%arg0: i32) -> (i32, i32, i32) {
    %c0_i32 = arith.constant 0 : i32
    %c0_i32_0 = arith.constant 0 : i32
    %c0_i32_1 = arith.constant 0 : i32
    %c0_i32_2 = arith.constant 0 : i32
    return %c0_i32, %c0_i32_0, %c0_i32_1 : i32, i32, i32
  }
  func.func @transform_3(%arg0: i32) -> (i32, i32) {
    %c0_i32 = arith.constant 0 : i32
    %c0_i32_0 = arith.constant 0 : i32
    %c0_i32_1 = arith.constant 0 : i32
    return %c0_i32, %c0_i32_0 : i32, i32
  }
  func.func @transform_4(%arg0: i32) -> (i32, i32) {
    %c0_i32 = arith.constant 0 : i32
    %c0_i32_0 = arith.constant 0 : i32
    %c0_i32_1 = arith.constant 0 : i32
    return %c0_i32, %c0_i32_0 : i32, i32
  }
  func.func @transform_5(%arg0: i32) -> (i32, i32) {
    %c0_i32 = arith.constant 0 : i32
    %c0_i32_0 = arith.constant 0 : i32
    %c0_i32_1 = arith.constant 0 : i32
    return %c0_i32, %c0_i32_0 : i32, i32
  }
  func.func @transform_6(%arg0: i32) -> (i32, i32) {
    %c0_i32 = arith.constant 0 : i32
    %c0_i32_0 = arith.constant 0 : i32
    %c0_i32_1 = arith.constant 0 : i32
    return %c0_i32, %c0_i32_0 : i32, i32
  }
  func.func @transform_7(%arg0: i32) -> (i32, i32) {
    %c0_i32 = arith.constant 0 : i32
    %c0_i32_0 = arith.constant 0 : i32
    %c0_i32_1 = arith.constant 0 : i32
    return %c0_i32, %c0_i32_0 : i32, i32
  }
  func.func @transform_8(%arg0: i32) -> (i32, i32) {
    %c0_i32 = arith.constant 0 : i32
    %c0_i32_0 = arith.constant 0 : i32
    %c0_i32_1 = arith.constant 0 : i32
    return %c0_i32, %c0_i32_0 : i32, i32
  }
  func.func @transform_9(%arg0: i32) -> (i32, i32) {
    %c0_i32 = arith.constant 0 : i32
    %c0_i32_0 = arith.constant 0 : i32
    %c0_i32_1 = arith.constant 0 : i32
    return %c0_i32, %c0_i32_0 : i32, i32
  }
  func.func @transform_10(%arg0: i32) -> (i32, i32) {
    %c0_i32 = arith.constant 0 : i32
    %c0_i32_0 = arith.constant 0 : i32
    %c0_i32_1 = arith.constant 0 : i32
    return %c0_i32, %c0_i32_0 : i32, i32
  }
  func.func @transform_11(%arg0: i32) -> (i32, i32) {
    %c0_i32 = arith.constant 0 : i32
    %c0_i32_0 = arith.constant 0 : i32
    %c0_i32_1 = arith.constant 0 : i32
    return %c0_i32, %c0_i32_0 : i32, i32
  }
  func.func @transform_12(%arg0: i32) -> (i32, i32) {
    %c0_i32 = arith.constant 0 : i32
    %c0_i32_0 = arith.constant 0 : i32
    %c0_i32_1 = arith.constant 0 : i32
    return %c0_i32, %c0_i32_0 : i32, i32
  }
  func.func @transform_13(%arg0: i32) -> (i32, i32) {
    %c0_i32 = arith.constant 0 : i32
    %c0_i32_0 = arith.constant 0 : i32
    %c0_i32_1 = arith.constant 0 : i32
    return %c0_i32, %c0_i32_0 : i32, i32
  }
  func.func @transform_14(%arg0: i32) -> (i32, i32) {
    %c0_i32 = arith.constant 0 : i32
    %c0_i32_0 = arith.constant 0 : i32
    %c0_i32_1 = arith.constant 0 : i32
    return %c0_i32, %c0_i32_0 : i32, i32
  }
  func.func @transform_15(%arg0: i32) -> (i32, i32) {
    %c0_i32 = arith.constant 0 : i32
    %c0_i32_0 = arith.constant 0 : i32
    return %c0_i32, %arg0 : i32, i32
  }
  func.func @transform_16(%arg0: i32) -> (i32, i32) {
    %c0_i32 = arith.constant 0 : i32
    %c0_i32_0 = arith.constant 0 : i32
    return %c0_i32, %arg0 : i32, i32
  }
  func.func @transform_17(%arg0: i32) -> (i32, i32) {
    %c0_i32 = arith.constant 0 : i32
    %c0_i32_0 = arith.constant 0 : i32
    return %c0_i32, %arg0 : i32, i32
  }
  func.func @transform_18(%arg0: i32) -> (i32, i32) {
    %c0_i32 = arith.constant 0 : i32
    %c0_i32_0 = arith.constant 0 : i32
    %c0_i32_1 = arith.constant 0 : i32
    return %c0_i32, %c0_i32_0 : i32, i32
  }
  func.func @transform_19(%arg0: i32) -> (i32, i32) {
    %c0_i32 = arith.constant 0 : i32
    %c0_i32_0 = arith.constant 0 : i32
    %c0_i32_1 = arith.constant 0 : i32
    return %c0_i32, %c0_i32_0 : i32, i32
  }
  func.func @transform_20(%arg0: i32) -> (i32, i32) {
    %c0_i32 = arith.constant 0 : i32
    %c0_i32_0 = arith.constant 0 : i32
    %c0_i32_1 = arith.constant 0 : i32
    return %c0_i32, %c0_i32_0 : i32, i32
  }
}

</mosaic_0001>

<bundles_post_ra>
// kernel: tpu_custom_call.1
= control target key start
LH: loop header
LB: loop body
LE: loop exit
PB: predicated region body
PF: predicated region fallthrough
CT: control target
= control target key end

     0   :  { %s3067_s0 = inlined_call_operand.vmem [shape: f32[2,32], index: 0, kind: input, shape index: {}]   ;;  %s3068_s1 = inlined_call_operand.vmem [shape: f32[2,128], index: 1, kind: input, shape index: {}, may-alias: {1,18}]   ;;  %s3069_s2 = inlined_call_operand.vmem [shape: f32[2,8,64], index: 2, kind: input, shape index: {}]   ;;  %s3070_s3 = inlined_call_operand.vmem [shape: f32[32,8], index: 3, kind: input, shape index: {}]   ;;  %s3071_s4 = inlined_call_operand.vmem [shape: f32[32,8], index: 4, kind: input, shape index: {}]   ;;  %s3072_s5 = inlined_call_operand.vmem [shape: f32[1,8], index: 5, kind: input, shape index: {}]   ;;  %s3073_s6 = inlined_call_operand.vmem [shape: f32[32,32], index: 6, kind: input, shape index: {}]   ;;  %s3074_s7 = inlined_call_operand.vmem [shape: f32[64,32], index: 7, kind: input, shape index: {}]   ;;  %s3075_s8 = inlined_call_operand.vmem [shape: f32[1,32], index: 8, kind: input, shape index: {}]   ;;  %s3076_s9 = inlined_call_operand.vmem [shape: f32[32,128], index: 9, kind: input, shape index: {}]   ;;  %s3077_s10 = inlined_call_operand.vmem [shape: f32[32,128], index: 10, kind: input, shape index: {}]   ;;  %s3078_s11 = inlined_call_operand.hbm [shape: f32[1,128], index: 11, kind: input, shape index: {}]   ;;  %s3079_s12 = inlined_call_operand.vmem [shape: f32[32,128], index: 12, kind: input, shape index: {}]   ;;  %s3080_s13 = inlined_call_operand.hbm [shape: f32[32,128], index: 13, kind: input, shape index: {}]   ;;  %s3081_s14 = inlined_call_operand.hbm [shape: f32[1,128], index: 14, kind: input, shape index: {}]   ;;  %s3082_s15 = inlined_call_operand.hbm [shape: bf16[32,256], index: 15, kind: input, shape index: {}]   ;;  %s3083_s16 = inlined_call_operand.hbm [shape: f32[1,256], index: 16, kind: input, shape index: {}]   ;;  %s3084_s17 = inlined_call_operand.hbm [shape: f32[2,256], index: 17, kind: output, shape index: {0}]   ;;  %s3085_s18 = inlined_call_operand.vmem [shape: f32[2,128], index: 18, kind: output, shape index: {1}, may-alias: {1,18}]   ;;  %s3086_s19 = inlined_call_operand.hbm [shape: f32[2,8], index: 19, kind: output, shape index: {2}]   ;;  %s3087_s20 = inlined_call_operand.vmem [shape: f32[2,1], index: 20, kind: output, shape index: {3}]  }
   0x1   :  { %3114 = sst [smem:[#allocation27_spill]] %s3067_s0 }
   0x2   :  { %3115 = sst [smem:[#allocation28_spill]] %s3068_s1 }
   0x3   :  { %3116 = sst [smem:[#allocation29_spill]] %s3069_s2 }
   0x4   :  { %3117 = sst [smem:[#allocation30_spill]] %s3070_s3 }
   0x5   :  { %3118 = sst [smem:[#allocation31_spill]] %s3071_s4 }
   0x6   :  { %3119 = sst [smem:[#allocation32_spill]] %s3072_s5 }
   0x7   :  { %3120 = sst [smem:[#allocation33_spill]] %s3074_s7 }
   0x8   :  { %3121 = sst [smem:[#allocation34_spill]] %s3075_s8 }
   0x9   :  { %3122 = sst [smem:[#allocation35_spill]] %s3076_s9 }
   0xa   :  { %3123 = sst [smem:[#allocation36_spill]] %s3079_s12 }
   0xb   :  { %3124 = sst [smem:[#allocation37_spill]] %s3080_s13 }
   0xc   :  { %3125 = sst [smem:[#allocation38_spill]] %s3082_s15 }
   0xd   :  { %3126 = sst [smem:[#allocation39_spill]] %s3084_s17 }
   0xe   :  { %3127 = sst [smem:[#allocation40_spill]] %s3085_s18 }
   0xf   :  { %3128 = sst [smem:[#allocation41_spill]] %s3086_s19 }
  0x10   :  { %3129 = sst [smem:[#allocation42_spill]] %s3087_s20 }
  0x11   :  { %26 = vsyncpa [#allocation6], 0 }
  0x12   :  { %27 = vsyncpa [#allocation9], 0 }
  0x13   :  { %28 = vsyncpa [#allocation12], 0 }
  0x14   :  { %30 = vsyncpa [#allocation12 + $0x1], 0 }
  0x15   :  { %31 = vsyncpa [#allocation7], 0 }
  0x16   :  { %33 = vsyncpa [#allocation7 + $0x1], 0 }
  0x17   :  { %34 = vsyncpa [#allocation16], 0  ;;  %s2542_s1 = smov 0   ;;  %s2544_s22 = smov 0  }
  0x18   :  { %s2546_s23 = smov 0   ;;  %s2548_s24 = smov 0  }
  0x19 LB: > { %3130 = sst [smem:[#allocation22_spill]] %s2401_s1  ;;  %s2563_s2 = sadd.s32 4294967295, %s2413_s24   ;;  %s2413_s24 = sphi %s2548_s24, %s3184_s24   ;;  %s2409_s23 = sphi %s2546_s23, %s3188_s23   ;;  %s2405_s22 = sphi %s2544_s22, %s3187_s22   ;;  %s2401_s1 = sphi %s2542_s1, %s3186_s1  }
  0x1a   : > { %s1786_s25 = sadd.s32 4294967294, %s2413_s24   ;;  %s2567_s3 = sadd.s32 1, %s2413_s24  }
  0x1b   : > { %3131 = sst [smem:[#allocation23_spill]] %s2567_s3  ;;  %s362_s26 = sadd.s32 1, %s2409_s23 }
  0x1c   : > { %s359_s27 = ssub.s32 %s2413_s24, %s2567_s3  ;;  %p369_p0 = scmp.ne.s32.totalorder %s2409_s23, %s2405_s22 }
  0x1d   : > { %p360_p1 = scmp.eq.s32.totalorder %s359_s27, 0  ;;  %p370_p2 = scmp.eq.s32.totalorder %s2413_s24, 0 }
  0x1e   : > { %p375_p3 = scmp.ne.s32.totalorder %s2405_s22, %s2401_s1  ;;  %p3100_p4 = scmp.eq.s32.totalorder %s2563_s2, 0 }
  0x1f   : > { %s2579_s28 = scalar_select %p360_p1, %s2409_s23, %s362_s26  }
  0x20   : > { %p2581_p5 = por %p370_p2, %p369_p0  ;;  %p2587_p6 = por %p3100_p4, %p375_p3 }
  0x21   : > { %3132 = sst [smem:[#allocation24_spill]] %s2579_s28  ;;  %p3097_p7 = scmp.eq.s32.totalorder %s2563_s2, 1 }
  0x22   : > { %s3133_s4 = scalar_select %p2581_p5, 1, 0 }
  0x23   : > { %s3134_s29 = scalar_select %p2587_p6, 1, 0 }
  0x24   : > { %p431_p8 = scmp.eq.s32.totalorder %s1786_s25, 1  ;;  %p1787_p9 = scmp.ge.s32.totalorder %s2413_s24, 1 }
  0x25   : > { %p501_p10 = scmp.lt.s32.totalorder %s2413_s24, 3  ;;  %p2596_p11 = por %p3097_p7, %p369_p0 }
  0x26   : > { %p2600_p12 = por %p431_p8, %p375_p3  ;;  %s2415_s25 = smov [#allocation8]  }
  0x27   : > { %s3135_s30 = scalar_select %p2596_p11, 1, 0 }
  0x28   : > { %s3137_s0 = scalar_select %p2600_p12, 1, 0 }
  0x29   : > { %3136 = sst [smem:[#allocation25_spill]] %s3135_s30  ;;  %p2604_p13 = pnand %p1787_p9, %p501_p10 }
  0x2a   : > { %3138 = sst [smem:[#allocation26_spill]] %s3137_s0  ;;  %s560_s26 = sshll.u32 %s2415_s25, 4  ;;  %s561_s26 = int_to_ptr.vmem [resolvable:$true] %s560_s26 }
  0x2b   : > { %s3139_s21 = scalar_select %p2604_p13, 1, 0 }
  0x2c   : > { %p2054_p2 = pneg %p2604_p13  ;;  %s585_s28 = sand.u32 1, %s2413_s24  }
  0x2d   : > { %s3141_s13 = sld [smem:[#allocation37_spill]] }
  0x2e   : > { %p2613_p0 = pnand %p2054_p2, %p3100_p4 }
  0x30   : > { %s3140_s27 = scalar_select %p2613_p0, 1, 0 }
  0x31   : > { %p2628_p10 = pneg %p2613_p0 }
  0x33   : > { %s2165_s1 = scalar_lea.hbm %s3141_s13, 512 }
  0x34   : > { %p2166_p9 = scmp.ne.s32.totalorder %s3141_s13, %s2165_s1  ;;  %p2172_p3 = scmp.lt.u32.totalorder %s2165_s1, %s3141_s13 }
  0x36   : > { %p2168_p2 = pnand %p2628_p10, %p2166_p9 }
  0x38   : > { %p2169_p7 = pneg %p2168_p2 }
  0x3a   : > { %p2174_p1 = pnand %p2172_p3, %p2169_p7 }
  0x3c   : > { %2177 = shalt.err (!%p2174_p1)
}
  0x3d   : > { %s2178_s3 = scalar_lea.vmem %s561_s26, 512  ;;  %p2186_p11 = scmp.lt.s32.totalorder %s561_s26, %s561_s26 }
  0x3e   : > { %p2179_p4 = scmp.ne.s32.totalorder %s561_s26, %s2178_s3  ;;  %p2187_p6 = scmp.lt.s32.totalorder %s2178_s3, %s2178_s3 }
  0x40   : > { %p2181_p8 = pnand %p2179_p4, %p2628_p10  ;;  %p2188_p13 = por %p2187_p6, %p2186_p11 }
  0x42   : > { %p2182_p12 = pneg %p2181_p8 }
  0x44   : > { %p2189_p5 = pnand %p2188_p13, %p2182_p12 }
  0x46   : > { %2192 = shalt.err (!%p2189_p5)
}
  0x47   : > { %s2416_s17 = smov 128   ;;  %s2417_s19 = smov 8  }
  0x48   : > { %2060 = dma.hbm_to_vmem [thread:$0]  (!%p2613_p0), %s3141_s13, 512, %s561_s26, [#allocation9], %s2416_s17, %s2416_s17, %s2417_s19  }
  0x49   : > { %p3143_p4 = scmp.ne.s32.totalorder %s3133_s4, 0  ;;  %p3144_p7 = scmp.lt.s32.totalorder %s2413_s24, 2 }
  0x4a   : > { %s3107_s0 = sand.u32 1, %s2409_s23   ;;  %s1793_s18 = sshll.u32 %s2413_s24, 6 }
  0x4b   : > { %p2650_p6 = pnand %p3144_p7, %p3143_p4  ;;  %s1792_s3 = sshll.u32 %s3107_s0, 4 }
  0x4c   : > { %s3146_s15 = sld [smem:[#allocation38_spill]]  ;;  %s589_s4 = scalar_lea.vmem [#allocation11], %s1792_s3 }
  0x4d   : > { %s3145_s30 = scalar_select %p2650_p6, 1, 0 }
  0x4e   : > { %s595_s26 = sshll.u32 %s589_s4, 4  ;;  %s2665_s19 = scalar_lea.sflag [#allocation12], %s585_s28  ;;  %s2663_s26 = int_to_ptr.vmem [resolvable:$true] %s595_s26 }
  0x4f   : > { %p3111_p11 = pneg %p2650_p6 }
  0x52   : > { %s2661_s9 = scalar_lea.hbm %s3146_s15, %s1793_s18  ;;  %s2198_s18 = scalar_lea.hbm %s3146_s15, 512 }
  0x53   : > { %s2193_s20 = scalar_lea.hbm %s2661_s9, 256  ;;  %p2199_p1 = scmp.lt.u32.totalorder %s2661_s9, %s3146_s15 }
  0x54   : > { %p2194_p5 = scmp.ne.s32.totalorder %s2661_s9, %s2193_s20  ;;  %p2200_p3 = scmp.lt.u32.totalorder %s2198_s18, %s2193_s20 }
  0x55   : > { %p2202_p9 = scmp.lt.u32.totalorder %s2193_s20, %s2661_s9 }
  0x56   : > { %p2196_p12 = pnand %p3111_p11, %p2194_p5  ;;  %p2201_p8 = por %p2200_p3, %p2199_p1 }
  0x58   : > { %p2197_p13 = pneg %p2196_p12  ;;  %p2203_p2 = por %p2202_p9, %p2201_p8 }
  0x5a   : > { %p2204_p4 = pnand %p2203_p2, %p2197_p13 }
  0x5c   : > { %2207 = shalt.err (!%p2204_p4)
}
  0x5d   : > { %s2208_s28 = scalar_lea.vmem %s2663_s26, 256  ;;  %s2418_s3 = smov [#allocation11]  }
  0x5e   : > { %p2209_p7 = scmp.ne.s32.totalorder %s2663_s26, %s2208_s28  ;;  %s2213_s4 = sshll.u32 %s2418_s3, 4  ;;  %s2214_s4 = int_to_ptr.vmem [resolvable:$false] %s2213_s4 }
  0x5f   : > { %s2215_s0 = scalar_lea.vmem %s2214_s4, 512  ;;  %p2216_p0 = scmp.lt.s32.totalorder %s2663_s26, %s2214_s4 }
  0x60   : > { %p2211_p5 = pnand %p2209_p7, %p3111_p11  ;;  %p2217_p1 = scmp.lt.s32.totalorder %s2215_s0, %s2208_s28 }
  0x62   : > { %p2212_p12 = pneg %p2211_p5  ;;  %p2218_p3 = por %p2217_p1, %p2216_p0 }
  0x64   : > { %p2219_p8 = pnand %p2218_p3, %p2212_p12 }
  0x66   : > { %2222 = shalt.err (!%p2219_p8)
}
  0x67   : > { %s2419_s20 = smov 64   ;;  %s2420_s8 = smov 4  }
  0x68   : > { %2067 = dma.hbm_to_vmem [thread:$0]  (!%p2650_p6), %s2661_s9, 256, %s2663_s26, %s2665_s19, %s2416_s17, %s2419_s20, %s2420_s8  }
  0x69   : > { %s2421_s12 = smov [#allocation5]   ;;  %s2422_s1 = smov [#allocation10]  }
  0x6a   : > { %s547_s18 = sshll.u32 %s2421_s12, 4  ;;  %s574_s3 = sshll.u32 %s2422_s1, 4  ;;  %s548_s18 = int_to_ptr.vmem [resolvable:$true] %s547_s18  ;;  %s575_s3 = int_to_ptr.vmem [resolvable:$true] %s574_s3 }
  0x6b   : > { %s2223_s0 = scalar_lea.hbm %s3078_s11, 16 }
  0x6c   : > { %p2224_p0 = scmp.ne.s32.totalorder %s3078_s11, %s2223_s0  ;;  %p2230_p2 = scmp.lt.u32.totalorder %s2223_s0, %s3078_s11 }
  0x6e   : > { %p2226_p13 = pnand %p2224_p0, %p2628_p10 }
  0x70   : > { %p2227_p9 = pneg %p2226_p13 }
  0x72   : > { %p2232_p4 = pnand %p2230_p2, %p2227_p9 }
  0x74   : > { %2235 = shalt.err (!%p2232_p4)
}
  0x75   : > { %s2236_s9 = scalar_lea.vmem %s548_s18, 16  ;;  %s2243_s17 = scalar_lea.vmem %s548_s18, 32 }
  0x76   : > { %p2237_p7 = scmp.ne.s32.totalorder %s548_s18, %s2236_s9  ;;  %p2244_p1 = scmp.lt.s32.totalorder %s548_s18, %s548_s18 }
  0x77   : > { %p2245_p3 = scmp.lt.s32.totalorder %s2243_s17, %s2236_s9 }
  0x78   : > { %p2239_p5 = pnand %p2237_p7, %p2628_p10 }
  0x79   : > { %p2246_p8 = por %p2245_p3, %p2244_p1 }
  0x7a   : > { %p2240_p12 = pneg %p2239_p5 }
  0x7c   : > { %p2247_p11 = pnand %p2246_p8, %p2240_p12 }
  0x7e   : > { %2250 = shalt.err (!%p2247_p11)
}
  0x7f   : > { %p3147_p0 = scmp.ne.s32.totalorder %s3140_s27, 0  ;;  %s2251_s26 = scalar_lea.hbm %s3081_s14, 16 }
  0x80   : > { %p2252_p13 = scmp.ne.s32.totalorder %s3081_s14, %s2251_s26  ;;  %p2258_p11 = scmp.lt.u32.totalorder %s2251_s26, %s3081_s14 }
  0x81   : > { %2057 = dma.hbm_to_vmem [thread:$0]  (!%p3147_p0), %s3078_s11, 16, %s548_s18, [#allocation6]  }
  0x82   : > { %p2254_p9 = pnand %p2252_p13, %p2628_p10 }
  0x84   : > { %p2255_p2 = pneg %p2254_p9 }
  0x86   : > { %p2260_p4 = pnand %p2258_p11, %p2255_p2 }
  0x88   : > { %2263 = shalt.err (!%p2260_p4)
}
  0x89   : > { %s2264_s4 = scalar_lea.vmem %s575_s3, 16  ;;  %s2271_s18 = scalar_lea.vmem %s575_s3, 32 }
  0x8a   : > { %p2265_p7 = scmp.ne.s32.totalorder %s575_s3, %s2264_s4  ;;  %p2272_p1 = scmp.lt.s32.totalorder %s575_s3, %s575_s3 }
  0x8b   : > { %p2273_p3 = scmp.lt.s32.totalorder %s2271_s18, %s2264_s4 }
  0x8c   : > { %p2267_p5 = pnand %p2265_p7, %p2628_p10 }
  0x8d   : > { %p2274_p8 = por %p2273_p3, %p2272_p1 }
  0x8e   : > { %p2268_p12 = pneg %p2267_p5 }
  0x90   : > { %p2275_p6 = pnand %p2274_p8, %p2268_p12 }
  0x92   : > { %2278 = shalt.err (!%p2275_p6)
}
  0x93   : > { %2063 = dma.hbm_to_vmem [thread:$0]  (!%p3147_p0), %s3081_s14, 16, %s575_s3, [#allocation9]  }
  0x94   : > { %s1794_s9 = sshll.u32 %s2413_s24, 4  ;;  %s3148_s17 = sand.u32 1, %s2409_s23  }
  0x95   : > { %s608_s25 = scalar_lea.vmem [#allocation13], %s3148_s17  ;;  %s613_s7 = scalar_lea.hbm %s3083_s16, %s1794_s9 }
  0x96   : > { %s615_s13 = sshll.u32 %s608_s25, 4  ;;  %s2279_s26 = scalar_lea.hbm %s613_s7, 16  ;;  %s616_s13 = int_to_ptr.vmem [resolvable:$true] %s615_s13 }
  0x97   : > { %p2280_p10 = scmp.ne.s32.totalorder %s613_s7, %s2279_s26  ;;  %p3149_p6 = scmp.ne.s32.totalorder %s3145_s30, 0 }
  0x98   : > { %s2284_s8 = scalar_lea.hbm %s3083_s16, 32  ;;  %p2285_p0 = scmp.lt.u32.totalorder %s613_s7, %s3083_s16 }
  0x99   : > { %p3150_p13 = pneg %p3149_p6  ;;  %p2286_p11 = scmp.lt.u32.totalorder %s2284_s8, %s2279_s26 }
  0x9a   : > { %p2288_p7 = scmp.lt.u32.totalorder %s2279_s26, %s613_s7 }
  0x9b   : > { %p2282_p9 = pnand %p2280_p10, %p3150_p13  ;;  %p2287_p4 = por %p2286_p11, %p2285_p0 }
  0x9d   : > { %p2283_p2 = pneg %p2282_p9  ;;  %p2289_p5 = por %p2288_p7, %p2287_p4 }
  0x9f   : > { %p2290_p12 = pnand %p2289_p5, %p2283_p2 }
  0xa1   : > { %2293 = shalt.err (!%p2290_p12)
}
  0xa2   : > { %s2294_s1 = scalar_lea.vmem %s616_s13, 16  ;;  %p3151_p3 = pmov %p3150_p13 }
  0xa3   : > { %p2295_p1 = scmp.ne.s32.totalorder %s616_s13, %s2294_s1  ;;  %s2423_s4 = smov [#allocation13]  }
  0xa4   : > { %s2299_s18 = sshll.u32 %s2423_s4, 4  ;;  %s2300_s18 = int_to_ptr.vmem [resolvable:$false] %s2299_s18 }
  0xa5   : > { %p2297_p8 = pnand %p2295_p1, %p3151_p3  ;;  %s2301_s28 = scalar_lea.vmem %s2300_s18, 32 }
  0xa6   : > { %p2302_p13 = scmp.lt.s32.totalorder %s616_s13, %s2300_s18  ;;  %p2303_p9 = scmp.lt.s32.totalorder %s2301_s28, %s2294_s1 }
  0xa7   : > { %p2298_p10 = pneg %p2297_p8 }
  0xa8   : > { %p2304_p0 = por %p2303_p9, %p2302_p13 }
  0xaa   : > { %p2305_p11 = pnand %p2304_p0, %p2298_p10 }
  0xac   : > { %2308 = shalt.err (!%p2305_p11)
}
  0xad   : > { %2070 = dma.hbm_to_vmem [thread:$0]  (!%p3149_p6), %s613_s7, 16, %s616_s13, %s2665_s19  }
  0xae   : > { %p3152_p2 = scmp.ne.s32.totalorder %s3139_s21, 0 }
  0xaf   : > { %p3153_p4 = scmp.eq.s32.totalorder (!%p3152_p2), %s2563_s2, 0 }
  0xb0   : > { %624 = sbr.rel (%p3152_p2) target bundleno = 3358 (0xd1e), region = 88 }
  0xb7   : > { %2380 = dma.done.wait (%p3153_p4), [#allocation6], 16   ;;  %p3154_p7 = pmov %p3153_p4 }
  0xb8   : > { %p3155_p5 = pmov %p3153_p4 }
  0xb9   : > { %2382 = vsyncadd (%p3154_p7), [#allocation6], 4294967280 }
  0xba   : > { %2384 = dma.done.wait (%p3155_p5), [#allocation9], 528   ;;  %p3156_p12 = pmov %p3153_p4 }
  0xbb   : > { %s638_s30 = sand.u32 1, %s2563_s2   ;;  %s2763_s19 = sand.u32 1, %s2405_s22  }
  0xbc   : > { %2386 = vsyncadd (%p3156_p12), [#allocation9], 4294966768  ;;  %s1799_s21 = sshll.u32 %s2763_s19, 4  ;;  %s639_s0 = scalar_lea.sflag [#allocation12], %s638_s30 }
  0xbd   : > { %s2766_s9 = scalar_lea.vmem [#allocation11], %s1799_s21  ;;  %p3157_p6 = scmp.ne.s32.totalorder %s3134_s29, 0 }
  0xbf   : > { %2388 = dma.done.wait (%p3157_p6), %s639_s0, 272  }
  0xc0   : > { %2390 = vsyncadd (%p3157_p6), %s639_s0, 4294967024  ;;  %s1800_s17 = sshll.u32 %s2763_s19, 1  ;;  %s650_s25 = scalar_lea.vmem [#allocation13], %s2763_s19 }
  0xc1   : > { %s2774_s13 = scalar_lea.vmem [#allocation14], %s1800_s17  ;;  %p3158_p1 = scmp.ne.s32.totalorder %s2563_s2, 0 }
  0xc2   : > { %s3159_s7 = sld [smem:[#allocation28_spill]] (!%p3158_p1)  ;;  %s3160_s20 = sld [smem:[#allocation31_spill]] (!%p3158_p1)  ;;  %v2425_v3 = vmov (!%p3158_p1), 0.0|0.0   ;;  %vm1512_vm0 = vcmask (!%p3158_p1), 1024   ;;  %vm2426_vm1 = vmmov (!%p3158_p1), 0   ;;  %v2427_v12 = vmov (!%p3158_p1), 0.0  }
  0xc3   : > { %715 = sbr.rel (%p3158_p1) target bundleno = 2616 (0xa38), region = 112  ;;  %s2424_s3 = smov (!%p3158_p1), 96   ;;  %1978 = vmatprep.subr.bf16.mxu0 (!%p3158_p1), %v2425_v3  ;;  %1984 = vmatprep.subr.bf16.mxu1 (!%p3158_p1), %v2425_v3  ;;  %1514 = vst.msk [vmem:[#allocation4] sm:$0x3] (!%p3158_p1), %vm1512_vm0, %v2427_v12  ;;  %v2428_v14 = vmov (!%p3158_p1), -inf   ;;  %vm726_vm2 = vcmask (!%p3158_p1), 261120   ;;  %v896_v56 = vlaneseq (!%p3158_p1) }
  0xc4   : > { %s3161_s4 = sld [smem:[#allocation30_spill]] (!%p3158_p1)  ;;  %1882 = vmatprep.mubr.msk.f32.mxu0 (!%p3158_p1), %vm2426_vm1, %v2427_v12  ;;  %1513 = vst.msk [vmem:[#allocation3] sm:$0x3] (!%p3158_p1), %vm1512_vm0, %v2428_v14  ;;  %1893 = vmatprep.mubr.msk.f32.mxu1 (!%p3158_p1), %vm2426_vm1, %v2427_v12  ;;  %s3162_s8 = sld [smem:[#allocation27_spill]] (!%p3158_p1)  ;;  %v929_v17 = vld [vmem:[%s3073_s6] sm:$0xff] (!%p3158_p1)  ;;  %v930_v18 = vld [vmem:[%s3073_s6 + $0x8] sm:$0xff] (!%p3158_p1) }
  0xc5   : > { %v2003_v19 = vpack.c.bf16 (!%p3158_p1), %v930_v18, %v929_v17  ;;  %v931_v20 = vld [vmem:[%s3073_s6 + $0x10] sm:$0xff] (!%p3158_p1)  ;;  %v932_v21 = vld [vmem:[%s3073_s6 + $0x18] sm:$0xff] (!%p3158_p1)  ;;  %v1100_v24 = vld [vmem:[%s3077_s10] sm:$0xff] (!%p3158_p1)  ;;  %s3163_s1 = sld [smem:[#allocation32_spill]] (!%p3158_p1)  ;;  %vm883_vm3 = vcmask (!%p3158_p1), 58368   ;;  %v2880_v57 = vshrl.u32 (!%p3158_p1), %v896_v56, 7 }
  0xc6   : > { %v2006_v23 = vpack.c.bf16 (!%p3158_p1), %v932_v21, %v931_v20  ;;  %v1101_v25 = vld [vmem:[%s3077_s10 + $0x8] sm:$0xff] (!%p3158_p1)  ;;  %v1102_v27 = vld [vmem:[%s3077_s10 + $0x10] sm:$0xff] (!%p3158_p1)  ;;  %v1103_v28 = vld [vmem:[%s3077_s10 + $0x18] sm:$0xff] (!%p3158_p1)  ;;  %s3164_s30 = sld [smem:[#allocation33_spill]] (!%p3158_p1)  ;;  %s3165_s0 = sld [smem:[#allocation29_spill]] (!%p3158_p1)  ;;  %vm914_vm4 = vcmask (!%p3158_p1), 523264  }
  0xc7   : > { %v2009_v26 = vpack.c.bf16 (!%p3158_p1), %v1101_v25, %v1100_v24  ;;  %v2012_v29 = vpack.c.bf16 (!%p3158_p1), %v1103_v28, %v1102_v27  ;;  %v1286_v30 = vld [vmem:[#allocation8] sm:$0xff] (!%p3158_p1)  ;;  %v1287_v31 = vld [vmem:[#allocation8 + $0x8] sm:$0xff] (!%p3158_p1)  ;;  %v1288_v33 = vld [vmem:[#allocation8 + $0x10] sm:$0xff] (!%p3158_p1)  ;;  %v898_v61 = vsub.s32 (!%p3158_p1), 0, %v2880_v57  ;;  %vm943_vm5 = vcmask (!%p3158_p1), 1041409   ;;  %s3166_s26 = sld [smem:[#allocation35_spill]] (!%p3158_p1) }
  0xc8   : > { %v2781_v0 = vld [vmem:[%s3159_s7] sm:$0x3] (!%p3158_p1)  ;;  %v723_v2 = vld [vmem:[%s3160_s20 + $0x8] sm:$0xff] (!%p3158_p1)  ;;  %v724_v7 = vld [vmem:[%s3160_s20 + $0x10] sm:$0xff] (!%p3158_p1)  ;;  %v2021_v32 = vpack.c.bf16 (!%p3158_p1), %v1287_v31, %v1286_v30  ;;  %s3167_s21 = sld [smem:[#allocation34_spill]] (!%p3158_p1)  ;;  %s2429_s17 = smov (!%p3158_p1), 64  }
  0xc9   : > { %v722_v1 = vld [vmem:[%s3160_s20] sm:$0xff] (!%p3158_p1)  ;;  %801 = vrot.lane.b32.xlu0 (!%p3158_p1), %v2781_v0, %s2424_s3  ;;  %v725_v9 = vld [vmem:[%s3160_s20 + $0x18] sm:$0xff] (!%p3158_p1)  ;;  %s2430_s15 = smov (!%p3158_p1), 32   ;;  %s3168_s27 = sld [smem:[#allocation36_spill]] (!%p3158_p1)  ;;  %vm1471_vm6 = vcmask (!%p3158_p1), 254976   ;;  %vm1477_vm7 = vcmask (!%p3158_p1), 517376  }
  0xca   : > { %v1979_v4 = vpack.c.bf16 %v723_v2, %v722_v1  ;;  %v718_v5 = vld [vmem:[%s3161_s4] sm:$0xff]  ;;  %v719_v6 = vld [vmem:[%s3161_s4 + $0x8] sm:$0xff]  ;;  %v720_v10 = vld [vmem:[%s3161_s4 + $0x10] sm:$0xff]  ;;  %v1982_v13 = vpack.c.bf16 %v725_v9, %v724_v7  ;;  %s3169_s5 = sld [smem:[#allocation40_spill]]  ;;  %vm1483_vm8 = vcmask 779776   ;;  %vm1489_vm9 = vcmask 1042176  }
  0xcb   : > { %v1985_v8 = vpack.c.bf16 %v719_v6, %v718_v5  ;;  %v721_v11 = vld [vmem:[%s3161_s4 + $0x18] sm:$0xff]  ;;  %v716_v16 = vld [vmem:[%s3162_s8] sm:$0x3]  ;;  %v905_v6 = vsub.s32 1, %v2880_v57  ;;  %vm1510_vm10 = vcmask 253952  }
  0xcc   : > { %1980 = vmatpush3.bf16.msra.mxu0 %v1979_v4  ;;  %v1988_v15 = vpack.c.bf16 %v721_v11, %v720_v10  ;;  %v1289_v34 = vld [vmem:[#allocation8 + $0x18] sm:$0xff]  ;;  %v934_v59 = vld [vmem:[%s3164_s30 + $0x8] sm:$0xff]  ;;  %v935_v62 = vld [vmem:[%s3164_s30 + $0x10] sm:$0xff] }
  0xcd   : > { %1986 = vmatpush3.bf16.msra.mxu1 %v1985_v8  ;;  %1981 = vmatprep.subr.bf16.mxu0 %v2425_v3  ;;  %v2024_v35 = vpack.c.bf16 %v1289_v34, %v1288_v33  ;;  %v1804_v39 = vld [vmem:[%s3163_s1] ss:$0 sm:$0xff]  ;;  %v936_v63 = vld [vmem:[%s3164_s30 + $0x18] sm:$0xff]  ;;  %v938_v8 = vld [vmem:[%s3164_s30 + $0x28] sm:$0xff] }
  0xce   : > { %1987 = vmatprep.subr.bf16.mxu1 %v2425_v3  ;;  %v933_v58 = vld [vmem:[%s3164_s30] sm:$0xff]  ;;  %v1994_v2 = vpack.c.bf16 %v936_v63, %v935_v62  ;;  %v939_v11 = vld [vmem:[%s3164_s30 + $0x30] sm:$0xff]  ;;  %v911_v18 = vld [vmem:[%s3165_s0 + $0x8] sm:$0xff] }
  0xcf   : > { %v1991_v60 = vpack.c.bf16 %v934_v59, %v933_v58  ;;  %v937_v7 = vld [vmem:[%s3164_s30 + $0x20] sm:$0xff] }
  0xd0   : > { %1983 = vmatpush3.bf16.msra.mxu0 %v1982_v13  ;;  %v1997_v9 = vpack.c.bf16 %v938_v8, %v937_v7  ;;  %v940_v13 = vld [vmem:[%s3164_s30 + $0x38] sm:$0xff] }
  0xd1   : > { %1989 = vmatpush3.bf16.msra.mxu1 %v1988_v15  ;;  %1990 = vmatprep.subr.bf16.mxu0 %v2425_v3  ;;  %v2000_v14 = vpack.c.bf16 %v940_v13, %v939_v11  ;;  %v910_v15 = vld [vmem:[%s3165_s0] sm:$0xff] }
  0xd2   : > { %2002 = vmatprep.subr.bf16.mxu1 %v2425_v3  ;;  %v1814_v13 = vld [vmem:[#allocation10] ss:$0 sm:$0xff] }
  0xd3   : > { %1883 = vmatmul.mubr.msk.f32.vlgmr.msra.gmra.mrb[0].mxu0 %vm726_vm2, %v716_v16 }
  0xd4   : > { %1912 = vmatprep.mubr.msk.f32.mxu0 %vm2426_vm1, %v2427_v12  ;;  %1992 = vmatpush3.bf16.msra.mxu0 %v1991_v60 }
  0xd5   : > { %1993 = vmatprep.subr.bf16.mxu0 %v2425_v3 }
  0xd8   : > { %1995 = vmatpush3.bf16.msra.mxu0 %v1994_v2  ;;  %v1282_v2 = vld [vmem:[%s3168_s27] sm:$0xff] }
  0xd9   : > { %1996 = vmatprep.subr.bf16.mxu0 %v2425_v3 }
  0xdc   : > { %1998 = vmatpush3.bf16.msra.mxu0 %v1997_v9 }
  0xdd   : > { %1999 = vmatprep.subr.bf16.mxu0 %v2425_v3 }
  0xe0   : > { %2001 = vmatpush3.bf16.msra.mxu0 %v2000_v14 }
  0xe1   : > { %2014 = vmatprep.subr.bf16.mxu0 %v2425_v3 }
 0x13b   : > { %v2837_v22 = vpop.permute.xlu0 %801 }
 0x13c   : > { %1894 = vmatmul.mubr.msk.f32.vlgmr.msra.gmra.mrb[0].mxu1 %vm726_vm2, %v2837_v22 }
 0x13d   : > { %2004 = vmatpush3.bf16.msra.mxu1 %v2003_v19  ;;  %1923 = vmatprep.mubr.msk.f32.mxu1 %vm2426_vm1, %v2427_v12 }
 0x13e   : > { %2005 = vmatprep.subr.bf16.mxu1 %v2425_v3 }
 0x141   : > { %2007 = vmatpush3.bf16.msra.mxu1 %v2006_v23 }
 0x142   : > { %2008 = vmatprep.subr.bf16.mxu1 %v2425_v3 }
 0x144   : > { %1924 = vmatmul.mubr.msk.f32.vlgmr.msra.gmra.mrb[2].mxu1 %vm726_vm2, %v716_v16 }
 0x145   : > { %2010 = vmatpush3.bf16.msra.mxu1 %v2009_v26  ;;  %1934 = vmatprep.mubr.msk.f32.mxu1 %vm2426_vm1, %v2427_v12 }
 0x146   : > { %2011 = vmatprep.subr.bf16.mxu1 %v2425_v3 }
 0x149   : > { %2013 = vmatpush3.bf16.msra.mxu1 %v2012_v29 }
 0x14a   : > { %2020 = vmatprep.subr.bf16.mxu1 %v2425_v3 }
 0x14c   : > { %1935 = vmatmul.mubr.msk.f32.vlgmr.msra.gmra.mrb[4].mxu1 %vm726_vm2, %v2781_v0 }
 0x14d   : > { %2022 = vmatpush3.bf16.msra.mxu1 %v2021_v32  ;;  %1956 = vmatprep.mubr.msk.f32.mxu1 %vm2426_vm1, %v2427_v12 }
 0x14e   : > { %2023 = vmatprep.subr.bf16.mxu1 %v2425_v3 }
 0x151   : > { %2025 = vmatpush3.bf16.msra.mxu1 %v2024_v35 }
 0x154   : > { %1957 = vmatmul.mubr.msk.f32.vlgmr.msra.gmra.mrb[6].mxu1 %vm726_vm2, %v2837_v22 }
 0x1a6   : > { %v796_v36 = vpop.f32.mrb[0].mxu0 }
 0x1a7   : > { %v1884_v37 = vpop.f32.mrb[1].mxu0 }
 0x1a8   : > { %v1096_v37 = vld [vmem:[%s3166_s26] sm:$0xff] }
 0x20f   : > { %v871_v38 = vpop.f32.mrb[0].mxu1 }
 0x210   : > { %v872_v40 = vadd.f32 %v871_v38, %v796_v36  ;;  %v1895_v41 = vpop.f32.mrb[1].mxu1  ;;  %v1097_v38 = vld [vmem:[%s3166_s26 + $0x8] sm:$0xff] }
 0x211   : > { %v1099_v41 = vld [vmem:[%s3166_s26 + $0x18] sm:$0xff] }
 0x212   : > { %v882_v42 = vadd.f32 %v1804_v39, %v872_v40  ;;  %v2015_v39 = vpack.c.bf16 %v1097_v38, %v1096_v37  ;;  %v1098_v40 = vld [vmem:[%s3166_s26 + $0x10] sm:$0xff] }
 0x214   : > { %v884_v43 = vsel %vm883_vm3, %v882_v42, -inf }
 0x215   : > { %885 = vmax.xlane.f32.xlu0 %v884_v43 }
 0x217   : > { %v2873_v44 = vpop.f32.mrb[2].mxu1 }
 0x218   : > { %v1925_v45 = vpop.f32.mrb[3].mxu1 }
 0x219   : > { %v1807_v45 = vld [vmem:[%s3167_s21] ss:$0 sm:$0xff] }
 0x21f   : > { %v2875_v46 = vpop.f32.mrb[4].mxu1 }
 0x220   : > { %v1936_v47 = vpop.f32.mrb[5].mxu1 }
 0x227   : > { %v2877_v48 = vpop.f32.mrb[6].mxu1 }
 0x228   : > { %v1958_v49 = vpop.f32.mrb[7].mxu1 }
 0x2a2   : > { %v886_v50 = vpop.xlane.xlu0 %885 }
 0x2a3   : > { %v887_v51 = vsub.f32 %v882_v42, %v886_v50  ;;  %v2018_v42 = vpack.c.bf16 %v1099_v41, %v1098_v40 }
 0x2a5   : > { %v888_v52 = vmul.f32 1.442695, %v887_v51 }
 0x2a7   : > { %2136 = vpow2.f32 %v888_v52  ;;  %v1810_v52 = vld [vmem:[#allocation5] ss:$0 sm:$0xff] }
 0x2b1   : > { %v2137_v53 = vpop.eup %2136 }
 0x2b2   : > { %v890_v54 = vsel %vm883_vm3, %v2137_v53, 0.0 }
 0x2b3   : > { %891 = vadd.xlane.f32.xlu1 %v890_v54 }
 0x340   : > { %v892_v55 = vpop.xlane.xlu1 %891 }
 0x341   : > { %2138 = vrcp.f32 %v892_v55 }
 0x34b   : > { %v2139_v1 = vpop.eup %2138 }
 0x34c   : > { %v894_v4 = vmul.f32 %v2139_v1, %v2137_v53 }
 0x34e   : > { %v899_v5 = vrot.slane %v894_v4, %v898_v61  ;;  %895 = vst.msk [vmem:[#allocation15] sm:$0x3] %vm883_vm3, %v894_v4  ;;  %v906_v10 = vrot.slane %v894_v4, %v905_v6  ;;  %v1283_v4 = vld [vmem:[%s3168_s27 + $0x8] sm:$0xff] }
 0x34f   : > { %v2027_v6 = vpack.c.bf16 %v1283_v4, %v1282_v2 }
 0x350   : > { %901 = vbcast.lane.b32.xlu1 %v899_v5, 256  ;;  %v1284_v5 = vld [vmem:[%s3168_s27 + $0x10] sm:$0xff] }
 0x354   : > { %908 = vbcast.lane.b32.xlu1 %v906_v10, 256 }
 0x3c2   : > { %v902_v16 = vpop.permute.xlu1 %901 }
 0x3c3   : > { %v912_v17 = vmul.f32 %v910_v15, %v902_v16 }
 0x3c5   : > { %v915_v19 = vsel %vm914_vm4, %v912_v17, 0.0 }
 0x3c6   : > { %v916_v20 = vrot.slane %v915_v19, 4  ;;  %v909_v21 = vpop.permute.xlu1 %908 }
 0x3c7   : > { %v913_v23 = vmul.f32 %v911_v18, %v909_v21 }
 0x3c8   : > { %v917_v24 = vadd.f32 %v916_v20, %v915_v19 }
 0x3c9   : > { %v922_v25 = vsel %vm914_vm4, %v913_v23, 0.0 }
 0x3ca   : > { %v918_v26 = vrot.slane %v917_v24, 2  ;;  %v923_v27 = vrot.slane %v922_v25, 4 }
 0x3cc   : > { %v919_v28 = vadd.f32 %v918_v26, %v917_v24  ;;  %v924_v29 = vadd.f32 %v923_v27, %v922_v25 }
 0x3ce   : > { %v925_v30 = vrot.slane %v924_v29, 2  ;;  %v920_v31 = vrot.slane %v919_v28, 1 }
 0x3d0   : > { %v926_v32 = vadd.f32 %v925_v30, %v924_v29  ;;  %v921_v34 = vadd.f32 %v920_v31, %v919_v28  ;;  %v2431_v29 = vmov 1966171168  }
 0x3d2   : > { %v927_v33 = vrot.slane %v926_v32, 1 }
 0x3d4   : > { %v928_v35 = vadd.f32 %v927_v33, %v926_v32 }
 0x3d6   : > { %v944_v36 = vsel %vm943_vm5, %v928_v35, %v921_v34 }
 0x3d7   : > { %1913 = vmatmul.mubr.msk.f32.vlgmr.msra.gmra.mrb[2].mxu0 %vm914_vm4, %v944_v36 }
 0x3d8   : > { %1945 = vmatprep.mubr.msk.f32.mxu0 %vm2426_vm1, %v2427_v12  ;;  %2016 = vmatpush3.bf16.msra.mxu0 %v2015_v39 }
 0x3d9   : > { %2017 = vmatprep.subr.bf16.mxu0 %v2425_v3 }
 0x3dc   : > { %2019 = vmatpush3.bf16.msra.mxu0 %v2018_v42 }
 0x3dd   : > { %2026 = vmatprep.subr.bf16.mxu0 %v2425_v3 }
 0x4aa   : > { %v1013_v43 = vpop.f32.mrb[2].mxu0 }
 0x4ab   : > { %v1084_v47 = vadd.f32 %v2873_v44, %v1013_v43  ;;  %v1914_v49 = vpop.f32.mrb[3].mxu0 }
 0x4ad   : > { %v1094_v50 = vadd.f32 %v1807_v45, %v1084_v47 }
 0x4af   : > { %v1095_v51 = vmax.f32 %v1094_v50, 0.0 }
 0x4b1   : > { %1946 = vmatmul.mubr.msk.f32.vlgmr.msra.gmra.mrb[4].mxu0 %vm726_vm2, %v1095_v51 }
 0x4b2   : > { %1967 = vmatprep.mubr.msk.f32.mxu0 %vm2426_vm1, %v2427_v12  ;;  %2028 = vmatpush3.bf16.msra.mxu0 %v2027_v6 }
 0x4b3   : > { %2029 = vmatprep.subr.bf16.mxu0 %v2425_v3 }
 0x584   : > { %v1246_v53 = vpop.f32.mrb[4].mxu0 }
 0x585   : > { %v1247_v54 = vadd.f32 %v1246_v53, %v2875_v46  ;;  %v1947_v55 = vpop.f32.mrb[5].mxu0 }
 0x587   : > { %v1256_v56 = vadd.f32 %v1810_v52, %v1247_v54 }
 0x589   : > { %2140 = vtanh.f32 %v1256_v56  ;;  %v1811_v44 = vmul.f32 -1.442695, %v1256_v56 }
 0x58b   : > { %2142 = vpow2.f32 %v1811_v44 }
 0x593   : > { %v2141_v58 = vpop.eup %2140 }
 0x594   : > { %1267 = vrot.lane.b32.xlu1 %v2141_v58, %s2429_s17 }
 0x595   : > { %v2143_v59 = vpop.eup %2142 }
 0x596   : > { %v1260_v60 = vadd.f32 1.0, %v2143_v59 }
 0x598   : > { %2144 = vrcp.f32 %v1260_v60 }
 0x5a2   : > { %v2145_v61 = vpop.eup %2144 }
 0x5a3   : > { %v1265_v12 = vmul.f32 %v2145_v61, %v2837_v22  ;;  %v1285_v22 = vld [vmem:[%s3168_s27 + $0x18] sm:$0xff] }
 0x5a4   : > { %v2030_v7 = vpack.c.bf16 %v1285_v22, %v1284_v5 }
 0x5a6   : > { %2031 = vmatpush3.bf16.msra.mxu0 %v2030_v7 }
 0x606   : > { %v1268_v62 = vpop.permute.xlu1 %1267 }
 0x607   : > { %v1270_v63 = vmul.f32 %v2145_v61, %v1268_v62 }
 0x609   : > { %1272 = vrot.lane.b32.xlu1 %v1270_v63, %s2430_s15 }
 0x67b   : > { %v1273_v46 = vpop.permute.xlu1 %1272 }
 0x67c   : > { %v1275_v1 = vadd.f32 %v1273_v46, %v1265_v12 }
 0x67e   : > { %2146 = vtanh.f32 %v1275_v1 }
 0x688   : > { %v2147_v8 = vpop.eup %2146 }
 0x689   : > { %1278 = vrot.lane.b32.xlu1 %v2147_v8, %s2429_s17 }
 0x6fb   : > { %v1279_v9 = vpop.permute.xlu1 %1278 }
 0x6fc   : > { %v1281_v10 = vmul.f32 %v2145_v61, %v1279_v9 }
 0x6fe   : > { %1362 = vrot.lane.b32.xlu0 %v1281_v10, %s2430_s15 }
 0x702   : > { %1480 = vrot.lane.b32.xlu0 %v1275_v1, %s2430_s15 }
 0x770   : > { %v1363_v11 = vpop.permute.xlu0 %1362 }
 0x771   : > { %1472 = vst.msk [vmem:[%s3169_s5] sm:$0x3] %vm1471_vm6, %v1363_v11  ;;  %1968 = vmatmul.mubr.msk.f32.vlgmr.msra.gmra.mrb[6].mxu0 %vm726_vm2, %v1363_v11 }
 0x774   : > { %v1481_v38 = vpop.permute.xlu0 %1480 }
 0x844   : > { %v1432_v3 = vpop.f32.mrb[6].mxu0 }
 0x845   : > { %v1433_v14 = vadd.f32 %v1432_v3, %v2877_v48  ;;  %v1969_v15 = vpop.f32.mrb[7].mxu0 }
 0x847   : > { %v1442_v16 = vadd.f32 %v1814_v13, %v1433_v14 }
 0x849   : > { %2148 = vtanh.f32 %v1442_v16  ;;  %v1815_v18 = vmul.f32 -1.442695, %v1442_v16 }
 0x84b   : > { %2150 = vpow2.f32 %v1815_v18 }
 0x853   : > { %v2149_v17 = vpop.eup %2148 }
 0x854   : > { %1455 = vrot.lane.b32.xlu1 %v2149_v17, %s2429_s17 }
 0x855   : > { %v2151_v19 = vpop.eup %2150 }
 0x856   : > { %v1446_v20 = vadd.f32 1.0, %v2151_v19 }
 0x858   : > { %1450 = vrot.lane.b32.xlu1 %v2781_v0, %s2429_s17  ;;  %2152 = vrcp.f32 %v1446_v20  ;;  %v1494_v0 = vunpack.c.l.s4 %v2431_v29 }
 0x85a   : > { %v1495_v30 = vunpack.c.0.s8 %v1494_v0 }
 0x85c   : > { %v1498_v32 = vsub.s32 %v1495_v30, %v2880_v57 }
 0x862   : > { %v2153_v21 = vpop.eup %2152 }
 0x8c6   : > { %v1456_v23 = vpop.permute.xlu1 %1455 }
 0x8c7   : > { %v1458_v24 = vmul.f32 %v2153_v21, %v1456_v23 }
 0x8c9   : > { %1460 = vrot.lane.b32.xlu1 %v1458_v24, %s2430_s15 }
 0x8ca   : > { %v1451_v48 = vpop.permute.xlu1 %1450 }
 0x8cb   : > { %v1453_v25 = vmul.f32 %v2153_v21, %v1451_v48 }
 0x93b   : > { %v1461_v26 = vpop.permute.xlu1 %1460 }
 0x93c   : > { %v1463_v27 = vadd.f32 %v1461_v26, %v1453_v25 }
 0x93e   : > { %2154 = vtanh.f32 %v1463_v27 }
 0x948   : > { %v2155_v28 = vpop.eup %2154 }
 0x949   : > { %1466 = vrot.lane.b32.xlu1 %v2155_v28, %s2429_s17 }
 0x9bb   : > { %v1467_v31 = vpop.permute.xlu1 %1466 }
 0x9bc   : > { %v1469_v33 = vmul.f32 %v2153_v21, %v1467_v31 }
 0x9be   : > { %v1491_v34 = vpack.c.bf16 %v1469_v33, %v1469_v33  ;;  %1474 = vrot.lane.b32.xlu1 %v1469_v33, %s2429_s17 }
 0x9c0   : > { %v1499_v35 = vrot.slane %v1491_v34, %v1498_v32 }
 0x9c2   : > { %1486 = vrot.lane.b32.xlu1 %v1463_v27, %s2429_s17  ;;  %v1506_v36 = vrot.slane %v1499_v35, %v1498_v32 }
 0x9c4   : > { %1507 = vrot.lane.b32.xlu0 %v1506_v36, %s2430_s15 }
 0xa30   : > { %v1475_v37 = vpop.permute.xlu1 %1474 }
 0xa31   : > { %1478 = vst.msk [vmem:[%s3169_s5] sm:$0x3] %vm1477_vm7, %v1475_v37 }
 0xa32   : > { %1484 = vst.msk [vmem:[%s3169_s5] sm:$0x3] %vm1483_vm8, %v1481_v38 }
 0xa34   : > { %v1487_v57 = vpop.permute.xlu1 %1486 }
 0xa35   : > { %1490 = vst.msk [vmem:[%s3169_s5] sm:$0x3] %vm1489_vm9, %v1487_v57 }
 0xa36   : > { %v1508_v39 = vpop.permute.xlu0 %1507 }
 0xa37   : > { %1511 = vst.msk [vmem:[#allocation2] sm:$0x1] %vm1510_vm10, %v1508_v39 }
 0xa38 PF: > { %v2157_v40 = vld [vmem:[%s2766_s9] sm:$0xff]   ;;  %v2432_v41 = vmov 0.0   ;;  %v2158_v42 = vld [vmem:[%s2766_s9 + $0x8] sm:$0xff]   ;;  %vm2433_vm11 = vmmov 0   ;;  %vm1539_vm12 = vcmask 261120   ;;  %vm1584_vm13 = vcmask 1041408  }
 0xa39   : > { %1970 = vmatprep.subr.bf16.mxu0 %v2432_v41  ;;  %1974 = vmatprep.mubr.msk.bf16.mxu0 %vm2433_vm11, %v2432_v41  ;;  %v1816_v45 = vld [vmem:[%s650_s25] ss:$0 sm:$0xff]  ;;  %v2434_v54 = vmov 0   ;;  %v1588_v55 = vld [vmem:[#allocation3] sm:$0x3]  ;;  %vm1607_vm14 = vcmask 1024  }
 0xa3a   : > { %1971 = vmatpush3.bf16.msra.mxu0 %v2157_v40  ;;  %2156 = vset.pattern.permute.xlu0 %v2434_v54  ;;  %v1589_v1 = vld [vmem:[#allocation4] sm:$0x3]  ;;  %p1820_p3 = scmp.ne.s32.totalorder %s2563_s2, 1 }
 0xa3b   : > { %1972 = vmatprep.subr.bf16.mxu0 %v2432_v41  ;;  %s3170_s15 = sld [smem:[#allocation42_spill]] (!%p1820_p3) }
 0xa3e   : > { %1973 = vmatpush3.bf16.msra.mxu0 %v2158_v42  ;;  %v1515_v43 = vld [vmem:[#allocation2] sm:$0x1] }
 0xa41   : > { %1975 = vmatmul.mubr.msk.bf16.vlgmr.msra.gmra.mrb[0].mxu0 %vm1539_vm12, %v1515_v43 }
 0xb14   : > { %v1577_v47 = vpop.f32.mrb[0].mxu0 }
 0xb15   : > { %v1578_v49 = vadd.f32 %v1816_v45, %v1577_v47  ;;  %v1976_v50 = vpop.f32.mrb[1].mxu0 }
 0xb16   : > { %v1580_v51 = vpop.f32.mrb[2].mxu0 }
 0xb17   : > { %1583 = vst [vmem:[%s2774_s13] sm:$0x3] %v1578_v49  ;;  %v1977_v52 = vpop.f32.mrb[3].mxu0  ;;  %v1585_v53 = vsel %vm1584_vm13, %v1578_v49, -inf }
 0xb18   : > { %1586 = vmax.xlane.f32.xlu0 %v1585_v53 }
 0xba5   : > { %v1587_v56 = vpop.xlane.xlu0 %1586 }
 0xba6   : > { %v1590_v58 = vmax.f32 %v1588_v55, %v1587_v56 }
 0xba8   : > { %v1591_v44 = vsub.f32 %v1588_v55, %v1590_v58  ;;  %1608 = vst.msk [vmem:[#allocation3] sm:$0x3] %vm1607_vm14, %v1590_v58  ;;  %1597 = vperm.xlu0 %2156, %v1590_v58  }
 0xbaa   : > { %v1592_v12 = vmul.f32 1.442695, %v1591_v44 }
 0xbaf   : > { %v1614_v7 = vld [vmem:[#allocation3] sm:$0x3] (!%p1820_p3) }
 0xc27   : > { %v1598_v59 = vpop.permute.xlu0 %1597 }
 0xc28   : > { %v1600_v60 = vsub.f32 %v1578_v49, %v1598_v59 }
 0xc2a   : > { %v1601_v61 = vmul.f32 1.442695, %v1600_v60 }
 0xc2c   : > { %2159 = vpow2.f32 %v1601_v61 }
 0xc2d   : > { %2161 = vpow2.f32 %v1592_v12 }
 0xc36   : > { %v2160_v62 = vpop.eup %2159 }
 0xc37   : > { %v1603_v63 = vsel %vm1584_vm13, %v2160_v62, 0.0  ;;  %v2162_v46 = vpop.eup %2161 }
 0xc38   : > { %1604 = vadd.xlane.f32.xlu1 %v1603_v63  ;;  %v1594_v2 = vmul.f32 %v2162_v46, %v1589_v1 }
 0xcc2   : > { %1613 = sbr.rel (%p1820_p3) target bundleno = 3296 (0xce0), region = 116 }
 0xcc5   : > { %v1605_v4 = vpop.xlane.xlu1 %1604 }
 0xcc6   : > { %v1606_v5 = vadd.f32 %v1605_v4, %v1594_v2 }
 0xcc8   : > { %1609 = vst.msk [vmem:[#allocation4] sm:$0x3] %vm1607_vm14, %v1606_v5 }
 0xccf   : > { %v1615_v6 = vld [vmem:[#allocation4] sm:$0x3] }
 0xcd0   : > { %2163 = vlog2.f32 %v1615_v6 }
 0xcda   : > { %v2164_v22 = vpop.eup %2163 }
 0xcdb   : > { %v1617_v8 = vmul.f32 0.6931472, %v2164_v22 }
 0xcdd   : > { %v1618_v9 = vadd.f32 %v1617_v8, %v1614_v7 }
 0xcdf   : > { %1619 = vst.msk [vmem:[%s3170_s15] sm:$0x3] %vm1607_vm14, %v1618_v9 }
 0xce0 PF: > { %s3171_s1 = sld [smem:[#allocation25_spill]]  ;;  %s1822_s18 = sshll.u32 %s2563_s2, 5 }
 0xce1   : > { %s3172_s7 = sld [smem:[#allocation39_spill]]  ;;  %s1634_s8 = sshll.u32 %s2774_s13, 4  ;;  %s1635_s8 = int_to_ptr.vmem [resolvable:$true] %s1634_s8 }
 0xce2   : > { %s1621_s3 = scalar_lea.sflag [#allocation7], %s2763_s19  ;;  %s2309_s12 = scalar_lea.vmem %s1635_s8, 32 }
 0xce3   : > { %p2310_p8 = scmp.ne.s32.totalorder %s1635_s8, %s2309_s12  ;;  %s2435_s17 = smov [#allocation14]  }
 0xce4   : > { %s2313_s9 = sshll.u32 %s2435_s17, 4  ;;  %s2314_s9 = int_to_ptr.vmem [resolvable:$false] %s2313_s9 }
 0xce5   : > { %s2315_s25 = scalar_lea.vmem %s2314_s9, 64  ;;  %p2316_p0 = scmp.lt.s32.totalorder %s1635_s8, %s2314_s9 }
 0xce6   : > { %p3173_p10 = scmp.ne.s32.totalorder %s3171_s1, 0  ;;  %p2317_p11 = scmp.lt.s32.totalorder %s2315_s25, %s2309_s12 }
 0xce7   : > { %s3006_s29 = scalar_lea.hbm %s3172_s7, %s1822_s18 }
 0xce8   : > { %p2311_p13 = pnand %p2310_p8, %p3173_p10  ;;  %p2318_p2 = por %p2317_p11, %p2316_p0 }
 0xcea   : > { %p2312_p9 = pneg %p2311_p13 }
 0xcec   : > { %p2319_p4 = pnand %p2318_p2, %p2312_p9 }
 0xcee   : > { %2322 = shalt.err (!%p2319_p4)
}
 0xcef   : > { %s2323_s19 = scalar_lea.hbm %s3006_s29, 32  ;;  %s2327_s18 = scalar_lea.hbm %s3172_s7, 64 }
 0xcf0   : > { %p2324_p7 = scmp.ne.s32.totalorder %s3006_s29, %s2323_s19  ;;  %p2328_p6 = scmp.lt.u32.totalorder %s3006_s29, %s3172_s7 }
 0xcf1   : > { %p2329_p1 = scmp.lt.u32.totalorder %s2327_s18, %s2323_s19  ;;  %p2331_p8 = scmp.lt.u32.totalorder %s2323_s19, %s3006_s29 }
 0xcf2   : > { %p2325_p5 = pnand %p2324_p7, %p3173_p10 }
 0xcf3   : > { %p2330_p3 = por %p2329_p1, %p2328_p6 }
 0xcf4   : > { %p2326_p12 = pneg %p2325_p5 }
 0xcf5   : > { %p2332_p13 = por %p2331_p8, %p2330_p3 }
 0xcf7   : > { %p2333_p9 = pnand %p2332_p13, %p2326_p12 }
 0xcf9   : > { %2336 = shalt.err (!%p2333_p9)
}
 0xcfa   : > { %2048 = dma.vmem_to_hbm [thread:$0]  (%p3173_p10), %s1635_s8, 32, %s3006_s29, %s1621_s3  }
 0xcfb   : > { %s2436_s12 = smov [#allocation15]   ;;  %p3174_p11 = scmp.eq.s32.totalorder %s2563_s2, 1 }
 0xcfc   : > { %s1648_s17 = sshll.u32 %s2436_s12, 4  ;;  %s1649_s17 = int_to_ptr.vmem [resolvable:$true] %s1648_s17 }
 0xcfd   : > { %s2337_s9 = scalar_lea.vmem %s1649_s17, 32  ;;  %p2344_p7 = scmp.lt.s32.totalorder %s1649_s17, %s1649_s17 }
 0xcfe   : > { %p2338_p0 = scmp.ne.s32.totalorder %s1649_s17, %s2337_s9  ;;  %p2345_p5 = scmp.lt.s32.totalorder %s2337_s9, %s2337_s9 }
 0xd00   : > { %p2339_p2 = pnand %p2338_p0, %p3174_p11  ;;  %p2346_p6 = por %p2345_p5, %p2344_p7 }
 0xd02   : > { %p2340_p4 = pneg %p2339_p2 }
 0xd04   : > { %p2347_p1 = pnand %p2346_p6, %p2340_p4 }
 0xd06   : > { %2350 = shalt.err (!%p2347_p1)
}
 0xd07   : > { %s3175_s13 = sld [smem:[#allocation41_spill]]  ;;  %p3176_p12 = pmov %p3174_p11 }
 0xd0d   : > { %s2351_s1 = scalar_lea.hbm %s3175_s13, 32 }
 0xd0e   : > { %p2352_p10 = scmp.ne.s32.totalorder %s3175_s13, %s2351_s1  ;;  %p2357_p13 = scmp.lt.u32.totalorder %s2351_s1, %s3175_s13 }
 0xd10   : > { %p2353_p3 = pnand %p2352_p10, %p3176_p12 }
 0xd12   : > { %p2354_p8 = pneg %p2353_p3 }
 0xd14   : > { %p2359_p9 = pnand %p2357_p13, %p2354_p8 }
 0xd16   : > { %2362 = shalt.err (!%p2359_p9)
}
 0xd17   : > { %p3177_p0 = pmov %p3174_p11 }
 0xd19   : > { %2050 = dma.vmem_to_hbm [thread:$0]  (%p3177_p0), %s1649_s17, 32, %s3175_s13, [#allocation16]  }
 0xd1a   : > { %p3178_p11 = pmov %p3177_p0 }
 0xd1b   : > { %p3179_p2 = pmov %p3177_p0 }
 0xd1c   : > { %2392 = dma.done.wait (%p3178_p11), [#allocation16], 32  }
 0xd1d   : > { %2394 = vsyncadd (%p3179_p2), [#allocation16], 4294967264 }
 0xd1e PF: > { %s3180_s21 = sld [smem:[#allocation22_spill]]  ;;  %s3181_s12 = sld [smem:[#allocation26_spill]] }
 0xd1f   : > { %p3183_p7 = scmp.ge.s32.totalorder %s2413_s24, 2 }
 0xd24   : > { %s1673_s9 = sand.u32 1, %s3180_s21   ;;  %p3182_p4 = scmp.ne.s32.totalorder %s3181_s12, 0 }
 0xd25   : > { %s1674_s25 = scalar_lea.sflag [#allocation7], %s1673_s9 }
 0xd26   : > { %p2072_p5 = pnand %p3183_p7, %p3182_p4 }
 0xd28   : > { %2396 = dma.done.wait (!%p2072_p5), %s1674_s25, 32  }
 0xd29   : > { %2398 = vsyncadd (!%p2072_p5), %s1674_s25, 4294967264  ;;  %s3184_s24 = sld [smem:[#allocation23_spill]]  ;;  %s3185_s17 = sld [smem:[#allocation24_spill]] }
 0xd2a   : > { %s3186_s1 = smov %s2405_s22  ;;  %s3187_s22 = smov %s2409_s23 }
 0xd2f   : > { %p37_p6 = scmp.ge.s32.totalorder %s3184_s24, 4   ;;  %s3188_s23 = smov %s3185_s17 }
 0xd31   :  { %39 = sbr.rel (!%p37_p6) target bundleno = 25 (0x19), region = 189 }
 0xd38   :  { %1679 = vsyncpa [#allocation6], 1 }
 0xd39   :  { %1681 = vsyncpa [#allocation6 + $0x1], 1 }
 0xd3a   :  { %1682 = vsyncpa [#allocation9], 1 }
 0xd3b   :  { %1683 = vsyncpa [#allocation12], 1 }
 0xd3c   :  { %1685 = vsyncpa [#allocation12 + $0x1], 1 }
 0xd3d   :  { %1686 = vsyncpa [#allocation7], 1 }
 0xd3e   :  { %1688 = vsyncpa [#allocation7 + $0x1], 1 }
 0xd3f   :  { %1689 = vsyncpa [#allocation16], 1 }

// kernel: tpu_custom_call.1
= control target key start
LH: loop header
LB: loop body
LE: loop exit
PB: predicated region body
PF: predicated region fallthrough
CT: control target
= control target key end

     0   :  { %s3067_s0 = inlined_call_operand.vmem [shape: f32[2,32], index: 0, kind: input, shape index: {}]   ;;  %s3068_s1 = inlined_call_operand.vmem [shape: f32[2,128], index: 1, kind: input, shape index: {}, may-alias: {1,18}]   ;;  %s3069_s2 = inlined_call_operand.vmem [shape: f32[2,8,64], index: 2, kind: input, shape index: {}]   ;;  %s3070_s3 = inlined_call_operand.vmem [shape: f32[32,8], index: 3, kind: input, shape index: {}]   ;;  %s3071_s4 = inlined_call_operand.vmem [shape: f32[32,8], index: 4, kind: input, shape index: {}]   ;;  %s3072_s5 = inlined_call_operand.vmem [shape: f32[1,8], index: 5, kind: input, shape index: {}]   ;;  %s3073_s6 = inlined_call_operand.vmem [shape: f32[32,32], index: 6, kind: input, shape index: {}]   ;;  %s3074_s7 = inlined_call_operand.vmem [shape: f32[64,32], index: 7, kind: input, shape index: {}]   ;;  %s3075_s8 = inlined_call_operand.vmem [shape: f32[1,32], index: 8, kind: input, shape index: {}]   ;;  %s3076_s9 = inlined_call_operand.vmem [shape: f32[32,128], index: 9, kind: input, shape index: {}]   ;;  %s3077_s10 = inlined_call_operand.vmem [shape: f32[32,128], index: 10, kind: input, shape index: {}]   ;;  %s3078_s11 = inlined_call_operand.hbm [shape: f32[1,128], index: 11, kind: input, shape index: {}]   ;;  %s3079_s12 = inlined_call_operand.vmem [shape: f32[32,128], index: 12, kind: input, shape index: {}]   ;;  %s3080_s13 = inlined_call_operand.hbm [shape: f32[32,128], index: 13, kind: input, shape index: {}]   ;;  %s3081_s14 = inlined_call_operand.hbm [shape: f32[1,128], index: 14, kind: input, shape index: {}]   ;;  %s3082_s15 = inlined_call_operand.hbm [shape: bf16[32,256], index: 15, kind: input, shape index: {}]   ;;  %s3083_s16 = inlined_call_operand.hbm [shape: f32[1,256], index: 16, kind: input, shape index: {}]   ;;  %s3084_s17 = inlined_call_operand.hbm [shape: f32[2,256], index: 17, kind: output, shape index: {0}]   ;;  %s3085_s18 = inlined_call_operand.vmem [shape: f32[2,128], index: 18, kind: output, shape index: {1}, may-alias: {1,18}]   ;;  %s3086_s19 = inlined_call_operand.hbm [shape: f32[2,8], index: 19, kind: output, shape index: {2}]   ;;  %s3087_s20 = inlined_call_operand.vmem [shape: f32[2,1], index: 20, kind: output, shape index: {3}]  }
   0x1   :  { %3114 = sst [smem:[#allocation27_spill]] %s3067_s0 }
   0x2   :  { %3115 = sst [smem:[#allocation28_spill]] %s3068_s1 }
   0x3   :  { %3116 = sst [smem:[#allocation29_spill]] %s3069_s2 }
   0x4   :  { %3117 = sst [smem:[#allocation30_spill]] %s3070_s3 }
   0x5   :  { %3118 = sst [smem:[#allocation31_spill]] %s3071_s4 }
   0x6   :  { %3119 = sst [smem:[#allocation32_spill]] %s3072_s5 }
   0x7   :  { %3120 = sst [smem:[#allocation33_spill]] %s3074_s7 }
   0x8   :  { %3121 = sst [smem:[#allocation34_spill]] %s3075_s8 }
   0x9   :  { %3122 = sst [smem:[#allocation35_spill]] %s3076_s9 }
   0xa   :  { %3123 = sst [smem:[#allocation36_spill]] %s3079_s12 }
   0xb   :  { %3124 = sst [smem:[#allocation37_spill]] %s3080_s13 }
   0xc   :  { %3125 = sst [smem:[#allocation38_spill]] %s3082_s15 }
   0xd   :  { %3126 = sst [smem:[#allocation39_spill]] %s3084_s17 }
   0xe   :  { %3127 = sst [smem:[#allocation40_spill]] %s3085_s18 }
   0xf   :  { %3128 = sst [smem:[#allocation41_spill]] %s3086_s19 }
  0x10   :  { %3129 = sst [smem:[#allocation42_spill]] %s3087_s20 }
  0x11   :  { %26 = vsyncpa [#allocation6], 0 }
  0x12   :  { %27 = vsyncpa [#allocation9], 0 }
  0x13   :  { %28 = vsyncpa [#allocation12], 0 }
  0x14   :  { %30 = vsyncpa [#allocation12 + $0x1], 0 }
  0x15   :  { %31 = vsyncpa [#allocation7], 0 }
  0x16   :  { %33 = vsyncpa [#allocation7 + $0x1], 0 }
  0x17   :  { %34 = vsyncpa [#allocation16], 0  ;;  %s2542_s1 = smov 0   ;;  %s2544_s22 = smov 0  }
  0x18   :  { %s2546_s23 = smov 0   ;;  %s2548_s24 = smov 0  }
  0x19 LB: > { %3130 = sst [smem:[#allocation22_spill]] %s2401_s1  ;;  %s2563_s2 = sadd.s32 4294967295, %s2413_s24   ;;  %s2413_s24 = sphi %s2548_s24, %s3184_s24   ;;  %s2409_s23 = sphi %s2546_s23, %s3188_s23   ;;  %s2405_s22 = sphi %s2544_s22, %s3187_s22   ;;  %s2401_s1 = sphi %s2542_s1, %s3186_s1  }
  0x1a   : > { %s1786_s25 = sadd.s32 4294967294, %s2413_s24   ;;  %s2567_s3 = sadd.s32 1, %s2413_s24  }
  0x1b   : > { %3131 = sst [smem:[#allocation23_spill]] %s2567_s3  ;;  %s362_s26 = sadd.s32 1, %s2409_s23 }
  0x1c   : > { %s359_s27 = ssub.s32 %s2413_s24, %s2567_s3  ;;  %p369_p0 = scmp.ne.s32.totalorder %s2409_s23, %s2405_s22 }
  0x1d   : > { %p360_p1 = scmp.eq.s32.totalorder %s359_s27, 0  ;;  %p370_p2 = scmp.eq.s32.totalorder %s2413_s24, 0 }
  0x1e   : > { %p375_p3 = scmp.ne.s32.totalorder %s2405_s22, %s2401_s1  ;;  %p3100_p4 = scmp.eq.s32.totalorder %s2563_s2, 0 }
  0x1f   : > { %s2579_s28 = scalar_select %p360_p1, %s2409_s23, %s362_s26  }
  0x20   : > { %p2581_p5 = por %p370_p2, %p369_p0  ;;  %p2587_p6 = por %p3100_p4, %p375_p3 }
  0x21   : > { %3132 = sst [smem:[#allocation24_spill]] %s2579_s28  ;;  %p3097_p7 = scmp.eq.s32.totalorder %s2563_s2, 1 }
  0x22   : > { %s3133_s4 = scalar_select %p2581_p5, 1, 0 }
  0x23   : > { %s3134_s29 = scalar_select %p2587_p6, 1, 0 }
  0x24   : > { %p431_p8 = scmp.eq.s32.totalorder %s1786_s25, 1  ;;  %p1787_p9 = scmp.ge.s32.totalorder %s2413_s24, 1 }
  0x25   : > { %p501_p10 = scmp.lt.s32.totalorder %s2413_s24, 3  ;;  %p2596_p11 = por %p3097_p7, %p369_p0 }
  0x26   : > { %p2600_p12 = por %p431_p8, %p375_p3  ;;  %s2415_s25 = smov [#allocation8]  }
  0x27   : > { %s3135_s30 = scalar_select %p2596_p11, 1, 0 }
  0x28   : > { %s3137_s0 = scalar_select %p2600_p12, 1, 0 }
  0x29   : > { %3136 = sst [smem:[#allocation25_spill]] %s3135_s30  ;;  %p2604_p13 = pnand %p1787_p9, %p501_p10 }
  0x2a   : > { %3138 = sst [smem:[#allocation26_spill]] %s3137_s0  ;;  %s560_s26 = sshll.u32 %s2415_s25, 4  ;;  %s561_s26 = int_to_ptr.vmem [resolvable:$true] %s560_s26 }
  0x2b   : > { %s3139_s21 = scalar_select %p2604_p13, 1, 0 }
  0x2c   : > { %p2054_p2 = pneg %p2604_p13  ;;  %s585_s28 = sand.u32 1, %s2413_s24  }
  0x2d   : > { %s3141_s13 = sld [smem:[#allocation37_spill]] }
  0x2e   : > { %p2613_p0 = pnand %p2054_p2, %p3100_p4 }
  0x30   : > { %s3140_s27 = scalar_select %p2613_p0, 1, 0 }
  0x31   : > { %p2628_p10 = pneg %p2613_p0 }
  0x33   : > { %s2165_s1 = scalar_lea.hbm %s3141_s13, 512 }
  0x34   : > { %p2166_p9 = scmp.ne.s32.totalorder %s3141_s13, %s2165_s1  ;;  %p2172_p3 = scmp.lt.u32.totalorder %s2165_s1, %s3141_s13 }
  0x36   : > { %p2168_p2 = pnand %p2628_p10, %p2166_p9 }
  0x38   : > { %p2169_p7 = pneg %p2168_p2 }
  0x3a   : > { %p2174_p1 = pnand %p2172_p3, %p2169_p7 }
  0x3c   : > { %2177 = shalt.err (!%p2174_p1)
}
  0x3d   : > { %s2178_s3 = scalar_lea.vmem %s561_s26, 512  ;;  %p2186_p11 = scmp.lt.s32.totalorder %s561_s26, %s561_s26 }
  0x3e   : > { %p2179_p4 = scmp.ne.s32.totalorder %s561_s26, %s2178_s3  ;;  %p2187_p6 = scmp.lt.s32.totalorder %s2178_s3, %s2178_s3 }
  0x40   : > { %p2181_p8 = pnand %p2179_p4, %p2628_p10  ;;  %p2188_p13 = por %p2187_p6, %p2186_p11 }
  0x42   : > { %p2182_p12 = pneg %p2181_p8 }
  0x44   : > { %p2189_p5 = pnand %p2188_p13, %p2182_p12 }
  0x46   : > { %2192 = shalt.err (!%p2189_p5)
}
  0x47   : > { %s2416_s17 = smov 128   ;;  %s2417_s19 = smov 8  }
  0x48   : > { %2060 = dma.hbm_to_vmem [thread:$0]  (!%p2613_p0), %s3141_s13, 512, %s561_s26, [#allocation9], %s2416_s17, %s2416_s17, %s2417_s19  }
  0x49   : > { %p3143_p4 = scmp.ne.s32.totalorder %s3133_s4, 0  ;;  %p3144_p7 = scmp.lt.s32.totalorder %s2413_s24, 2 }
  0x4a   : > { %s3107_s0 = sand.u32 1, %s2409_s23   ;;  %s1793_s18 = sshll.u32 %s2413_s24, 6 }
  0x4b   : > { %p2650_p6 = pnand %p3144_p7, %p3143_p4  ;;  %s1792_s3 = sshll.u32 %s3107_s0, 4 }
  0x4c   : > { %s3146_s15 = sld [smem:[#allocation38_spill]]  ;;  %s589_s4 = scalar_lea.vmem [#allocation11], %s1792_s3 }
  0x4d   : > { %s3145_s30 = scalar_select %p2650_p6, 1, 0 }
  0x4e   : > { %s595_s26 = sshll.u32 %s589_s4, 4  ;;  %s2665_s19 = scalar_lea.sflag [#allocation12], %s585_s28  ;;  %s2663_s26 = int_to_ptr.vmem [resolvable:$true] %s595_s26 }
  0x4f   : > { %p3111_p11 = pneg %p2650_p6 }
  0x52   : > { %s2661_s9 = scalar_lea.hbm %s3146_s15, %s1793_s18  ;;  %s2198_s18 = scalar_lea.hbm %s3146_s15, 512 }
  0x53   : > { %s2193_s20 = scalar_lea.hbm %s2661_s9, 256  ;;  %p2199_p1 = scmp.lt.u32.totalorder %s2661_s9, %s3146_s15 }
  0x54   : > { %p2194_p5 = scmp.ne.s32.totalorder %s2661_s9, %s2193_s20  ;;  %p2200_p3 = scmp.lt.u32.totalorder %s2198_s18, %s2193_s20 }
  0x55   : > { %p2202_p9 = scmp.lt.u32.totalorder %s2193_s20, %s2661_s9 }
  0x56   : > { %p2196_p12 = pnand %p3111_p11, %p2194_p5  ;;  %p2201_p8 = por %p2200_p3, %p2199_p1 }
  0x58   : > { %p2197_p13 = pneg %p2196_p12  ;;  %p2203_p2 = por %p2202_p9, %p2201_p8 }
  0x5a   : > { %p2204_p4 = pnand %p2203_p2, %p2197_p13 }
  0x5c   : > { %2207 = shalt.err (!%p2204_p4)
}
  0x5d   : > { %s2208_s28 = scalar_lea.vmem %s2663_s26, 256  ;;  %s2418_s3 = smov [#allocation11]  }
  0x5e   : > { %p2209_p7 = scmp.ne.s32.totalorder %s2663_s26, %s2208_s28  ;;  %s2213_s4 = sshll.u32 %s2418_s3, 4  ;;  %s2214_s4 = int_to_ptr.vmem [resolvable:$false] %s2213_s4 }
  0x5f   : > { %s2215_s0 = scalar_lea.vmem %s2214_s4, 512  ;;  %p2216_p0 = scmp.lt.s32.totalorder %s2663_s26, %s2214_s4 }
  0x60   : > { %p2211_p5 = pnand %p2209_p7, %p3111_p11  ;;  %p2217_p1 = scmp.lt.s32.totalorder %s2215_s0, %s2208_s28 }
  0x62   : > { %p2212_p12 = pneg %p2211_p5  ;;  %p2218_p3 = por %p2217_p1, %p2216_p0 }
  0x64   : > { %p2219_p8 = pnand %p2218_p3, %p2212_p12 }
  0x66   : > { %2222 = shalt.err (!%p2219_p8)
}
  0x67   : > { %s2419_s20 = smov 64   ;;  %s2420_s8 = smov 4  }
  0x68   : > { %2067 = dma.hbm_to_vmem [thread:$0]  (!%p2650_p6), %s2661_s9, 256, %s2663_s26, %s2665_s19, %s2416_s17, %s2419_s20, %s2420_s8  }
  0x69   : > { %s2421_s12 = smov [#allocation5]   ;;  %s2422_s1 = smov [#allocation10]  }
  0x6a   : > { %s547_s18 = sshll.u32 %s2421_s12, 4  ;;  %s574_s3 = sshll.u32 %s2422_s1, 4  ;;  %s548_s18 = int_to_ptr.vmem [resolvable:$true] %s547_s18  ;;  %s575_s3 = int_to_ptr.vmem [resolvable:$true] %s574_s3 }
  0x6b   : > { %s2223_s0 = scalar_lea.hbm %s3078_s11, 16 }
  0x6c   : > { %p2224_p0 = scmp.ne.s32.totalorder %s3078_s11, %s2223_s0  ;;  %p2230_p2 = scmp.lt.u32.totalorder %s2223_s0, %s3078_s11 }
  0x6e   : > { %p2226_p13 = pnand %p2224_p0, %p2628_p10 }
  0x70   : > { %p2227_p9 = pneg %p2226_p13 }
  0x72   : > { %p2232_p4 = pnand %p2230_p2, %p2227_p9 }
  0x74   : > { %2235 = shalt.err (!%p2232_p4)
}
  0x75   : > { %s2236_s9 = scalar_lea.vmem %s548_s18, 16  ;;  %s2243_s17 = scalar_lea.vmem %s548_s18, 32 }
  0x76   : > { %p2237_p7 = scmp.ne.s32.totalorder %s548_s18, %s2236_s9  ;;  %p2244_p1 = scmp.lt.s32.totalorder %s548_s18, %s548_s18 }
  0x77   : > { %p2245_p3 = scmp.lt.s32.totalorder %s2243_s17, %s2236_s9 }
  0x78   : > { %p2239_p5 = pnand %p2237_p7, %p2628_p10 }
  0x79   : > { %p2246_p8 = por %p2245_p3, %p2244_p1 }
  0x7a   : > { %p2240_p12 = pneg %p2239_p5 }
  0x7c   : > { %p2247_p11 = pnand %p2246_p8, %p2240_p12 }
  0x7e   : > { %2250 = shalt.err (!%p2247_p11)
}
  0x7f   : > { %p3147_p0 = scmp.ne.s32.totalorder %s3140_s27, 0  ;;  %s2251_s26 = scalar_lea.hbm %s3081_s14, 16 }
  0x80   : > { %p2252_p13 = scmp.ne.s32.totalorder %s3081_s14, %s2251_s26  ;;  %p2258_p11 = scmp.lt.u32.totalorder %s2251_s26, %s3081_s14 }
  0x81   : > { %2057 = dma.hbm_to_vmem [thread:$0]  (!%p3147_p0), %s3078_s11, 16, %s548_s18, [#allocation6]  }
  0x82   : > { %p2254_p9 = pnand %p2252_p13, %p2628_p10 }
  0x84   : > { %p2255_p2 = pneg %p2254_p9 }
  0x86   : > { %p2260_p4 = pnand %p2258_p11, %p2255_p2 }
  0x88   : > { %2263 = shalt.err (!%p2260_p4)
}
  0x89   : > { %s2264_s4 = scalar_lea.vmem %s575_s3, 16  ;;  %s2271_s18 = scalar_lea.vmem %s575_s3, 32 }
  0x8a   : > { %p2265_p7 = scmp.ne.s32.totalorder %s575_s3, %s2264_s4  ;;  %p2272_p1 = scmp.lt.s32.totalorder %s575_s3, %s575_s3 }
  0x8b   : > { %p2273_p3 = scmp.lt.s32.totalorder %s2271_s18, %s2264_s4 }
  0x8c   : > { %p2267_p5 = pnand %p2265_p7, %p2628_p10 }
  0x8d   : > { %p2274_p8 = por %p2273_p3, %p2272_p1 }
  0x8e   : > { %p2268_p12 = pneg %p2267_p5 }
  0x90   : > { %p2275_p6 = pnand %p2274_p8, %p2268_p12 }
  0x92   : > { %2278 = shalt.err (!%p2275_p6)
}
  0x93   : > { %2063 = dma.hbm_to_vmem [thread:$0]  (!%p3147_p0), %s3081_s14, 16, %s575_s3, [#allocation9]  }
  0x94   : > { %s1794_s9 = sshll.u32 %s2413_s24, 4  ;;  %s3148_s17 = sand.u32 1, %s2409_s23  }
  0x95   : > { %s608_s25 = scalar_lea.vmem [#allocation13], %s3148_s17  ;;  %s613_s7 = scalar_lea.hbm %s3083_s16, %s1794_s9 }
  0x96   : > { %s615_s13 = sshll.u32 %s608_s25, 4  ;;  %s2279_s26 = scalar_lea.hbm %s613_s7, 16  ;;  %s616_s13 = int_to_ptr.vmem [resolvable:$true] %s615_s13 }
  0x97   : > { %p2280_p10 = scmp.ne.s32.totalorder %s613_s7, %s2279_s26  ;;  %p3149_p6 = scmp.ne.s32.totalorder %s3145_s30, 0 }
  0x98   : > { %s2284_s8 = scalar_lea.hbm %s3083_s16, 32  ;;  %p2285_p0 = scmp.lt.u32.totalorder %s613_s7, %s3083_s16 }
  0x99   : > { %p3150_p13 = pneg %p3149_p6  ;;  %p2286_p11 = scmp.lt.u32.totalorder %s2284_s8, %s2279_s26 }
  0x9a   : > { %p2288_p7 = scmp.lt.u32.totalorder %s2279_s26, %s613_s7 }
  0x9b   : > { %p2282_p9 = pnand %p2280_p10, %p3150_p13  ;;  %p2287_p4 = por %p2286_p11, %p2285_p0 }
  0x9d   : > { %p2283_p2 = pneg %p2282_p9  ;;  %p2289_p5 = por %p2288_p7, %p2287_p4 }
  0x9f   : > { %p2290_p12 = pnand %p2289_p5, %p2283_p2 }
  0xa1   : > { %2293 = shalt.err (!%p2290_p12)
}
  0xa2   : > { %s2294_s1 = scalar_lea.vmem %s616_s13, 16  ;;  %p3151_p3 = pmov %p3150_p13 }
  0xa3   : > { %p2295_p1 = scmp.ne.s32.totalorder %s616_s13, %s2294_s1  ;;  %s2423_s4 = smov [#allocation13]  }
  0xa4   : > { %s2299_s18 = sshll.u32 %s2423_s4, 4  ;;  %s2300_s18 = int_to_ptr.vmem [resolvable:$false] %s2299_s18 }
  0xa5   : > { %p2297_p8 = pnand %p2295_p1, %p3151_p3  ;;  %s2301_s28 = scalar_lea.vmem %s2300_s18, 32 }
  0xa6   : > { %p2302_p13 = scmp.lt.s32.totalorder %s616_s13, %s2300_s18  ;;  %p2303_p9 = scmp.lt.s32.totalorder %s2301_s28, %s2294_s1 }
  0xa7   : > { %p2298_p10 = pneg %p2297_p8 }
  0xa8   : > { %p2304_p0 = por %p2303_p9, %p2302_p13 }
  0xaa   : > { %p2305_p11 = pnand %p2304_p0, %p2298_p10 }
  0xac   : > { %2308 = shalt.err (!%p2305_p11)
}
  0xad   : > { %2070 = dma.hbm_to_vmem [thread:$0]  (!%p3149_p6), %s613_s7, 16, %s616_s13, %s2665_s19  }
  0xae   : > { %p3152_p2 = scmp.ne.s32.totalorder %s3139_s21, 0 }
  0xaf   : > { %p3153_p4 = scmp.eq.s32.totalorder (!%p3152_p2), %s2563_s2, 0 }
  0xb0   : > { %624 = sbr.rel (%p3152_p2) target bundleno = 3358 (0xd1e), region = 88 }
  0xb7   : > { %2380 = dma.done.wait (%p3153_p4), [#allocation6], 16   ;;  %p3154_p7 = pmov %p3153_p4 }
  0xb8   : > { %p3155_p5 = pmov %p3153_p4 }
  0xb9   : > { %2382 = vsyncadd (%p3154_p7), [#allocation6], 4294967280 }
  0xba   : > { %2384 = dma.done.wait (%p3155_p5), [#allocation9], 528   ;;  %p3156_p12 = pmov %p3153_p4 }
  0xbb   : > { %s638_s30 = sand.u32 1, %s2563_s2   ;;  %s2763_s19 = sand.u32 1, %s2405_s22  }
  0xbc   : > { %2386 = vsyncadd (%p3156_p12), [#allocation9], 4294966768  ;;  %s1799_s21 = sshll.u32 %s2763_s19, 4  ;;  %s639_s0 = scalar_lea.sflag [#allocation12], %s638_s30 }
  0xbd   : > { %s2766_s9 = scalar_lea.vmem [#allocation11], %s1799_s21  ;;  %p3157_p6 = scmp.ne.s32.totalorder %s3134_s29, 0 }
  0xbf   : > { %2388 = dma.done.wait (%p3157_p6), %s639_s0, 272  }
  0xc0   : > { %2390 = vsyncadd (%p3157_p6), %s639_s0, 4294967024  ;;  %s1800_s17 = sshll.u32 %s2763_s19, 1  ;;  %s650_s25 = scalar_lea.vmem [#allocation13], %s2763_s19 }
  0xc1   : > { %s2774_s13 = scalar_lea.vmem [#allocation14], %s1800_s17  ;;  %p3158_p1 = scmp.ne.s32.totalorder %s2563_s2, 0 }
  0xc2   : > { %s3159_s7 = sld [smem:[#allocation28_spill]] (!%p3158_p1)  ;;  %s3160_s20 = sld [smem:[#allocation31_spill]] (!%p3158_p1)  ;;  %v2425_v3 = vmov (!%p3158_p1), 0.0|0.0   ;;  %vm1512_vm0 = vcmask (!%p3158_p1), 1024   ;;  %vm2426_vm1 = vmmov (!%p3158_p1), 0   ;;  %v2427_v12 = vmov (!%p3158_p1), 0.0  }
  0xc3   : > { %715 = sbr.rel (%p3158_p1) target bundleno = 2616 (0xa38), region = 112  ;;  %s2424_s3 = smov (!%p3158_p1), 96   ;;  %1978 = vmatprep.subr.bf16.mxu0 (!%p3158_p1), %v2425_v3  ;;  %1984 = vmatprep.subr.bf16.mxu1 (!%p3158_p1), %v2425_v3  ;;  %1514 = vst.msk [vmem:[#allocation4] sm:$0x3] (!%p3158_p1), %vm1512_vm0, %v2427_v12  ;;  %v2428_v14 = vmov (!%p3158_p1), -inf   ;;  %vm726_vm2 = vcmask (!%p3158_p1), 261120   ;;  %v896_v56 = vlaneseq (!%p3158_p1) }
  0xc4   : > { %s3161_s4 = sld [smem:[#allocation30_spill]] (!%p3158_p1)  ;;  %1882 = vmatprep.mubr.msk.f32.mxu0 (!%p3158_p1), %vm2426_vm1, %v2427_v12  ;;  %1513 = vst.msk [vmem:[#allocation3] sm:$0x3] (!%p3158_p1), %vm1512_vm0, %v2428_v14  ;;  %1893 = vmatprep.mubr.msk.f32.mxu1 (!%p3158_p1), %vm2426_vm1, %v2427_v12  ;;  %s3162_s8 = sld [smem:[#allocation27_spill]] (!%p3158_p1)  ;;  %v929_v17 = vld [vmem:[%s3073_s6] sm:$0xff] (!%p3158_p1)  ;;  %v930_v18 = vld [vmem:[%s3073_s6 + $0x8] sm:$0xff] (!%p3158_p1) }
  0xc5   : > { %v2003_v19 = vpack.c.bf16 (!%p3158_p1), %v930_v18, %v929_v17  ;;  %v931_v20 = vld [vmem:[%s3073_s6 + $0x10] sm:$0xff] (!%p3158_p1)  ;;  %v932_v21 = vld [vmem:[%s3073_s6 + $0x18] sm:$0xff] (!%p3158_p1)  ;;  %v1100_v24 = vld [vmem:[%s3077_s10] sm:$0xff] (!%p3158_p1)  ;;  %s3163_s1 = sld [smem:[#allocation32_spill]] (!%p3158_p1)  ;;  %vm883_vm3 = vcmask (!%p3158_p1), 58368   ;;  %v2880_v57 = vshrl.u32 (!%p3158_p1), %v896_v56, 7 }
  0xc6   : > { %v2006_v23 = vpack.c.bf16 (!%p3158_p1), %v932_v21, %v931_v20  ;;  %v1101_v25 = vld [vmem:[%s3077_s10 + $0x8] sm:$0xff] (!%p3158_p1)  ;;  %v1102_v27 = vld [vmem:[%s3077_s10 + $0x10] sm:$0xff] (!%p3158_p1)  ;;  %v1103_v28 = vld [vmem:[%s3077_s10 + $0x18] sm:$0xff] (!%p3158_p1)  ;;  %s3164_s30 = sld [smem:[#allocation33_spill]] (!%p3158_p1)  ;;  %s3165_s0 = sld [smem:[#allocation29_spill]] (!%p3158_p1)  ;;  %vm914_vm4 = vcmask (!%p3158_p1), 523264  }
  0xc7   : > { %v2009_v26 = vpack.c.bf16 (!%p3158_p1), %v1101_v25, %v1100_v24  ;;  %v2012_v29 = vpack.c.bf16 (!%p3158_p1), %v1103_v28, %v1102_v27  ;;  %v1286_v30 = vld [vmem:[#allocation8] sm:$0xff] (!%p3158_p1)  ;;  %v1287_v31 = vld [vmem:[#allocation8 + $0x8] sm:$0xff] (!%p3158_p1)  ;;  %v1288_v33 = vld [vmem:[#allocation8 + $0x10] sm:$0xff] (!%p3158_p1)  ;;  %v898_v61 = vsub.s32 (!%p3158_p1), 0, %v2880_v57  ;;  %vm943_vm5 = vcmask (!%p3158_p1), 1041409   ;;  %s3166_s26 = sld [smem:[#allocation35_spill]] (!%p3158_p1) }
  0xc8   : > { %v2781_v0 = vld [vmem:[%s3159_s7] sm:$0x3] (!%p3158_p1)  ;;  %v723_v2 = vld [vmem:[%s3160_s20 + $0x8] sm:$0xff] (!%p3158_p1)  ;;  %v724_v7 = vld [vmem:[%s3160_s20 + $0x10] sm:$0xff] (!%p3158_p1)  ;;  %v2021_v32 = vpack.c.bf16 (!%p3158_p1), %v1287_v31, %v1286_v30  ;;  %s3167_s21 = sld [smem:[#allocation34_spill]] (!%p3158_p1)  ;;  %s2429_s17 = smov (!%p3158_p1), 64  }
  0xc9   : > { %v722_v1 = vld [vmem:[%s3160_s20] sm:$0xff] (!%p3158_p1)  ;;  %801 = vrot.lane.b32.xlu0 (!%p3158_p1), %v2781_v0, %s2424_s3  ;;  %v725_v9 = vld [vmem:[%s3160_s20 + $0x18] sm:$0xff] (!%p3158_p1)  ;;  %s2430_s15 = smov (!%p3158_p1), 32   ;;  %s3168_s27 = sld [smem:[#allocation36_spill]] (!%p3158_p1)  ;;  %vm1471_vm6 = vcmask (!%p3158_p1), 254976   ;;  %vm1477_vm7 = vcmask (!%p3158_p1), 517376  }
  0xca   : > { %v1979_v4 = vpack.c.bf16 %v723_v2, %v722_v1  ;;  %v718_v5 = vld [vmem:[%s3161_s4] sm:$0xff]  ;;  %v719_v6 = vld [vmem:[%s3161_s4 + $0x8] sm:$0xff]  ;;  %v720_v10 = vld [vmem:[%s3161_s4 + $0x10] sm:$0xff]  ;;  %v1982_v13 = vpack.c.bf16 %v725_v9, %v724_v7  ;;  %s3169_s5 = sld [smem:[#allocation40_spill]]  ;;  %vm1483_vm8 = vcmask 779776   ;;  %vm1489_vm9 = vcmask 1042176  }
  0xcb   : > { %v1985_v8 = vpack.c.bf16 %v719_v6, %v718_v5  ;;  %v721_v11 = vld [vmem:[%s3161_s4 + $0x18] sm:$0xff]  ;;  %v716_v16 = vld [vmem:[%s3162_s8] sm:$0x3]  ;;  %v905_v6 = vsub.s32 1, %v2880_v57  ;;  %vm1510_vm10 = vcmask 253952  }
  0xcc   : > { %1980 = vmatpush3.bf16.msra.mxu0 %v1979_v4  ;;  %v1988_v15 = vpack.c.bf16 %v721_v11, %v720_v10  ;;  %v1289_v34 = vld [vmem:[#allocation8 + $0x18] sm:$0xff]  ;;  %v934_v59 = vld [vmem:[%s3164_s30 + $0x8] sm:$0xff]  ;;  %v935_v62 = vld [vmem:[%s3164_s30 + $0x10] sm:$0xff] }
  0xcd   : > { %1986 = vmatpush3.bf16.msra.mxu1 %v1985_v8  ;;  %1981 = vmatprep.subr.bf16.mxu0 %v2425_v3  ;;  %v2024_v35 = vpack.c.bf16 %v1289_v34, %v1288_v33  ;;  %v1804_v39 = vld [vmem:[%s3163_s1] ss:$0 sm:$0xff]  ;;  %v936_v63 = vld [vmem:[%s3164_s30 + $0x18] sm:$0xff]  ;;  %v938_v8 = vld [vmem:[%s3164_s30 + $0x28] sm:$0xff] }
  0xce   : > { %1987 = vmatprep.subr.bf16.mxu1 %v2425_v3  ;;  %v933_v58 = vld [vmem:[%s3164_s30] sm:$0xff]  ;;  %v1994_v2 = vpack.c.bf16 %v936_v63, %v935_v62  ;;  %v939_v11 = vld [vmem:[%s3164_s30 + $0x30] sm:$0xff]  ;;  %v911_v18 = vld [vmem:[%s3165_s0 + $0x8] sm:$0xff] }
  0xcf   : > { %v1991_v60 = vpack.c.bf16 %v934_v59, %v933_v58  ;;  %v937_v7 = vld [vmem:[%s3164_s30 + $0x20] sm:$0xff] }
  0xd0   : > { %1983 = vmatpush3.bf16.msra.mxu0 %v1982_v13  ;;  %v1997_v9 = vpack.c.bf16 %v938_v8, %v937_v7  ;;  %v940_v13 = vld [vmem:[%s3164_s30 + $0x38] sm:$0xff] }
  0xd1   : > { %1989 = vmatpush3.bf16.msra.mxu1 %v1988_v15  ;;  %1990 = vmatprep.subr.bf16.mxu0 %v2425_v3  ;;  %v2000_v14 = vpack.c.bf16 %v940_v13, %v939_v11  ;;  %v910_v15 = vld [vmem:[%s3165_s0] sm:$0xff] }
  0xd2   : > { %2002 = vmatprep.subr.bf16.mxu1 %v2425_v3  ;;  %v1814_v13 = vld [vmem:[#allocation10] ss:$0 sm:$0xff] }
  0xd3   : > { %1883 = vmatmul.mubr.msk.f32.vlgmr.msra.gmra.mrb[0].mxu0 %vm726_vm2, %v716_v16 }
  0xd4   : > { %1912 = vmatprep.mubr.msk.f32.mxu0 %vm2426_vm1, %v2427_v12  ;;  %1992 = vmatpush3.bf16.msra.mxu0 %v1991_v60 }
  0xd5   : > { %1993 = vmatprep.subr.bf16.mxu0 %v2425_v3 }
  0xd8   : > { %1995 = vmatpush3.bf16.msra.mxu0 %v1994_v2  ;;  %v1282_v2 = vld [vmem:[%s3168_s27] sm:$0xff] }
  0xd9   : > { %1996 = vmatprep.subr.bf16.mxu0 %v2425_v3 }
  0xdc   : > { %1998 = vmatpush3.bf16.msra.mxu0 %v1997_v9 }
  0xdd   : > { %1999 = vmatprep.subr.bf16.mxu0 %v2425_v3 }
  0xe0   : > { %2001 = vmatpush3.bf16.msra.mxu0 %v2000_v14 }
  0xe1   : > { %2014 = vmatprep.subr.bf16.mxu0 %v2425_v3 }
 0x13b   : > { %v2837_v22 = vpop.permute.xlu0 %801 }
 0x13c   : > { %1894 = vmatmul.mubr.msk.f32.vlgmr.msra.gmra.mrb[0].mxu1 %vm726_vm2, %v2837_v22 }
 0x13d   : > { %2004 = vmatpush3.bf16.msra.mxu1 %v2003_v19  ;;  %1923 = vmatprep.mubr.msk.f32.mxu1 %vm2426_vm1, %v2427_v12 }
 0x13e   : > { %2005 = vmatprep.subr.bf16.mxu1 %v2425_v3 }
 0x141   : > { %2007 = vmatpush3.bf16.msra.mxu1 %v2006_v23 }
 0x142   : > { %2008 = vmatprep.subr.bf16.mxu1 %v2425_v3 }
 0x144   : > { %1924 = vmatmul.mubr.msk.f32.vlgmr.msra.gmra.mrb[2].mxu1 %vm726_vm2, %v716_v16 }
 0x145   : > { %2010 = vmatpush3.bf16.msra.mxu1 %v2009_v26  ;;  %1934 = vmatprep.mubr.msk.f32.mxu1 %vm2426_vm1, %v2427_v12 }
 0x146   : > { %2011 = vmatprep.subr.bf16.mxu1 %v2425_v3 }
 0x149   : > { %2013 = vmatpush3.bf16.msra.mxu1 %v2012_v29 }
 0x14a   : > { %2020 = vmatprep.subr.bf16.mxu1 %v2425_v3 }
 0x14c   : > { %1935 = vmatmul.mubr.msk.f32.vlgmr.msra.gmra.mrb[4].mxu1 %vm726_vm2, %v2781_v0 }
 0x14d   : > { %2022 = vmatpush3.bf16.msra.mxu1 %v2021_v32  ;;  %1956 = vmatprep.mubr.msk.f32.mxu1 %vm2426_vm1, %v2427_v12 }
 0x14e   : > { %2023 = vmatprep.subr.bf16.mxu1 %v2425_v3 }
 0x151   : > { %2025 = vmatpush3.bf16.msra.mxu1 %v2024_v35 }
 0x154   : > { %1957 = vmatmul.mubr.msk.f32.vlgmr.msra.gmra.mrb[6].mxu1 %vm726_vm2, %v2837_v22 }
 0x1a6   : > { %v796_v36 = vpop.f32.mrb[0].mxu0 }
 0x1a7   : > { %v1884_v37 = vpop.f32.mrb[1].mxu0 }
 0x1a8   : > { %v1096_v37 = vld [vmem:[%s3166_s26] sm:$0xff] }
 0x20f   : > { %v871_v38 = vpop.f32.mrb[0].mxu1 }
 0x210   : > { %v872_v40 = vadd.f32 %v871_v38, %v796_v36  ;;  %v1895_v41 = vpop.f32.mrb[1].mxu1  ;;  %v1097_v38 = vld [vmem:[%s3166_s26 + $0x8] sm:$0xff] }
 0x211   : > { %v1099_v41 = vld [vmem:[%s3166_s26 + $0x18] sm:$0xff] }
 0x212   : > { %v882_v42 = vadd.f32 %v1804_v39, %v872_v40  ;;  %v2015_v39 = vpack.c.bf16 %v1097_v38, %v1096_v37  ;;  %v1098_v40 = vld [vmem:[%s3166_s26 + $0x10] sm:$0xff] }
 0x214   : > { %v884_v43 = vsel %vm883_vm3, %v882_v42, -inf }
 0x215   : > { %885 = vmax.xlane.f32.xlu0 %v884_v43 }
 0x217   : > { %v2873_v44 = vpop.f32.mrb[2].mxu1 }
 0x218   : > { %v1925_v45 = vpop.f32.mrb[3].mxu1 }
 0x219   : > { %v1807_v45 = vld [vmem:[%s3167_s21] ss:$0 sm:$0xff] }
 0x21f   : > { %v2875_v46 = vpop.f32.mrb[4].mxu1 }
 0x220   : > { %v1936_v47 = vpop.f32.mrb[5].mxu1 }
 0x227   : > { %v2877_v48 = vpop.f32.mrb[6].mxu1 }
 0x228   : > { %v1958_v49 = vpop.f32.mrb[7].mxu1 }
 0x2a2   : > { %v886_v50 = vpop.xlane.xlu0 %885 }
 0x2a3   : > { %v887_v51 = vsub.f32 %v882_v42, %v886_v50  ;;  %v2018_v42 = vpack.c.bf16 %v1099_v41, %v1098_v40 }
 0x2a5   : > { %v888_v52 = vmul.f32 1.442695, %v887_v51 }
 0x2a7   : > { %2136 = vpow2.f32 %v888_v52  ;;  %v1810_v52 = vld [vmem:[#allocation5] ss:$0 sm:$0xff] }
 0x2b1   : > { %v2137_v53 = vpop.eup %2136 }
 0x2b2   : > { %v890_v54 = vsel %vm883_vm3, %v2137_v53, 0.0 }
 0x2b3   : > { %891 = vadd.xlane.f32.xlu1 %v890_v54 }
 0x340   : > { %v892_v55 = vpop.xlane.xlu1 %891 }
 0x341   : > { %2138 = vrcp.f32 %v892_v55 }
 0x34b   : > { %v2139_v1 = vpop.eup %2138 }
 0x34c   : > { %v894_v4 = vmul.f32 %v2139_v1, %v2137_v53 }
 0x34e   : > { %v899_v5 = vrot.slane %v894_v4, %v898_v61  ;;  %895 = vst.msk [vmem:[#allocation15] sm:$0x3] %vm883_vm3, %v894_v4  ;;  %v906_v10 = vrot.slane %v894_v4, %v905_v6  ;;  %v1283_v4 = vld [vmem:[%s3168_s27 + $0x8] sm:$0xff] }
 0x34f   : > { %v2027_v6 = vpack.c.bf16 %v1283_v4, %v1282_v2 }
 0x350   : > { %901 = vbcast.lane.b32.xlu1 %v899_v5, 256  ;;  %v1284_v5 = vld [vmem:[%s3168_s27 + $0x10] sm:$0xff] }
 0x354   : > { %908 = vbcast.lane.b32.xlu1 %v906_v10, 256 }
 0x3c2   : > { %v902_v16 = vpop.permute.xlu1 %901 }
 0x3c3   : > { %v912_v17 = vmul.f32 %v910_v15, %v902_v16 }
 0x3c5   : > { %v915_v19 = vsel %vm914_vm4, %v912_v17, 0.0 }
 0x3c6   : > { %v916_v20 = vrot.slane %v915_v19, 4  ;;  %v909_v21 = vpop.permute.xlu1 %908 }
 0x3c7   : > { %v913_v23 = vmul.f32 %v911_v18, %v909_v21 }
 0x3c8   : > { %v917_v24 = vadd.f32 %v916_v20, %v915_v19 }
 0x3c9   : > { %v922_v25 = vsel %vm914_vm4, %v913_v23, 0.0 }
 0x3ca   : > { %v918_v26 = vrot.slane %v917_v24, 2  ;;  %v923_v27 = vrot.slane %v922_v25, 4 }
 0x3cc   : > { %v919_v28 = vadd.f32 %v918_v26, %v917_v24  ;;  %v924_v29 = vadd.f32 %v923_v27, %v922_v25 }
 0x3ce   : > { %v925_v30 = vrot.slane %v924_v29, 2  ;;  %v920_v31 = vrot.slane %v919_v28, 1 }
 0x3d0   : > { %v926_v32 = vadd.f32 %v925_v30, %v924_v29  ;;  %v921_v34 = vadd.f32 %v920_v31, %v919_v28  ;;  %v2431_v29 = vmov 1966171168  }
 0x3d2   : > { %v927_v33 = vrot.slane %v926_v32, 1 }
 0x3d4   : > { %v928_v35 = vadd.f32 %v927_v33, %v926_v32 }
 0x3d6   : > { %v944_v36 = vsel %vm943_vm5, %v928_v35, %v921_v34 }
 0x3d7   : > { %1913 = vmatmul.mubr.msk.f32.vlgmr.msra.gmra.mrb[2].mxu0 %vm914_vm4, %v944_v36 }
 0x3d8   : > { %1945 = vmatprep.mubr.msk.f32.mxu0 %vm2426_vm1, %v2427_v12  ;;  %2016 = vmatpush3.bf16.msra.mxu0 %v2015_v39 }
 0x3d9   : > { %2017 = vmatprep.subr.bf16.mxu0 %v2425_v3 }
 0x3dc   : > { %2019 = vmatpush3.bf16.msra.mxu0 %v2018_v42 }
 0x3dd   : > { %2026 = vmatprep.subr.bf16.mxu0 %v2425_v3 }
 0x4aa   : > { %v1013_v43 = vpop.f32.mrb[2].mxu0 }
 0x4ab   : > { %v1084_v47 = vadd.f32 %v2873_v44, %v1013_v43  ;;  %v1914_v49 = vpop.f32.mrb[3].mxu0 }
 0x4ad   : > { %v1094_v50 = vadd.f32 %v1807_v45, %v1084_v47 }
 0x4af   : > { %v1095_v51 = vmax.f32 %v1094_v50, 0.0 }
 0x4b1   : > { %1946 = vmatmul.mubr.msk.f32.vlgmr.msra.gmra.mrb[4].mxu0 %vm726_vm2, %v1095_v51 }
 0x4b2   : > { %1967 = vmatprep.mubr.msk.f32.mxu0 %vm2426_vm1, %v2427_v12  ;;  %2028 = vmatpush3.bf16.msra.mxu0 %v2027_v6 }
 0x4b3   : > { %2029 = vmatprep.subr.bf16.mxu0 %v2425_v3 }
 0x584   : > { %v1246_v53 = vpop.f32.mrb[4].mxu0 }
 0x585   : > { %v1247_v54 = vadd.f32 %v1246_v53, %v2875_v46  ;;  %v1947_v55 = vpop.f32.mrb[5].mxu0 }
 0x587   : > { %v1256_v56 = vadd.f32 %v1810_v52, %v1247_v54 }
 0x589   : > { %2140 = vtanh.f32 %v1256_v56  ;;  %v1811_v44 = vmul.f32 -1.442695, %v1256_v56 }
 0x58b   : > { %2142 = vpow2.f32 %v1811_v44 }
 0x593   : > { %v2141_v58 = vpop.eup %2140 }
 0x594   : > { %1267 = vrot.lane.b32.xlu1 %v2141_v58, %s2429_s17 }
 0x595   : > { %v2143_v59 = vpop.eup %2142 }
 0x596   : > { %v1260_v60 = vadd.f32 1.0, %v2143_v59 }
 0x598   : > { %2144 = vrcp.f32 %v1260_v60 }
 0x5a2   : > { %v2145_v61 = vpop.eup %2144 }
 0x5a3   : > { %v1265_v12 = vmul.f32 %v2145_v61, %v2837_v22  ;;  %v1285_v22 = vld [vmem:[%s3168_s27 + $0x18] sm:$0xff] }
 0x5a4   : > { %v2030_v7 = vpack.c.bf16 %v1285_v22, %v1284_v5 }
 0x5a6   : > { %2031 = vmatpush3.bf16.msra.mxu0 %v2030_v7 }
 0x606   : > { %v1268_v62 = vpop.permute.xlu1 %1267 }
 0x607   : > { %v1270_v63 = vmul.f32 %v2145_v61, %v1268_v62 }
 0x609   : > { %1272 = vrot.lane.b32.xlu1 %v1270_v63, %s2430_s15 }
 0x67b   : > { %v1273_v46 = vpop.permute.xlu1 %1272 }
 0x67c   : > { %v1275_v1 = vadd.f32 %v1273_v46, %v1265_v12 }
 0x67e   : > { %2146 = vtanh.f32 %v1275_v1 }
 0x688   : > { %v2147_v8 = vpop.eup %2146 }
 0x689   : > { %1278 = vrot.lane.b32.xlu1 %v2147_v8, %s2429_s17 }
 0x6fb   : > { %v1279_v9 = vpop.permute.xlu1 %1278 }
 0x6fc   : > { %v1281_v10 = vmul.f32 %v2145_v61, %v1279_v9 }
 0x6fe   : > { %1362 = vrot.lane.b32.xlu0 %v1281_v10, %s2430_s15 }
 0x702   : > { %1480 = vrot.lane.b32.xlu0 %v1275_v1, %s2430_s15 }
 0x770   : > { %v1363_v11 = vpop.permute.xlu0 %1362 }
 0x771   : > { %1472 = vst.msk [vmem:[%s3169_s5] sm:$0x3] %vm1471_vm6, %v1363_v11  ;;  %1968 = vmatmul.mubr.msk.f32.vlgmr.msra.gmra.mrb[6].mxu0 %vm726_vm2, %v1363_v11 }
 0x774   : > { %v1481_v38 = vpop.permute.xlu0 %1480 }
 0x844   : > { %v1432_v3 = vpop.f32.mrb[6].mxu0 }
 0x845   : > { %v1433_v14 = vadd.f32 %v1432_v3, %v2877_v48  ;;  %v1969_v15 = vpop.f32.mrb[7].mxu0 }
 0x847   : > { %v1442_v16 = vadd.f32 %v1814_v13, %v1433_v14 }
 0x849   : > { %2148 = vtanh.f32 %v1442_v16  ;;  %v1815_v18 = vmul.f32 -1.442695, %v1442_v16 }
 0x84b   : > { %2150 = vpow2.f32 %v1815_v18 }
 0x853   : > { %v2149_v17 = vpop.eup %2148 }
 0x854   : > { %1455 = vrot.lane.b32.xlu1 %v2149_v17, %s2429_s17 }
 0x855   : > { %v2151_v19 = vpop.eup %2150 }
 0x856   : > { %v1446_v20 = vadd.f32 1.0, %v2151_v19 }
 0x858   : > { %1450 = vrot.lane.b32.xlu1 %v2781_v0, %s2429_s17  ;;  %2152 = vrcp.f32 %v1446_v20  ;;  %v1494_v0 = vunpack.c.l.s4 %v2431_v29 }
 0x85a   : > { %v1495_v30 = vunpack.c.0.s8 %v1494_v0 }
 0x85c   : > { %v1498_v32 = vsub.s32 %v1495_v30, %v2880_v57 }
 0x862   : > { %v2153_v21 = vpop.eup %2152 }
 0x8c6   : > { %v1456_v23 = vpop.permute.xlu1 %1455 }
 0x8c7   : > { %v1458_v24 = vmul.f32 %v2153_v21, %v1456_v23 }
 0x8c9   : > { %1460 = vrot.lane.b32.xlu1 %v1458_v24, %s2430_s15 }
 0x8ca   : > { %v1451_v48 = vpop.permute.xlu1 %1450 }
 0x8cb   : > { %v1453_v25 = vmul.f32 %v2153_v21, %v1451_v48 }
 0x93b   : > { %v1461_v26 = vpop.permute.xlu1 %1460 }
 0x93c   : > { %v1463_v27 = vadd.f32 %v1461_v26, %v1453_v25 }
 0x93e   : > { %2154 = vtanh.f32 %v1463_v27 }
 0x948   : > { %v2155_v28 = vpop.eup %2154 }
 0x949   : > { %1466 = vrot.lane.b32.xlu1 %v2155_v28, %s2429_s17 }
 0x9bb   : > { %v1467_v31 = vpop.permute.xlu1 %1466 }
 0x9bc   : > { %v1469_v33 = vmul.f32 %v2153_v21, %v1467_v31 }
 0x9be   : > { %v1491_v34 = vpack.c.bf16 %v1469_v33, %v1469_v33  ;;  %1474 = vrot.lane.b32.xlu1 %v1469_v33, %s2429_s17 }
 0x9c0   : > { %v1499_v35 = vrot.slane %v1491_v34, %v1498_v32 }
 0x9c2   : > { %1486 = vrot.lane.b32.xlu1 %v1463_v27, %s2429_s17  ;;  %v1506_v36 = vrot.slane %v1499_v35, %v1498_v32 }
 0x9c4   : > { %1507 = vrot.lane.b32.xlu0 %v1506_v36, %s2430_s15 }
 0xa30   : > { %v1475_v37 = vpop.permute.xlu1 %1474 }
 0xa31   : > { %1478 = vst.msk [vmem:[%s3169_s5] sm:$0x3] %vm1477_vm7, %v1475_v37 }
 0xa32   : > { %1484 = vst.msk [vmem:[%s3169_s5] sm:$0x3] %vm1483_vm8, %v1481_v38 }
 0xa34   : > { %v1487_v57 = vpop.permute.xlu1 %1486 }
 0xa35   : > { %1490 = vst.msk [vmem:[%s3169_s5] sm:$0x3] %vm1489_vm9, %v1487_v57 }
 0xa36   : > { %v1508_v39 = vpop.permute.xlu0 %1507 }
 0xa37   : > { %1511 = vst.msk [vmem:[#allocation2] sm:$0x1] %vm1510_vm10, %v1508_v39 }
 0xa38 PF: > { %v2157_v40 = vld [vmem:[%s2766_s9] sm:$0xff]   ;;  %v2432_v41 = vmov 0.0   ;;  %v2158_v42 = vld [vmem:[%s2766_s9 + $0x8] sm:$0xff]   ;;  %vm2433_vm11 = vmmov 0   ;;  %vm1539_vm12 = vcmask 261120   ;;  %vm1584_vm13 = vcmask 1041408  }
 0xa39   : > { %1970 = vmatprep.subr.bf16.mxu0 %v2432_v41  ;;  %1974 = vmatprep.mubr.msk.bf16.mxu0 %vm2433_vm11, %v2432_v41  ;;  %v1816_v45 = vld [vmem:[%s650_s25] ss:$0 sm:$0xff]  ;;  %v2434_v54 = vmov 0   ;;  %v1588_v55 = vld [vmem:[#allocation3] sm:$0x3]  ;;  %vm1607_vm14 = vcmask 1024  }
 0xa3a   : > { %1971 = vmatpush3.bf16.msra.mxu0 %v2157_v40  ;;  %2156 = vset.pattern.permute.xlu0 %v2434_v54  ;;  %v1589_v1 = vld [vmem:[#allocation4] sm:$0x3]  ;;  %p1820_p3 = scmp.ne.s32.totalorder %s2563_s2, 1 }
 0xa3b   : > { %1972 = vmatprep.subr.bf16.mxu0 %v2432_v41  ;;  %s3170_s15 = sld [smem:[#allocation42_spill]] (!%p1820_p3) }
 0xa3e   : > { %1973 = vmatpush3.bf16.msra.mxu0 %v2158_v42  ;;  %v1515_v43 = vld [vmem:[#allocation2] sm:$0x1] }
 0xa41   : > { %1975 = vmatmul.mubr.msk.bf16.vlgmr.msra.gmra.mrb[0].mxu0 %vm1539_vm12, %v1515_v43 }
 0xb14   : > { %v1577_v47 = vpop.f32.mrb[0].mxu0 }
 0xb15   : > { %v1578_v49 = vadd.f32 %v1816_v45, %v1577_v47  ;;  %v1976_v50 = vpop.f32.mrb[1].mxu0 }
 0xb16   : > { %v1580_v51 = vpop.f32.mrb[2].mxu0 }
 0xb17   : > { %1583 = vst [vmem:[%s2774_s13] sm:$0x3] %v1578_v49  ;;  %v1977_v52 = vpop.f32.mrb[3].mxu0  ;;  %v1585_v53 = vsel %vm1584_vm13, %v1578_v49, -inf }
 0xb18   : > { %1586 = vmax.xlane.f32.xlu0 %v1585_v53 }
 0xba5   : > { %v1587_v56 = vpop.xlane.xlu0 %1586 }
 0xba6   : > { %v1590_v58 = vmax.f32 %v1588_v55, %v1587_v56 }
 0xba8   : > { %v1591_v44 = vsub.f32 %v1588_v55, %v1590_v58  ;;  %1608 = vst.msk [vmem:[#allocation3] sm:$0x3] %vm1607_vm14, %v1590_v58  ;;  %1597 = vperm.xlu0 %2156, %v1590_v58  }
 0xbaa   : > { %v1592_v12 = vmul.f32 1.442695, %v1591_v44 }
 0xbaf   : > { %v1614_v7 = vld [vmem:[#allocation3] sm:$0x3] (!%p1820_p3) }
 0xc27   : > { %v1598_v59 = vpop.permute.xlu0 %1597 }
 0xc28   : > { %v1600_v60 = vsub.f32 %v1578_v49, %v1598_v59 }
 0xc2a   : > { %v1601_v61 = vmul.f32 1.442695, %v1600_v60 }
 0xc2c   : > { %2159 = vpow2.f32 %v1601_v61 }
 0xc2d   : > { %2161 = vpow2.f32 %v1592_v12 }
 0xc36   : > { %v2160_v62 = vpop.eup %2159 }
 0xc37   : > { %v1603_v63 = vsel %vm1584_vm13, %v2160_v62, 0.0  ;;  %v2162_v46 = vpop.eup %2161 }
 0xc38   : > { %1604 = vadd.xlane.f32.xlu1 %v1603_v63  ;;  %v1594_v2 = vmul.f32 %v2162_v46, %v1589_v1 }
 0xcc2   : > { %1613 = sbr.rel (%p1820_p3) target bundleno = 3296 (0xce0), region = 116 }
 0xcc5   : > { %v1605_v4 = vpop.xlane.xlu1 %1604 }
 0xcc6   : > { %v1606_v5 = vadd.f32 %v1605_v4, %v1594_v2 }
 0xcc8   : > { %1609 = vst.msk [vmem:[#allocation4] sm:$0x3] %vm1607_vm14, %v1606_v5 }
 0xccf   : > { %v1615_v6 = vld [vmem:[#allocation4] sm:$0x3] }
 0xcd0   : > { %2163 = vlog2.f32 %v1615_v6 }
 0xcda   : > { %v2164_v22 = vpop.eup %2163 }
 0xcdb   : > { %v1617_v8 = vmul.f32 0.6931472, %v2164_v22 }
 0xcdd   : > { %v1618_v9 = vadd.f32 %v1617_v8, %v1614_v7 }
 0xcdf   : > { %1619 = vst.msk [vmem:[%s3170_s15] sm:$0x3] %vm1607_vm14, %v1618_v9 }
 0xce0 PF: > { %s3171_s1 = sld [smem:[#allocation25_spill]]  ;;  %s1822_s18 = sshll.u32 %s2563_s2, 5 }
 0xce1   : > { %s3172_s7 = sld [smem:[#allocation39_spill]]  ;;  %s1634_s8 = sshll.u32 %s2774_s13, 4  ;;  %s1635_s8 = int_to_ptr.vmem [resolvable:$true] %s1634_s8 }
 0xce2   : > { %s1621_s3 = scalar_lea.sflag [#allocation7], %s2763_s19  ;;  %s2309_s12 = scalar_lea.vmem %s1635_s8, 32 }
 0xce3   : > { %p2310_p8 = scmp.ne.s32.totalorder %s1635_s8, %s2309_s12  ;;  %s2435_s17 = smov [#allocation14]  }
 0xce4   : > { %s2313_s9 = sshll.u32 %s2435_s17, 4  ;;  %s2314_s9 = int_to_ptr.vmem [resolvable:$false] %s2313_s9 }
 0xce5   : > { %s2315_s25 = scalar_lea.vmem %s2314_s9, 64  ;;  %p2316_p0 = scmp.lt.s32.totalorder %s1635_s8, %s2314_s9 }
 0xce6   : > { %p3173_p10 = scmp.ne.s32.totalorder %s3171_s1, 0  ;;  %p2317_p11 = scmp.lt.s32.totalorder %s2315_s25, %s2309_s12 }
 0xce7   : > { %s3006_s29 = scalar_lea.hbm %s3172_s7, %s1822_s18 }
 0xce8   : > { %p2311_p13 = pnand %p2310_p8, %p3173_p10  ;;  %p2318_p2 = por %p2317_p11, %p2316_p0 }
 0xcea   : > { %p2312_p9 = pneg %p2311_p13 }
 0xcec   : > { %p2319_p4 = pnand %p2318_p2, %p2312_p9 }
 0xcee   : > { %2322 = shalt.err (!%p2319_p4)
}
 0xcef   : > { %s2323_s19 = scalar_lea.hbm %s3006_s29, 32  ;;  %s2327_s18 = scalar_lea.hbm %s3172_s7, 64 }
 0xcf0   : > { %p2324_p7 = scmp.ne.s32.totalorder %s3006_s29, %s2323_s19  ;;  %p2328_p6 = scmp.lt.u32.totalorder %s3006_s29, %s3172_s7 }
 0xcf1   : > { %p2329_p1 = scmp.lt.u32.totalorder %s2327_s18, %s2323_s19  ;;  %p2331_p8 = scmp.lt.u32.totalorder %s2323_s19, %s3006_s29 }
 0xcf2   : > { %p2325_p5 = pnand %p2324_p7, %p3173_p10 }
 0xcf3   : > { %p2330_p3 = por %p2329_p1, %p2328_p6 }
 0xcf4   : > { %p2326_p12 = pneg %p2325_p5 }
 0xcf5   : > { %p2332_p13 = por %p2331_p8, %p2330_p3 }
 0xcf7   : > { %p2333_p9 = pnand %p2332_p13, %p2326_p12 }
 0xcf9   : > { %2336 = shalt.err (!%p2333_p9)
}
 0xcfa   : > { %2048 = dma.vmem_to_hbm [thread:$0]  (%p3173_p10), %s1635_s8, 32, %s3006_s29, %s1621_s3  }
 0xcfb   : > { %s2436_s12 = smov [#allocation15]   ;;  %p3174_p11 = scmp.eq.s32.totalorder %s2563_s2, 1 }
 0xcfc   : > { %s1648_s17 = sshll.u32 %s2436_s12, 4  ;;  %s1649_s17 = int_to_ptr.vmem [resolvable:$true] %s1648_s17 }
 0xcfd   : > { %s2337_s9 = scalar_lea.vmem %s1649_s17, 32  ;;  %p2344_p7 = scmp.lt.s32.totalorder %s1649_s17, %s1649_s17 }
 0xcfe   : > { %p2338_p0 = scmp.ne.s32.totalorder %s1649_s17, %s2337_s9  ;;  %p2345_p5 = scmp.lt.s32.totalorder %s2337_s9, %s2337_s9 }
 0xd00   : > { %p2339_p2 = pnand %p2338_p0, %p3174_p11  ;;  %p2346_p6 = por %p2345_p5, %p2344_p7 }
 0xd02   : > { %p2340_p4 = pneg %p2339_p2 }
 0xd04   : > { %p2347_p1 = pnand %p2346_p6, %p2340_p4 }
 0xd06   : > { %2350 = shalt.err (!%p2347_p1)
}
 0xd07   : > { %s3175_s13 = sld [smem:[#allocation41_spill]]  ;;  %p3176_p12 = pmov %p3174_p11 }
 0xd0d   : > { %s2351_s1 = scalar_lea.hbm %s3175_s13, 32 }
 0xd0e   : > { %p2352_p10 = scmp.ne.s32.totalorder %s3175_s13, %s2351_s1  ;;  %p2357_p13 = scmp.lt.u32.totalorder %s2351_s1, %s3175_s13 }
 0xd10   : > { %p2353_p3 = pnand %p2352_p10, %p3176_p12 }
 0xd12   : > { %p2354_p8 = pneg %p2353_p3 }
 0xd14   : > { %p2359_p9 = pnand %p2357_p13, %p2354_p8 }
 0xd16   : > { %2362 = shalt.err (!%p2359_p9)
}
 0xd17   : > { %p3177_p0 = pmov %p3174_p11 }
 0xd19   : > { %2050 = dma.vmem_to_hbm [thread:$0]  (%p3177_p0), %s1649_s17, 32, %s3175_s13, [#allocation16]  }
 0xd1a   : > { %p3178_p11 = pmov %p3177_p0 }
 0xd1b   : > { %p3179_p2 = pmov %p3177_p0 }
 0xd1c   : > { %2392 = dma.done.wait (%p3178_p11), [#allocation16], 32  }
 0xd1d   : > { %2394 = vsyncadd (%p3179_p2), [#allocation16], 4294967264 }
 0xd1e PF: > { %s3180_s21 = sld [smem:[#allocation22_spill]]  ;;  %s3181_s12 = sld [smem:[#allocation26_spill]] }
 0xd1f   : > { %p3183_p7 = scmp.ge.s32.totalorder %s2413_s24, 2 }
 0xd24   : > { %s1673_s9 = sand.u32 1, %s3180_s21   ;;  %p3182_p4 = scmp.ne.s32.totalorder %s3181_s12, 0 }
 0xd25   : > { %s1674_s25 = scalar_lea.sflag [#allocation7], %s1673_s9 }
 0xd26   : > { %p2072_p5 = pnand %p3183_p7, %p3182_p4 }
 0xd28   : > { %2396 = dma.done.wait (!%p2072_p5), %s1674_s25, 32  }
 0xd29   : > { %2398 = vsyncadd (!%p2072_p5), %s1674_s25, 4294967264  ;;  %s3184_s24 = sld [smem:[#allocation23_spill]]  ;;  %s3185_s17 = sld [smem:[#allocation24_spill]] }
 0xd2a   : > { %s3186_s1 = smov %s2405_s22  ;;  %s3187_s22 = smov %s2409_s23 }
 0xd2f   : > { %p37_p6 = scmp.ge.s32.totalorder %s3184_s24, 4   ;;  %s3188_s23 = smov %s3185_s17 }
 0xd31   :  { %39 = sbr.rel (!%p37_p6) target bundleno = 25 (0x19), region = 189 }
 0xd38   :  { %1679 = vsyncpa [#allocation6], 1 }
 0xd39   :  { %1681 = vsyncpa [#allocation6 + $0x1], 1 }
 0xd3a   :  { %1682 = vsyncpa [#allocation9], 1 }
 0xd3b   :  { %1683 = vsyncpa [#allocation12], 1 }
 0xd3c   :  { %1685 = vsyncpa [#allocation12 + $0x1], 1 }
 0xd3d   :  { %1686 = vsyncpa [#allocation7], 1 }
 0xd3e   :  { %1688 = vsyncpa [#allocation7 + $0x1], 1 }
 0xd3f   :  { %1689 = vsyncpa [#allocation16], 1 }

</bundles_post_ra>
